<compile_context>
chip_gen: v7x
topology: tpu7x:2x2x1
jax: 0.10.0
libtpu: 0.0.40
codegen_flags: <defaults>
</compile_context>

<pallas_src>
import functools

import jax
import jax.numpy as jnp
from jax import lax
from jax.experimental import pallas as pl
from jax.experimental.pallas import tpu as pltpu

# Streamed-operand dtype for every matmul (accumulation stays float32 on the MXU).
MATMUL_INPUT_DTYPE = jnp.bfloat16


def _round_up(x, m):
    return ((x + m - 1) // m) * m


def _pick_row_block(m, cap=512):
    """Row tile for (m, F) matmuls: <= cap, multiple of 8, >=2 grid steps when possible."""
    if m <= 8:
        return m
    tm = min(cap, _round_up(m, 8))
    if tm >= m:                                   # single step: split so both v7x TCs work
        tm = max(8, _round_up(-(-m // 2), 8))
    return tm


def _pick_batch_block(batch, rows_per_image, target_rows=2048):
    """Images per conv grid step: ~target_rows matmul rows, >=2 grid steps when possible."""
    nb = max(1, min(batch, target_rows // max(1, rows_per_image)))
    if nb >= batch and batch >= 2:
        nb = (batch + 1) // 2
    return nb


# ----------------------------------------------------------------------------
# Pallas kernel 1: fused conv (+bias+ReLU) with in-VMEM patch extraction
# ----------------------------------------------------------------------------
def _conv_kernel(x_ref, w_ref, b_ref, o_ref, *, kh, kw, ho, wo, wo_p, cin):
    """Stride-1 VALID conv on an NHWC batch block (stride handled by space-to-depth).

    x_ref: (nb, hin, win_p, cin)  streamed activations (bf16/f32)
    w_ref: (kh*kw*cin, cout)      VMEM-resident weights
    b_ref: (1, cout)              VMEM-resident bias (f32)
    o_ref: (nb, ho, wo, cout)
    """
    nb, cout = o_ref.shape[0], o_ref.shape[3]
    rows = nb * ho * wo_p
    acc = jnp.zeros((rows, cout), jnp.float32)
    for i in range(kh):
        for j in range(kw):
            # Patch extraction stays in VMEM: contiguous slice of the activation band.
            patch = x_ref[:, i:i + ho, j:j + wo_p, :].astype(jnp.float32)
            patch = patch.reshape(rows, cin)        # wo_p % 8 == 0 -> layout-preserving
            w_ij = w_ref[(i * kw + j) * cin:(i * kw + j + 1) * cin, :]
            acc += jnp.dot(patch.astype(w_ij.dtype), w_ij,
                           preferred_element_type=jnp.float32)
    y = jnp.maximum(acc + b_ref[...], 0.0)
    y = y.reshape(nb, ho, wo_p, cout)[:, :, :wo, :]   # drop padded output columns
    o_ref[...] = y.astype(o_ref.dtype)


def _space_to_depth(x, s):
    """(B, H, W, C) -> (B, ceil(H/s), ceil(W/s), s*s*C); zero-pads H, W to multiples of s."""
    if s == 1:
        return x
    b, h, w, c = x.shape
    hp, wp = _round_up(h, s), _round_up(w, s)
    if (hp, wp) != (h, w):
        x = jnp.pad(x, ((0, 0), (0, hp - h), (0, wp - w), (0, 0)))
    x = x.reshape(b, hp // s, s, wp // s, s, c).transpose(0, 1, 3, 2, 4, 5)
    return x.reshape(b, hp // s, wp // s, s * s * c)


def _s2d_weight(w, s):
    """(Cout, Cin, KH, KW) torch conv weight -> (KH/s*KW/s*s*s*Cin, Cout) matmul weight
    whose row order matches the space-to-depth input channel order (di, dj, c)."""
    cout, cin, kh, kw = w.shape
    khb, kwb = kh // s, kw // s
    w = w.reshape(cout, cin, khb, s, kwb, s).transpose(2, 4, 3, 5, 1, 0)
    return w.reshape(khb * kwb * s * s * cin, cout)


def conv2d_relu_nhwc(x, w, b, stride, *, target_rows=2048):
    """Fused NHWC conv + bias + ReLU (VALID).  One pallas_call; patches never touch HBM."""
    batch, h, win, cin0 = x.shape
    cout, _, kh0, kw0 = w.shape
    assert kh0 % stride == 0 and kw0 % stride == 0   # holds for NatureCNN (8/4, 4/2, 3/1)
    ho = (h - kh0) // stride + 1
    wo = (win - kw0) // stride + 1

    # Strided conv -> stride-1 conv in space-to-depth layout (single 1x relayout, bf16).
    xs = _space_to_depth(x.astype(MATMUL_INPUT_DTYPE), stride)
    kh, kw = kh0 // stride, kw0 // stride
    cin = stride * stride * cin0
    wo_p = _round_up(wo, 8)                           # 8-aligned patch rows per image row
    win_p = max(xs.shape[2], wo_p + kw - 1)
    if win_p > xs.shape[2]:
        xs = jnp.pad(xs, ((0, 0), (0, 0), (0, win_p - xs.shape[2]), (0, 0)))
    hin = xs.shape[1]

    w_mat = _s2d_weight(w, stride).astype(MATMUL_INPUT_DTYPE)
    nb = _pick_batch_block(batch, ho * wo, target_rows)
    kernel = functools.partial(_conv_kernel, kh=kh, kw=kw, ho=ho, wo=wo, wo_p=wo_p, cin=cin)

    # TODO(synk): sweep pipeline_mode=pl.Buffered(3) on the streamed x spec and a lane-dense
    # out_spec for the 32/64-channel conv outputs (v5e single store slot) once profiled.
    return pl.pallas_call(
        kernel,
        out_shape=jax.ShapeDtypeStruct((batch, ho, wo, cout), MATMUL_INPUT_DTYPE),
        grid=(pl.cdiv(batch, nb),),
        in_specs=[
            pl.BlockSpec((nb, hin, win_p, cin), lambda i: (i, 0, 0, 0)),
            pl.BlockSpec(w_mat.shape, lambda i: (0, 0)),      # resident weights
            pl.BlockSpec((1, cout), lambda i: (0, 0)),        # resident bias
        ],
        out_specs=pl.BlockSpec((nb, ho, wo, cout), lambda i: (i, 0, 0, 0)),
        compiler_params=pltpu.CompilerParams(dimension_semantics=("parallel",)),
    )(xs, w_mat, b.reshape(1, cout).astype(jnp.float32))


# ----------------------------------------------------------------------------
# Pallas kernel 2: fully fused head (MLP stacks + dueling combine)
# ----------------------------------------------------------------------------
def _head_kernel(x_ref, *refs, n_a, n_v, n_actions, fused_v):
    out_ref = refs[-1]
    wb = refs[:-1]

    def mlp(h, off, n_layers):
        for i in range(n_layers):
            w = wb[off + 2 * i][...]
            bias = wb[off + 2 * i + 1][...]
            h = jnp.dot(h.astype(w.dtype), w, preferred_element_type=jnp.float32) + bias
            if i < n_layers - 1:
                h = jnp.maximum(h, 0.0)
        return h

    a = mlp(x_ref[...], 0, n_a)           # (tm, 128): [advantages | (V) | zero pad]
    if fused_v:
        adv = a[:, :n_actions]
        v = a[:, n_actions:n_actions + 1]
        q = v + a - jnp.mean(adv, axis=-1, keepdims=True)
    elif n_v:
        adv = a[:, :n_actions]
        v = mlp(x_ref[...], 2 * n_a, n_v)  # (tm, 1)
        q = v + a - jnp.mean(adv, axis=-1, keepdims=True)
    else:
        q = a
    out_ref[...] = q.astype(out_ref.dtype)   # lane-dense store; wrapper slices :n_actions


def fuse_dueling_head(action_layers, value_layers):
    """Fuse action + value MLPs into one stack (col-concat first layer, block-diag after).
    Only used when the hidden width is below the MXU lane width."""
    fused = []
    for i, ((wa, ba), (wv, bv)) in enumerate(zip(action_layers, value_layers)):
        if i == 0:
            w = jnp.concatenate([wa, wv], axis=1)
        else:
            top = jnp.concatenate([wa, jnp.zeros((wa.shape[0], wv.shape[1]), wa.dtype)], 1)
            bot = jnp.concatenate([jnp.zeros((wv.shape[0], wa.shape[1]), wa.dtype), wv], 1)
            w = jnp.concatenate([top, bot], axis=0)
        fused.append((w, jnp.concatenate([ba, bv])))
    return fused


def _fold_nchw_flatten(w0, h, wdim, c):
    """Reorder first-layer weight rows from NCHW-flatten (c,h,w) to NHWC-flatten (h,w,c)."""
    n = w0.shape[1]
    return w0.reshape(c, h, wdim, n).transpose(1, 2, 0, 3).reshape(h * wdim * c, n)


def prepare_head_layers(params, conv_spatial, n_actions, dueling, *, fuse_below=128):
    h3, w3, c3 = conv_spatial

    def permuted(layers):
        (w0, b0) = layers[0]
        return [(_fold_nchw_flatten(w0, h3, w3, c3), b0)] + list(layers[1:])

    act = permuted(params["action_net"])
    val = permuted(params["value_net"]) if dueling else None
    hidden = [w.shape[1] for w, _ in act[:-1]]
    fused_v = dueling and (not hidden or max(hidden) < fuse_below)
    if fused_v:
        a_layers, v_layers = fuse_dueling_head(act, val), []
    elif dueling:
        a_layers, v_layers = act, val
    else:
        a_layers, v_layers = act, []
    # Lane-dense store: pad the final action-stack weight/bias to >=128 columns (zeros).
    w_last, b_last = a_layers[-1]
    out_cols = max(128, _round_up(w_last.shape[1], 128))
    pad = out_cols - w_last.shape[1]
    a_layers = a_layers[:-1] + [(jnp.pad(w_last, ((0, 0), (0, pad))),
                                 jnp.pad(b_last, (0, pad)))]
    return a_layers, v_layers, fused_v, out_cols


def pallas_head(features, a_layers, v_layers, *, n_actions, fused_v, out_cols, row_cap=512):
    m, f = features.shape
    tm = _pick_row_block(m, row_cap)   # cap keeps resident weights + feature block in v7x VMEM
    in_specs = [pl.BlockSpec((tm, f), lambda i: (i, 0))]
    args = [features.astype(MATMUL_INPUT_DTYPE)]
    for w, b in list(a_layers) + list(v_layers):
        k, n = w.shape
        in_specs.append(pl.BlockSpec((k, n), lambda i: (0, 0)))   # resident weights
        in_specs.append(pl.BlockSpec((1, n), lambda i: (0, 0)))   # resident bias
        args += [w.astype(MATMUL_INPUT_DTYPE), b.reshape(1, n).astype(jnp.float32)]
    kernel = functools.partial(_head_kernel, n_a=len(a_layers), n_v=len(v_layers),
                               n_actions=n_actions, fused_v=fused_v)
    out = pl.pallas_call(
        kernel,
        out_shape=jax.ShapeDtypeStruct((m, out_cols), jnp.float32),
        grid=(pl.cdiv(m, tm),),
        in_specs=in_specs,
        out_specs=pl.BlockSpec((tm, out_cols), lambda i: (i, 0)),
        compiler_params=pltpu.CompilerParams(dimension_semantics=("parallel",)),
    )(*args)
    return out[:, :n_actions]


# ----------------------------------------------------------------------------
# Policy = NatureCNN + fused dueling head
# ----------------------------------------------------------------------------
def nature_cnn_feature_dim(observation_shape):
    _, h, w = observation_shape
    for k, s in ((8, 4), (4, 2), (3, 1)):
        h = (h - k) // s + 1
        w = (w - k) // s + 1
    return 64 * h * w


def init_params(key, observation_shape, n_actions, hidden_layers, dueling):
    channels = observation_shape[0]
    n_lin = len(hidden_layers) + 1
    ks = list(jax.random.split(key, 3 + n_lin * (2 if dueling else 1)))

    def conv_p(k, cout, cin, kh, kw):
        std = jnp.sqrt(2.0 / (cin * kh * kw))
        return (jax.random.normal(k, (cout, cin, kh, kw), jnp.float32) * std,
                jnp.zeros((cout,), jnp.float32))

    def lin_p(k, n_in, n_out):
        std = jnp.sqrt(2.0 / n_in)    # kaiming_normal_(relu) + zero bias (_he_initialization)
        return (jax.random.normal(k, (n_in, n_out), jnp.float32) * std,
                jnp.zeros((n_out,), jnp.float32))

    params = {"conv1": conv_p(ks[0], 32, channels, 8, 8),
              "conv2": conv_p(ks[1], 64, 32, 4, 4),
              "conv3": conv_p(ks[2], 64, 64, 3, 3)}
    feat = nature_cnn_feature_dim(observation_shape)
    dims = [feat] + list(hidden_layers) + [n_actions]
    params["action_net"] = [lin_p(ks[3 + i], dims[i], dims[i + 1]) for i in range(len(dims) - 1)]
    if dueling:
        vdims = [feat] + list(hidden_layers) + [1]
        off = 3 + n_lin
        params["value_net"] = [lin_p(ks[off + i], vdims[i], vdims[i + 1])
                               for i in range(len(vdims) - 1)]
    return params


def nature_cnn(params, x_nhwc):
    h = conv2d_relu_nhwc(x_nhwc, *params["conv1"], stride=4)
    h = conv2d_relu_nhwc(h, *params["conv2"], stride=2)
    h = conv2d_relu_nhwc(h, *params["conv3"], stride=1)
    b, h3, w3, c3 = h.shape
    # NHWC flatten; the NCHW-flatten permutation is folded into the head's first weight.
    # TODO(synk): for B<=32 inference, fuse conv3 + flatten + head into one pallas_call.
    return h.reshape(b, h3 * w3 * c3), (h3, w3, c3)


def policy_forward(params, x, dueling):
    # x: (B, C, H, W) NCHW (PyTorch convention) or (C, H, W) for a single image.
    # TODO(synk): vector-observation path (nn.Identity extractor) not implemented; CNN only.
    single = x.ndim == 3
    if single:
        x = x[None]
    x_nhwc = jnp.transpose(x.astype(MATMUL_INPUT_DTYPE), (0, 2, 3, 1))
    feats, spatial = nature_cnn(params, x_nhwc)
    n_actions = params["action_net"][-1][0].shape[1]
    # NOTE: head-weight fusion/permutation is cheap glue here; precompute it once outside
    # the step function in a real training loop.
    a_layers, v_layers, fused_v, out_cols = prepare_head_layers(
        params, spatial, n_actions, dueling)
    q = pallas_head(feats, a_layers, v_layers, n_actions=n_actions,
                    fused_v=fused_v, out_cols=out_cols)
    return q[0] if single else q


# ----------------------------------------------------------------------------
# Pure-JAX reference (lax.conv, NCHW, f32) for a correctness check
# ----------------------------------------------------------------------------
def policy_reference(params, x, dueling):
    def conv_ref(h, w, b, stride):
        y = lax.conv_general_dilated(h, w, window_strides=(stride, stride), padding="VALID",
                                     dimension_numbers=("NCHW", "OIHW", "NCHW"))
        return jax.nn.relu(y + b[None, :, None, None])

    h = conv_ref(x, *params["conv1"], 4)
    h = conv_ref(h, *params["conv2"], 2)
    h = conv_ref(h, *params["conv3"], 1)
    feats = h.reshape(h.shape[0], -1)

    def mlp_ref(lp, z):
        for i, (w, b) in enumerate(lp):
            z = z @ w + b
            if i < len(lp) - 1:
                z = jax.nn.relu(z)
        return z

    a = mlp_ref(params["action_net"], feats)
    if dueling:
        v = mlp_ref(params["value_net"], feats)
        return v + a - a.mean(axis=-1, keepdims=True)
    return a


if __name__ == "__main__":
    key = jax.random.PRNGKey(0)
    kp, kx = jax.random.split(key)

    observation_shape = [4, 84, 84]      # canonical DQN Atari observation (C, H, W)
    n_actions = 6
    dueling = True
    hidden_layers = [64, 64]
    batch = 2

    params = init_params(kp, observation_shape, n_actions, hidden_layers, dueling)
    x = jax.random.normal(kx, (batch, *observation_shape), jnp.float32)

    fwd = jax.jit(functools.partial(policy_forward, dueling=dueling))
    out = jax.block_until_ready(fwd(params, x))

    ref = policy_reference(params, x, dueling)
    assert out.shape == (batch, n_actions)
    # bf16 streamed operands (f32 accumulation): tolerance sized for ~1% compounded error.
    tol = 5e-2 if MATMUL_INPUT_DTYPE == jnp.bfloat16 else 1e-3
    assert jnp.allclose(out, ref, atol=tol, rtol=tol), "mismatch vs reference"

    print("KERNEL_OK")
</pallas_src>

<mosaic_0001>
module attributes {stable_mosaic.version = 11 : i64} {
  func.func @_conv_kernel(%arg0: i32, %arg1: memref<1x21x25x64xbf16, #tpu.memory_space<vmem>>, %arg2: memref<256x32xbf16, #tpu.memory_space<vmem>>, %arg3: memref<1x32xf32, #tpu.memory_space<vmem>>, %arg4: memref<1x20x20x32xbf16, #tpu.memory_space<vmem>>) attributes {dimension_semantics = [#tpu.dimension_semantics<parallel>], iteration_bounds = array<i64: 2>, scalar_prefetch = 0 : i64, scratch_operands = 0 : i64, tpu.core_type = #tpu.core_type<tc>, window_params = [{transform_indices = @transform_0, window_bounds = array<i64: 1, 21, 25, 64>}, {pipeline_mode = #tpu.pipeline_mode<synchronous>, transform_indices = @transform_1, window_bounds = array<i64: 256, 32>}, {pipeline_mode = #tpu.pipeline_mode<synchronous>, transform_indices = @transform_2, window_bounds = array<i64: 1, 32>}, {transform_indices = @transform_3, window_bounds = array<i64: 1, 20, 20, 32>}]} {
    %cst = arith.constant 0.000000e+00 : f32
    %0 = vector.broadcast %cst : f32 to vector<480x32xf32>
    %c0 = arith.constant 0 : index
    %c0_0 = arith.constant 0 : index
    %c0_1 = arith.constant 0 : index
    %c0_2 = arith.constant 0 : index
    %1 = vector.load %arg1[%c0, %c0_0, %c0_1, %c0_2] : memref<1x21x25x64xbf16, #tpu.memory_space<vmem>>, vector<1x20x24x64xbf16>
    %2 = arith.extf %1 : vector<1x20x24x64xbf16> to vector<1x20x24x64xf32>
    %3 = vector.shape_cast %2 : vector<1x20x24x64xf32> to vector<480x64xf32>
    %c0_3 = arith.constant 0 : index
    %c0_4 = arith.constant 0 : index
    %4 = vector.load %arg2[%c0_3, %c0_4] : memref<256x32xbf16, #tpu.memory_space<vmem>>, vector<64x32xbf16>
    %5 = arith.truncf %3 : vector<480x64xf32> to vector<480x64xbf16>
    %cst_5 = arith.constant dense<0.000000e+00> : vector<480x32xf32>
    %6 = tpu.matmul %5, %4, %cst_5 {dimension_numbers = #tpu.dot_dimension_numbers<[1], [0], [0], [1], [0, 0, 1, 1], [], []>} : vector<480x64xbf16>, vector<64x32xbf16>, vector<480x32xf32> -> vector<480x32xf32>
    %7 = arith.addf %0, %6 : vector<480x32xf32>
    %c0_6 = arith.constant 0 : index
    %c0_7 = arith.constant 0 : index
    %c1 = arith.constant 1 : index
    %c0_8 = arith.constant 0 : index
    %8 = vector.load %arg1[%c0_6, %c0_7, %c1, %c0_8] : memref<1x21x25x64xbf16, #tpu.memory_space<vmem>>, vector<1x20x24x64xbf16>
    %9 = arith.extf %8 : vector<1x20x24x64xbf16> to vector<1x20x24x64xf32>
    %10 = vector.shape_cast %9 : vector<1x20x24x64xf32> to vector<480x64xf32>
    %c64 = arith.constant 64 : index
    %c0_9 = arith.constant 0 : index
    %11 = vector.load %arg2[%c64, %c0_9] : memref<256x32xbf16, #tpu.memory_space<vmem>>, vector<64x32xbf16>
    %12 = arith.truncf %10 : vector<480x64xf32> to vector<480x64xbf16>
    %cst_10 = arith.constant dense<0.000000e+00> : vector<480x32xf32>
    %13 = tpu.matmul %12, %11, %cst_10 {dimension_numbers = #tpu.dot_dimension_numbers<[1], [0], [0], [1], [0, 0, 1, 1], [], []>} : vector<480x64xbf16>, vector<64x32xbf16>, vector<480x32xf32> -> vector<480x32xf32>
    %14 = arith.addf %7, %13 : vector<480x32xf32>
    %c0_11 = arith.constant 0 : index
    %c1_12 = arith.constant 1 : index
    %c0_13 = arith.constant 0 : index
    %c0_14 = arith.constant 0 : index
    %15 = vector.load %arg1[%c0_11, %c1_12, %c0_13, %c0_14] : memref<1x21x25x64xbf16, #tpu.memory_space<vmem>>, vector<1x20x24x64xbf16>
    %16 = arith.extf %15 : vector<1x20x24x64xbf16> to vector<1x20x24x64xf32>
    %17 = vector.shape_cast %16 : vector<1x20x24x64xf32> to vector<480x64xf32>
    %c128 = arith.constant 128 : index
    %c0_15 = arith.constant 0 : index
    %18 = vector.load %arg2[%c128, %c0_15] : memref<256x32xbf16, #tpu.memory_space<vmem>>, vector<64x32xbf16>
    %19 = arith.truncf %17 : vector<480x64xf32> to vector<480x64xbf16>
    %cst_16 = arith.constant dense<0.000000e+00> : vector<480x32xf32>
    %20 = tpu.matmul %19, %18, %cst_16 {dimension_numbers = #tpu.dot_dimension_numbers<[1], [0], [0], [1], [0, 0, 1, 1], [], []>} : vector<480x64xbf16>, vector<64x32xbf16>, vector<480x32xf32> -> vector<480x32xf32>
    %21 = arith.addf %14, %20 : vector<480x32xf32>
    %c0_17 = arith.constant 0 : index
    %c1_18 = arith.constant 1 : index
    %c1_19 = arith.constant 1 : index
    %c0_20 = arith.constant 0 : index
    %22 = vector.load %arg1[%c0_17, %c1_18, %c1_19, %c0_20] : memref<1x21x25x64xbf16, #tpu.memory_space<vmem>>, vector<1x20x24x64xbf16>
    %23 = arith.extf %22 : vector<1x20x24x64xbf16> to vector<1x20x24x64xf32>
    %24 = vector.shape_cast %23 : vector<1x20x24x64xf32> to vector<480x64xf32>
    %c192 = arith.constant 192 : index
    %c0_21 = arith.constant 0 : index
    %25 = vector.load %arg2[%c192, %c0_21] : memref<256x32xbf16, #tpu.memory_space<vmem>>, vector<64x32xbf16>
    %26 = arith.truncf %24 : vector<480x64xf32> to vector<480x64xbf16>
    %cst_22 = arith.constant dense<0.000000e+00> : vector<480x32xf32>
    %27 = tpu.matmul %26, %25, %cst_22 {dimension_numbers = #tpu.dot_dimension_numbers<[1], [0], [0], [1], [0, 0, 1, 1], [], []>} : vector<480x64xbf16>, vector<64x32xbf16>, vector<480x32xf32> -> vector<480x32xf32>
    %28 = arith.addf %21, %27 : vector<480x32xf32>
    %c0_23 = arith.constant 0 : index
    %c0_24 = arith.constant 0 : index
    %29 = vector.load %arg3[%c0_23, %c0_24] : memref<1x32xf32, #tpu.memory_space<vmem>>, vector<1x32xf32>
    %30 = vector.broadcast %29 : vector<1x32xf32> to vector<480x32xf32>
    %31 = arith.addf %28, %30 : vector<480x32xf32>
    %cst_25 = arith.constant 0.000000e+00 : f32
    %32 = vector.broadcast %cst_25 : f32 to vector<480x32xf32>
    %33 = arith.maximumf %31, %32 : vector<480x32xf32>
    %34 = vector.shape_cast %33 : vector<480x32xf32> to vector<1x20x24x32xf32>
    %35 = vector.extract_strided_slice %34 {offsets = [0, 0, 0, 0], sizes = [1, 20, 20, 32], strides = [1, 1, 1, 1]} : vector<1x20x24x32xf32> to vector<1x20x20x32xf32>
    %36 = arith.truncf %35 : vector<1x20x20x32xf32> to vector<1x20x20x32xbf16>
    %c0_26 = arith.constant 0 : index
    %c0_27 = arith.constant 0 : index
    %c0_28 = arith.constant 0 : index
    %c0_29 = arith.constant 0 : index
    %37 = vector.load %arg4[%c0_26, %c0_27, %c0_28, %c0_29] : memref<1x20x20x32xbf16, #tpu.memory_space<vmem>>, vector<1x20x20x32xbf16>
    tpu.vector_store %arg4[%c0_26, %c0_27, %c0_28, %c0_29], %36 {strides = array<i32>} : memref<1x20x20x32xbf16, #tpu.memory_space<vmem>>, vector<1x20x20x32xbf16>,
    return
  }
  func.func @transform_0(%arg0: i32) -> (i32, i32, i32, i32) {
    %c0_i32 = arith.constant 0 : i32
    %c0_i32_0 = arith.constant 0 : i32
    %c0_i32_1 = arith.constant 0 : i32
    %c0_i32_2 = arith.constant 0 : i32
    return %arg0, %c0_i32, %c0_i32_0, %c0_i32_1 : i32, i32, i32, i32
  }
  func.func @transform_1(%arg0: i32) -> (i32, i32) {
    %c0_i32 = arith.constant 0 : i32
    %c0_i32_0 = arith.constant 0 : i32
    %c0_i32_1 = arith.constant 0 : i32
    return %c0_i32, %c0_i32_0 : i32, i32
  }
  func.func @transform_2(%arg0: i32) -> (i32, i32) {
    %c0_i32 = arith.constant 0 : i32
    %c0_i32_0 = arith.constant 0 : i32
    %c0_i32_1 = arith.constant 0 : i32
    return %c0_i32, %c0_i32_0 : i32, i32
  }
  func.func @transform_3(%arg0: i32) -> (i32, i32, i32, i32) {
    %c0_i32 = arith.constant 0 : i32
    %c0_i32_0 = arith.constant 0 : i32
    %c0_i32_1 = arith.constant 0 : i32
    %c0_i32_2 = arith.constant 0 : i32
    return %arg0, %c0_i32, %c0_i32_0, %c0_i32_1 : i32, i32, i32, i32
  }
}

module attributes {stable_mosaic.version = 11 : i64} {
  func.func @_conv_kernel(%arg0: i32, %arg1: memref<1x10x17x128xbf16, #tpu.memory_space<vmem>>, %arg2: memref<512x64xbf16, #tpu.memory_space<vmem>>, %arg3: memref<1x64xf32, #tpu.memory_space<vmem>>, %arg4: memref<1x9x9x64xbf16, #tpu.memory_space<vmem>>) attributes {dimension_semantics = [#tpu.dimension_semantics<parallel>], iteration_bounds = array<i64: 2>, scalar_prefetch = 0 : i64, scratch_operands = 0 : i64, tpu.core_type = #tpu.core_type<tc>, window_params = [{transform_indices = @transform_0, window_bounds = array<i64: 1, 10, 17, 128>}, {pipeline_mode = #tpu.pipeline_mode<synchronous>, transform_indices = @transform_1, window_bounds = array<i64: 512, 64>}, {pipeline_mode = #tpu.pipeline_mode<synchronous>, transform_indices = @transform_2, window_bounds = array<i64: 1, 64>}, {transform_indices = @transform_3, window_bounds = array<i64: 1, 9, 9, 64>}]} {
    %cst = arith.constant 0.000000e+00 : f32
    %0 = vector.broadcast %cst : f32 to vector<144x64xf32>
    %c0 = arith.constant 0 : index
    %c0_0 = arith.constant 0 : index
    %c0_1 = arith.constant 0 : index
    %c0_2 = arith.constant 0 : index
    %1 = vector.load %arg1[%c0, %c0_0, %c0_1, %c0_2] : memref<1x10x17x128xbf16, #tpu.memory_space<vmem>>, vector<1x9x16x128xbf16>
    %2 = arith.extf %1 : vector<1x9x16x128xbf16> to vector<1x9x16x128xf32>
    %3 = vector.shape_cast %2 : vector<1x9x16x128xf32> to vector<144x128xf32>
    %c0_3 = arith.constant 0 : index
    %c0_4 = arith.constant 0 : index
    %4 = vector.load %arg2[%c0_3, %c0_4] : memref<512x64xbf16, #tpu.memory_space<vmem>>, vector<128x64xbf16>
    %5 = arith.truncf %3 : vector<144x128xf32> to vector<144x128xbf16>
    %cst_5 = arith.constant dense<0.000000e+00> : vector<144x64xf32>
    %6 = tpu.matmul %5, %4, %cst_5 {dimension_numbers = #tpu.dot_dimension_numbers<[1], [0], [0], [1], [0, 0, 1, 1], [], []>} : vector<144x128xbf16>, vector<128x64xbf16>, vector<144x64xf32> -> vector<144x64xf32>
    %7 = arith.addf %0, %6 : vector<144x64xf32>
    %c0_6 = arith.constant 0 : index
    %c0_7 = arith.constant 0 : index
    %c1 = arith.constant 1 : index
    %c0_8 = arith.constant 0 : index
    %8 = vector.load %arg1[%c0_6, %c0_7, %c1, %c0_8] : memref<1x10x17x128xbf16, #tpu.memory_space<vmem>>, vector<1x9x16x128xbf16>
    %9 = arith.extf %8 : vector<1x9x16x128xbf16> to vector<1x9x16x128xf32>
    %10 = vector.shape_cast %9 : vector<1x9x16x128xf32> to vector<144x128xf32>
    %c128 = arith.constant 128 : index
    %c0_9 = arith.constant 0 : index
    %11 = vector.load %arg2[%c128, %c0_9] : memref<512x64xbf16, #tpu.memory_space<vmem>>, vector<128x64xbf16>
    %12 = arith.truncf %10 : vector<144x128xf32> to vector<144x128xbf16>
    %cst_10 = arith.constant dense<0.000000e+00> : vector<144x64xf32>
    %13 = tpu.matmul %12, %11, %cst_10 {dimension_numbers = #tpu.dot_dimension_numbers<[1], [0], [0], [1], [0, 0, 1, 1], [], []>} : vector<144x128xbf16>, vector<128x64xbf16>, vector<144x64xf32> -> vector<144x64xf32>
    %14 = arith.addf %7, %13 : vector<144x64xf32>
    %c0_11 = arith.constant 0 : index
    %c1_12 = arith.constant 1 : index
    %c0_13 = arith.constant 0 : index
    %c0_14 = arith.constant 0 : index
    %15 = vector.load %arg1[%c0_11, %c1_12, %c0_13, %c0_14] : memref<1x10x17x128xbf16, #tpu.memory_space<vmem>>, vector<1x9x16x128xbf16>
    %16 = arith.extf %15 : vector<1x9x16x128xbf16> to vector<1x9x16x128xf32>
    %17 = vector.shape_cast %16 : vector<1x9x16x128xf32> to vector<144x128xf32>
    %c256 = arith.constant 256 : index
    %c0_15 = arith.constant 0 : index
    %18 = vector.load %arg2[%c256, %c0_15] : memref<512x64xbf16, #tpu.memory_space<vmem>>, vector<128x64xbf16>
    %19 = arith.truncf %17 : vector<144x128xf32> to vector<144x128xbf16>
    %cst_16 = arith.constant dense<0.000000e+00> : vector<144x64xf32>
    %20 = tpu.matmul %19, %18, %cst_16 {dimension_numbers = #tpu.dot_dimension_numbers<[1], [0], [0], [1], [0, 0, 1, 1], [], []>} : vector<144x128xbf16>, vector<128x64xbf16>, vector<144x64xf32> -> vector<144x64xf32>
    %21 = arith.addf %14, %20 : vector<144x64xf32>
    %c0_17 = arith.constant 0 : index
    %c1_18 = arith.constant 1 : index
    %c1_19 = arith.constant 1 : index
    %c0_20 = arith.constant 0 : index
    %22 = vector.load %arg1[%c0_17, %c1_18, %c1_19, %c0_20] : memref<1x10x17x128xbf16, #tpu.memory_space<vmem>>, vector<1x9x16x128xbf16>
    %23 = arith.extf %22 : vector<1x9x16x128xbf16> to vector<1x9x16x128xf32>
    %24 = vector.shape_cast %23 : vector<1x9x16x128xf32> to vector<144x128xf32>
    %c384 = arith.constant 384 : index
    %c0_21 = arith.constant 0 : index
    %25 = vector.load %arg2[%c384, %c0_21] : memref<512x64xbf16, #tpu.memory_space<vmem>>, vector<128x64xbf16>
    %26 = arith.truncf %24 : vector<144x128xf32> to vector<144x128xbf16>
    %cst_22 = arith.constant dense<0.000000e+00> : vector<144x64xf32>
    %27 = tpu.matmul %26, %25, %cst_22 {dimension_numbers = #tpu.dot_dimension_numbers<[1], [0], [0], [1], [0, 0, 1, 1], [], []>} : vector<144x128xbf16>, vector<128x64xbf16>, vector<144x64xf32> -> vector<144x64xf32>
    %28 = arith.addf %21, %27 : vector<144x64xf32>
    %c0_23 = arith.constant 0 : index
    %c0_24 = arith.constant 0 : index
    %29 = vector.load %arg3[%c0_23, %c0_24] : memref<1x64xf32, #tpu.memory_space<vmem>>, vector<1x64xf32>
    %30 = vector.broadcast %29 : vector<1x64xf32> to vector<144x64xf32>
    %31 = arith.addf %28, %30 : vector<144x64xf32>
    %cst_25 = arith.constant 0.000000e+00 : f32
    %32 = vector.broadcast %cst_25 : f32 to vector<144x64xf32>
    %33 = arith.maximumf %31, %32 : vector<144x64xf32>
    %34 = vector.shape_cast %33 : vector<144x64xf32> to vector<1x9x16x64xf32>
    %35 = vector.extract_strided_slice %34 {offsets = [0, 0, 0, 0], sizes = [1, 9, 9, 64], strides = [1, 1, 1, 1]} : vector<1x9x16x64xf32> to vector<1x9x9x64xf32>
    %36 = arith.truncf %35 : vector<1x9x9x64xf32> to vector<1x9x9x64xbf16>
    %c0_26 = arith.constant 0 : index
    %c0_27 = arith.constant 0 : index
    %c0_28 = arith.constant 0 : index
    %c0_29 = arith.constant 0 : index
    %37 = vector.load %arg4[%c0_26, %c0_27, %c0_28, %c0_29] : memref<1x9x9x64xbf16, #tpu.memory_space<vmem>>, vector<1x9x9x64xbf16>
    tpu.vector_store %arg4[%c0_26, %c0_27, %c0_28, %c0_29], %36 {strides = array<i32>} : memref<1x9x9x64xbf16, #tpu.memory_space<vmem>>, vector<1x9x9x64xbf16>,
    return
  }
  func.func @transform_0(%arg0: i32) -> (i32, i32, i32, i32) {
    %c0_i32 = arith.constant 0 : i32
    %c0_i32_0 = arith.constant 0 : i32
    %c0_i32_1 = arith.constant 0 : i32
    %c0_i32_2 = arith.constant 0 : i32
    return %arg0, %c0_i32, %c0_i32_0, %c0_i32_1 : i32, i32, i32, i32
  }
  func.func @transform_1(%arg0: i32) -> (i32, i32) {
    %c0_i32 = arith.constant 0 : i32
    %c0_i32_0 = arith.constant 0 : i32
    %c0_i32_1 = arith.constant 0 : i32
    return %c0_i32, %c0_i32_0 : i32, i32
  }
  func.func @transform_2(%arg0: i32) -> (i32, i32) {
    %c0_i32 = arith.constant 0 : i32
    %c0_i32_0 = arith.constant 0 : i32
    %c0_i32_1 = arith.constant 0 : i32
    return %c0_i32, %c0_i32_0 : i32, i32
  }
  func.func @transform_3(%arg0: i32) -> (i32, i32, i32, i32) {
    %c0_i32 = arith.constant 0 : i32
    %c0_i32_0 = arith.constant 0 : i32
    %c0_i32_1 = arith.constant 0 : i32
    %c0_i32_2 = arith.constant 0 : i32
    return %arg0, %c0_i32, %c0_i32_0, %c0_i32_1 : i32, i32, i32, i32
  }
}

module attributes {stable_mosaic.version = 11 : i64} {
  func.func @_conv_kernel(%arg0: i32, %arg1: memref<1x9x10x64xbf16, #tpu.memory_space<vmem>>, %arg2: memref<576x64xbf16, #tpu.memory_space<vmem>>, %arg3: memref<1x64xf32, #tpu.memory_space<vmem>>, %arg4: memref<1x7x7x64xbf16, #tpu.memory_space<vmem>>) attributes {dimension_semantics = [#tpu.dimension_semantics<parallel>], iteration_bounds = array<i64: 2>, scalar_prefetch = 0 : i64, scratch_operands = 0 : i64, tpu.core_type = #tpu.core_type<tc>, window_params = [{transform_indices = @transform_0, window_bounds = array<i64: 1, 9, 10, 64>}, {pipeline_mode = #tpu.pipeline_mode<synchronous>, transform_indices = @transform_1, window_bounds = array<i64: 576, 64>}, {pipeline_mode = #tpu.pipeline_mode<synchronous>, transform_indices = @transform_2, window_bounds = array<i64: 1, 64>}, {transform_indices = @transform_3, window_bounds = array<i64: 1, 7, 7, 64>}]} {
    %cst = arith.constant 0.000000e+00 : f32
    %0 = vector.broadcast %cst : f32 to vector<56x64xf32>
    %c0 = arith.constant 0 : index
    %c0_0 = arith.constant 0 : index
    %c0_1 = arith.constant 0 : index
    %c0_2 = arith.constant 0 : index
    %1 = vector.load %arg1[%c0, %c0_0, %c0_1, %c0_2] : memref<1x9x10x64xbf16, #tpu.memory_space<vmem>>, vector<1x7x8x64xbf16>
    %2 = arith.extf %1 : vector<1x7x8x64xbf16> to vector<1x7x8x64xf32>
    %3 = vector.shape_cast %2 : vector<1x7x8x64xf32> to vector<56x64xf32>
    %c0_3 = arith.constant 0 : index
    %c0_4 = arith.constant 0 : index
    %4 = vector.load %arg2[%c0_3, %c0_4] : memref<576x64xbf16, #tpu.memory_space<vmem>>, vector<64x64xbf16>
    %5 = arith.truncf %3 : vector<56x64xf32> to vector<56x64xbf16>
    %cst_5 = arith.constant dense<0.000000e+00> : vector<56x64xf32>
    %6 = tpu.matmul %5, %4, %cst_5 {dimension_numbers = #tpu.dot_dimension_numbers<[1], [0], [0], [1], [0, 0, 1, 1], [], []>} : vector<56x64xbf16>, vector<64x64xbf16>, vector<56x64xf32> -> vector<56x64xf32>
    %7 = arith.addf %0, %6 : vector<56x64xf32>
    %c0_6 = arith.constant 0 : index
    %c0_7 = arith.constant 0 : index
    %c1 = arith.constant 1 : index
    %c0_8 = arith.constant 0 : index
    %8 = vector.load %arg1[%c0_6, %c0_7, %c1, %c0_8] : memref<1x9x10x64xbf16, #tpu.memory_space<vmem>>, vector<1x7x8x64xbf16>
    %9 = arith.extf %8 : vector<1x7x8x64xbf16> to vector<1x7x8x64xf32>
    %10 = vector.shape_cast %9 : vector<1x7x8x64xf32> to vector<56x64xf32>
    %c64 = arith.constant 64 : index
    %c0_9 = arith.constant 0 : index
    %11 = vector.load %arg2[%c64, %c0_9] : memref<576x64xbf16, #tpu.memory_space<vmem>>, vector<64x64xbf16>
    %12 = arith.truncf %10 : vector<56x64xf32> to vector<56x64xbf16>
    %cst_10 = arith.constant dense<0.000000e+00> : vector<56x64xf32>
    %13 = tpu.matmul %12, %11, %cst_10 {dimension_numbers = #tpu.dot_dimension_numbers<[1], [0], [0], [1], [0, 0, 1, 1], [], []>} : vector<56x64xbf16>, vector<64x64xbf16>, vector<56x64xf32> -> vector<56x64xf32>
    %14 = arith.addf %7, %13 : vector<56x64xf32>
    %c0_11 = arith.constant 0 : index
    %c0_12 = arith.constant 0 : index
    %c2 = arith.constant 2 : index
    %c0_13 = arith.constant 0 : index
    %15 = vector.load %arg1[%c0_11, %c0_12, %c2, %c0_13] : memref<1x9x10x64xbf16, #tpu.memory_space<vmem>>, vector<1x7x8x64xbf16>
    %16 = arith.extf %15 : vector<1x7x8x64xbf16> to vector<1x7x8x64xf32>
    %17 = vector.shape_cast %16 : vector<1x7x8x64xf32> to vector<56x64xf32>
    %c128 = arith.constant 128 : index
    %c0_14 = arith.constant 0 : index
    %18 = vector.load %arg2[%c128, %c0_14] : memref<576x64xbf16, #tpu.memory_space<vmem>>, vector<64x64xbf16>
    %19 = arith.truncf %17 : vector<56x64xf32> to vector<56x64xbf16>
    %cst_15 = arith.constant dense<0.000000e+00> : vector<56x64xf32>
    %20 = tpu.matmul %19, %18, %cst_15 {dimension_numbers = #tpu.dot_dimension_numbers<[1], [0], [0], [1], [0, 0, 1, 1], [], []>} : vector<56x64xbf16>, vector<64x64xbf16>, vector<56x64xf32> -> vector<56x64xf32>
    %21 = arith.addf %14, %20 : vector<56x64xf32>
    %c0_16 = arith.constant 0 : index
    %c1_17 = arith.constant 1 : index
    %c0_18 = arith.constant 0 : index
    %c0_19 = arith.constant 0 : index
    %22 = vector.load %arg1[%c0_16, %c1_17, %c0_18, %c0_19] : memref<1x9x10x64xbf16, #tpu.memory_space<vmem>>, vector<1x7x8x64xbf16>
    %23 = arith.extf %22 : vector<1x7x8x64xbf16> to vector<1x7x8x64xf32>
    %24 = vector.shape_cast %23 : vector<1x7x8x64xf32> to vector<56x64xf32>
    %c192 = arith.constant 192 : index
    %c0_20 = arith.constant 0 : index
    %25 = vector.load %arg2[%c192, %c0_20] : memref<576x64xbf16, #tpu.memory_space<vmem>>, vector<64x64xbf16>
    %26 = arith.truncf %24 : vector<56x64xf32> to vector<56x64xbf16>
    %cst_21 = arith.constant dense<0.000000e+00> : vector<56x64xf32>
    %27 = tpu.matmul %26, %25, %cst_21 {dimension_numbers = #tpu.dot_dimension_numbers<[1], [0], [0], [1], [0, 0, 1, 1], [], []>} : vector<56x64xbf16>, vector<64x64xbf16>, vector<56x64xf32> -> vector<56x64xf32>
    %28 = arith.addf %21, %27 : vector<56x64xf32>
    %c0_22 = arith.constant 0 : index
    %c1_23 = arith.constant 1 : index
    %c1_24 = arith.constant 1 : index
    %c0_25 = arith.constant 0 : index
    %29 = vector.load %arg1[%c0_22, %c1_23, %c1_24, %c0_25] : memref<1x9x10x64xbf16, #tpu.memory_space<vmem>>, vector<1x7x8x64xbf16>
    %30 = arith.extf %29 : vector<1x7x8x64xbf16> to vector<1x7x8x64xf32>
    %31 = vector.shape_cast %30 : vector<1x7x8x64xf32> to vector<56x64xf32>
    %c256 = arith.constant 256 : index
    %c0_26 = arith.constant 0 : index
    %32 = vector.load %arg2[%c256, %c0_26] : memref<576x64xbf16, #tpu.memory_space<vmem>>, vector<64x64xbf16>
    %33 = arith.truncf %31 : vector<56x64xf32> to vector<56x64xbf16>
    %cst_27 = arith.constant dense<0.000000e+00> : vector<56x64xf32>
    %34 = tpu.matmul %33, %32, %cst_27 {dimension_numbers = #tpu.dot_dimension_numbers<[1], [0], [0], [1], [0, 0, 1, 1], [], []>} : vector<56x64xbf16>, vector<64x64xbf16>, vector<56x64xf32> -> vector<56x64xf32>
    %35 = arith.addf %28, %34 : vector<56x64xf32>
    %c0_28 = arith.constant 0 : index
    %c1_29 = arith.constant 1 : index
    %c2_30 = arith.constant 2 : index
    %c0_31 = arith.constant 0 : index
    %36 = vector.load %arg1[%c0_28, %c1_29, %c2_30, %c0_31] : memref<1x9x10x64xbf16, #tpu.memory_space<vmem>>, vector<1x7x8x64xbf16>
    %37 = arith.extf %36 : vector<1x7x8x64xbf16> to vector<1x7x8x64xf32>
    %38 = vector.shape_cast %37 : vector<1x7x8x64xf32> to vector<56x64xf32>
    %c320 = arith.constant 320 : index
    %c0_32 = arith.constant 0 : index
    %39 = vector.load %arg2[%c320, %c0_32] : memref<576x64xbf16, #tpu.memory_space<vmem>>, vector<64x64xbf16>
    %40 = arith.truncf %38 : vector<56x64xf32> to vector<56x64xbf16>
    %cst_33 = arith.constant dense<0.000000e+00> : vector<56x64xf32>
    %41 = tpu.matmul %40, %39, %cst_33 {dimension_numbers = #tpu.dot_dimension_numbers<[1], [0], [0], [1], [0, 0, 1, 1], [], []>} : vector<56x64xbf16>, vector<64x64xbf16>, vector<56x64xf32> -> vector<56x64xf32>
    %42 = arith.addf %35, %41 : vector<56x64xf32>
    %c0_34 = arith.constant 0 : index
    %c2_35 = arith.constant 2 : index
    %c0_36 = arith.constant 0 : index
    %c0_37 = arith.constant 0 : index
    %43 = vector.load %arg1[%c0_34, %c2_35, %c0_36, %c0_37] : memref<1x9x10x64xbf16, #tpu.memory_space<vmem>>, vector<1x7x8x64xbf16>
    %44 = arith.extf %43 : vector<1x7x8x64xbf16> to vector<1x7x8x64xf32>
    %45 = vector.shape_cast %44 : vector<1x7x8x64xf32> to vector<56x64xf32>
    %c384 = arith.constant 384 : index
    %c0_38 = arith.constant 0 : index
    %46 = vector.load %arg2[%c384, %c0_38] : memref<576x64xbf16, #tpu.memory_space<vmem>>, vector<64x64xbf16>
    %47 = arith.truncf %45 : vector<56x64xf32> to vector<56x64xbf16>
    %cst_39 = arith.constant dense<0.000000e+00> : vector<56x64xf32>
    %48 = tpu.matmul %47, %46, %cst_39 {dimension_numbers = #tpu.dot_dimension_numbers<[1], [0], [0], [1], [0, 0, 1, 1], [], []>} : vector<56x64xbf16>, vector<64x64xbf16>, vector<56x64xf32> -> vector<56x64xf32>
    %49 = arith.addf %42, %48 : vector<56x64xf32>
    %c0_40 = arith.constant 0 : index
    %c2_41 = arith.constant 2 : index
    %c1_42 = arith.constant 1 : index
    %c0_43 = arith.constant 0 : index
    %50 = vector.load %arg1[%c0_40, %c2_41, %c1_42, %c0_43] : memref<1x9x10x64xbf16, #tpu.memory_space<vmem>>, vector<1x7x8x64xbf16>
    %51 = arith.extf %50 : vector<1x7x8x64xbf16> to vector<1x7x8x64xf32>
    %52 = vector.shape_cast %51 : vector<1x7x8x64xf32> to vector<56x64xf32>
    %c448 = arith.constant 448 : index
    %c0_44 = arith.constant 0 : index
    %53 = vector.load %arg2[%c448, %c0_44] : memref<576x64xbf16, #tpu.memory_space<vmem>>, vector<64x64xbf16>
    %54 = arith.truncf %52 : vector<56x64xf32> to vector<56x64xbf16>
    %cst_45 = arith.constant dense<0.000000e+00> : vector<56x64xf32>
    %55 = tpu.matmul %54, %53, %cst_45 {dimension_numbers = #tpu.dot_dimension_numbers<[1], [0], [0], [1], [0, 0, 1, 1], [], []>} : vector<56x64xbf16>, vector<64x64xbf16>, vector<56x64xf32> -> vector<56x64xf32>
    %56 = arith.addf %49, %55 : vector<56x64xf32>
    %c0_46 = arith.constant 0 : index
    %c2_47 = arith.constant 2 : index
    %c2_48 = arith.constant 2 : index
    %c0_49 = arith.constant 0 : index
    %57 = vector.load %arg1[%c0_46, %c2_47, %c2_48, %c0_49] : memref<1x9x10x64xbf16, #tpu.memory_space<vmem>>, vector<1x7x8x64xbf16>
    %58 = arith.extf %57 : vector<1x7x8x64xbf16> to vector<1x7x8x64xf32>
    %59 = vector.shape_cast %58 : vector<1x7x8x64xf32> to vector<56x64xf32>
    %c512 = arith.constant 512 : index
    %c0_50 = arith.constant 0 : index
    %60 = vector.load %arg2[%c512, %c0_50] : memref<576x64xbf16, #tpu.memory_space<vmem>>, vector<64x64xbf16>
    %61 = arith.truncf %59 : vector<56x64xf32> to vector<56x64xbf16>
    %cst_51 = arith.constant dense<0.000000e+00> : vector<56x64xf32>
    %62 = tpu.matmul %61, %60, %cst_51 {dimension_numbers = #tpu.dot_dimension_numbers<[1], [0], [0], [1], [0, 0, 1, 1], [], []>} : vector<56x64xbf16>, vector<64x64xbf16>, vector<56x64xf32> -> vector<56x64xf32>
    %63 = arith.addf %56, %62 : vector<56x64xf32>
    %c0_52 = arith.constant 0 : index
    %c0_53 = arith.constant 0 : index
    %64 = vector.load %arg3[%c0_52, %c0_53] : memref<1x64xf32, #tpu.memory_space<vmem>>, vector<1x64xf32>
    %65 = vector.broadcast %64 : vector<1x64xf32> to vector<56x64xf32>
    %66 = arith.addf %63, %65 : vector<56x64xf32>
    %cst_54 = arith.constant 0.000000e+00 : f32
    %67 = vector.broadcast %cst_54 : f32 to vector<56x64xf32>
    %68 = arith.maximumf %66, %67 : vector<56x64xf32>
    %69 = vector.shape_cast %68 : vector<56x64xf32> to vector<1x7x8x64xf32>
    %70 = vector.extract_strided_slice %69 {offsets = [0, 0, 0, 0], sizes = [1, 7, 7, 64], strides = [1, 1, 1, 1]} : vector<1x7x8x64xf32> to vector<1x7x7x64xf32>
    %71 = arith.truncf %70 : vector<1x7x7x64xf32> to vector<1x7x7x64xbf16>
    %c0_55 = arith.constant 0 : index
    %c0_56 = arith.constant 0 : index
    %c0_57 = arith.constant 0 : index
    %c0_58 = arith.constant 0 : index
    %72 = vector.load %arg4[%c0_55, %c0_56, %c0_57, %c0_58] : memref<1x7x7x64xbf16, #tpu.memory_space<vmem>>, vector<1x7x7x64xbf16>
    tpu.vector_store %arg4[%c0_55, %c0_56, %c0_57, %c0_58], %71 {strides = array<i32>} : memref<1x7x7x64xbf16, #tpu.memory_space<vmem>>, vector<1x7x7x64xbf16>,
    return
  }
  func.func @transform_0(%arg0: i32) -> (i32, i32, i32, i32) {
    %c0_i32 = arith.constant 0 : i32
    %c0_i32_0 = arith.constant 0 : i32
    %c0_i32_1 = arith.constant 0 : i32
    %c0_i32_2 = arith.constant 0 : i32
    return %arg0, %c0_i32, %c0_i32_0, %c0_i32_1 : i32, i32, i32, i32
  }
  func.func @transform_1(%arg0: i32) -> (i32, i32) {
    %c0_i32 = arith.constant 0 : i32
    %c0_i32_0 = arith.constant 0 : i32
    %c0_i32_1 = arith.constant 0 : i32
    return %c0_i32, %c0_i32_0 : i32, i32
  }
  func.func @transform_2(%arg0: i32) -> (i32, i32) {
    %c0_i32 = arith.constant 0 : i32
    %c0_i32_0 = arith.constant 0 : i32
    %c0_i32_1 = arith.constant 0 : i32
    return %c0_i32, %c0_i32_0 : i32, i32
  }
  func.func @transform_3(%arg0: i32) -> (i32, i32, i32, i32) {
    %c0_i32 = arith.constant 0 : i32
    %c0_i32_0 = arith.constant 0 : i32
    %c0_i32_1 = arith.constant 0 : i32
    %c0_i32_2 = arith.constant 0 : i32
    return %arg0, %c0_i32, %c0_i32_0, %c0_i32_1 : i32, i32, i32, i32
  }
}

module attributes {stable_mosaic.version = 11 : i64} {
  func.func @_head_kernel(%arg0: i32, %arg1: memref<2x3136xbf16, #tpu.memory_space<vmem>>, %arg2: memref<3136x128xbf16, #tpu.memory_space<vmem>>, %arg3: memref<1x128xf32, #tpu.memory_space<vmem>>, %arg4: memref<128x128xbf16, #tpu.memory_space<vmem>>, %arg5: memref<1x128xf32, #tpu.memory_space<vmem>>, %arg6: memref<128x128xbf16, #tpu.memory_space<vmem>>, %arg7: memref<1x128xf32, #tpu.memory_space<vmem>>, %arg8: memref<2x128xf32, #tpu.memory_space<vmem>>) attributes {dimension_semantics = [#tpu.dimension_semantics<parallel>], iteration_bounds = array<i64: 1>, scalar_prefetch = 0 : i64, scratch_operands = 0 : i64, tpu.core_type = #tpu.core_type<tc>, window_params = [{transform_indices = @transform_0, window_bounds = array<i64: 2, 3136>}, {pipeline_mode = #tpu.pipeline_mode<synchronous>, transform_indices = @transform_1, window_bounds = array<i64: 3136, 128>}, {pipeline_mode = #tpu.pipeline_mode<synchronous>, transform_indices = @transform_2, window_bounds = array<i64: 1, 128>}, {pipeline_mode = #tpu.pipeline_mode<synchronous>, transform_indices = @transform_3, window_bounds = array<i64: 128, 128>}, {pipeline_mode = #tpu.pipeline_mode<synchronous>, transform_indices = @transform_4, window_bounds = array<i64: 1, 128>}, {pipeline_mode = #tpu.pipeline_mode<synchronous>, transform_indices = @transform_5, window_bounds = array<i64: 128, 128>}, {pipeline_mode = #tpu.pipeline_mode<synchronous>, transform_indices = @transform_6, window_bounds = array<i64: 1, 128>}, {transform_indices = @transform_7, window_bounds = array<i64: 2, 128>}]} {
    %c0 = arith.constant 0 : index
    %c0_0 = arith.constant 0 : index
    %0 = vector.load %arg1[%c0, %c0_0] : memref<2x3136xbf16, #tpu.memory_space<vmem>>, vector<2x3136xbf16>
    %c0_1 = arith.constant 0 : index
    %c0_2 = arith.constant 0 : index
    %1 = vector.load %arg2[%c0_1, %c0_2] : memref<3136x128xbf16, #tpu.memory_space<vmem>>, vector<3136x128xbf16>
    %c0_3 = arith.constant 0 : index
    %c0_4 = arith.constant 0 : index
    %2 = vector.load %arg3[%c0_3, %c0_4] : memref<1x128xf32, #tpu.memory_space<vmem>>, vector<1x128xf32>
    %cst = arith.constant dense<0.000000e+00> : vector<2x128xf32>
    %3 = tpu.matmul %0, %1, %cst {dimension_numbers = #tpu.dot_dimension_numbers<[1], [0], [0], [1], [0, 0, 1, 1], [], []>} : vector<2x3136xbf16>, vector<3136x128xbf16>, vector<2x128xf32> -> vector<2x128xf32>
    %4 = vector.broadcast %2 : vector<1x128xf32> to vector<2x128xf32>
    %5 = arith.addf %3, %4 : vector<2x128xf32>
    %cst_5 = arith.constant 0.000000e+00 : f32
    %6 = vector.broadcast %cst_5 : f32 to vector<2x128xf32>
    %7 = arith.maximumf %5, %6 : vector<2x128xf32>
    %c0_6 = arith.constant 0 : index
    %c0_7 = arith.constant 0 : index
    %8 = vector.load %arg4[%c0_6, %c0_7] : memref<128x128xbf16, #tpu.memory_space<vmem>>, vector<128x128xbf16>
    %c0_8 = arith.constant 0 : index
    %c0_9 = arith.constant 0 : index
    %9 = vector.load %arg5[%c0_8, %c0_9] : memref<1x128xf32, #tpu.memory_space<vmem>>, vector<1x128xf32>
    %10 = arith.truncf %7 : vector<2x128xf32> to vector<2x128xbf16>
    %cst_10 = arith.constant dense<0.000000e+00> : vector<2x128xf32>
    %11 = tpu.matmul %10, %8, %cst_10 {dimension_numbers = #tpu.dot_dimension_numbers<[1], [0], [0], [1], [0, 0, 1, 1], [], []>} : vector<2x128xbf16>, vector<128x128xbf16>, vector<2x128xf32> -> vector<2x128xf32>
    %12 = vector.broadcast %9 : vector<1x128xf32> to vector<2x128xf32>
    %13 = arith.addf %11, %12 : vector<2x128xf32>
    %cst_11 = arith.constant 0.000000e+00 : f32
    %14 = vector.broadcast %cst_11 : f32 to vector<2x128xf32>
    %15 = arith.maximumf %13, %14 : vector<2x128xf32>
    %c0_12 = arith.constant 0 : index
    %c0_13 = arith.constant 0 : index
    %16 = vector.load %arg6[%c0_12, %c0_13] : memref<128x128xbf16, #tpu.memory_space<vmem>>, vector<128x128xbf16>
    %c0_14 = arith.constant 0 : index
    %c0_15 = arith.constant 0 : index
    %17 = vector.load %arg7[%c0_14, %c0_15] : memref<1x128xf32, #tpu.memory_space<vmem>>, vector<1x128xf32>
    %18 = arith.truncf %15 : vector<2x128xf32> to vector<2x128xbf16>
    %cst_16 = arith.constant dense<0.000000e+00> : vector<2x128xf32>
    %19 = tpu.matmul %18, %16, %cst_16 {dimension_numbers = #tpu.dot_dimension_numbers<[1], [0], [0], [1], [0, 0, 1, 1], [], []>} : vector<2x128xbf16>, vector<128x128xbf16>, vector<2x128xf32> -> vector<2x128xf32>
    %20 = vector.broadcast %17 : vector<1x128xf32> to vector<2x128xf32>
    %21 = arith.addf %19, %20 : vector<2x128xf32>
    %22 = vector.extract_strided_slice %21 {offsets = [0, 0], sizes = [2, 6], strides = [1, 1]} : vector<2x128xf32> to vector<2x6xf32>
    %23 = vector.extract_strided_slice %21 {offsets = [0, 6], sizes = [2, 1], strides = [1, 1]} : vector<2x128xf32> to vector<2x1xf32>
    %24 = vector.broadcast %23 : vector<2x1xf32> to vector<2x128xf32>
    %25 = arith.addf %24, %21 : vector<2x128xf32>
    %cst_17 = arith.constant dense<0.000000e+00> : vector<2xf32>
    %26 = vector.multi_reduction <add>, %22, %cst_17 [1] : vector<2x6xf32> to vector<2xf32>
    %27 = vector.shape_cast %26 : vector<2xf32> to vector<2x1xf32>
    %cst_18 = arith.constant 6.000000e+00 : f32
    %28 = vector.broadcast %cst_18 : f32 to vector<2x1xf32>
    %29 = arith.divf %27, %28 : vector<2x1xf32>
    %30 = vector.broadcast %29 : vector<2x1xf32> to vector<2x128xf32>
    %31 = arith.subf %25, %30 : vector<2x128xf32>
    %c0_19 = arith.constant 0 : index
    %c0_20 = arith.constant 0 : index
    %32 = vector.load %arg8[%c0_19, %c0_20] : memref<2x128xf32, #tpu.memory_space<vmem>>, vector<2x128xf32>
    tpu.vector_store %arg8[%c0_19, %c0_20], %31 {strides = array<i32>} : memref<2x128xf32, #tpu.memory_space<vmem>>, vector<2x128xf32>,
    return
  }
  func.func @transform_0(%arg0: i32) -> (i32, i32) {
    %c0_i32 = arith.constant 0 : i32
    %c0_i32_0 = arith.constant 0 : i32
    return %arg0, %c0_i32 : i32, i32
  }
  func.func @transform_1(%arg0: i32) -> (i32, i32) {
    %c0_i32 = arith.constant 0 : i32
    %c0_i32_0 = arith.constant 0 : i32
    %c0_i32_1 = arith.constant 0 : i32
    return %c0_i32, %c0_i32_0 : i32, i32
  }
  func.func @transform_2(%arg0: i32) -> (i32, i32) {
    %c0_i32 = arith.constant 0 : i32
    %c0_i32_0 = arith.constant 0 : i32
    %c0_i32_1 = arith.constant 0 : i32
    return %c0_i32, %c0_i32_0 : i32, i32
  }
  func.func @transform_3(%arg0: i32) -> (i32, i32) {
    %c0_i32 = arith.constant 0 : i32
    %c0_i32_0 = arith.constant 0 : i32
    %c0_i32_1 = arith.constant 0 : i32
    return %c0_i32, %c0_i32_0 : i32, i32
  }
  func.func @transform_4(%arg0: i32) -> (i32, i32) {
    %c0_i32 = arith.constant 0 : i32
    %c0_i32_0 = arith.constant 0 : i32
    %c0_i32_1 = arith.constant 0 : i32
    return %c0_i32, %c0_i32_0 : i32, i32
  }
  func.func @transform_5(%arg0: i32) -> (i32, i32) {
    %c0_i32 = arith.constant 0 : i32
    %c0_i32_0 = arith.constant 0 : i32
    %c0_i32_1 = arith.constant 0 : i32
    return %c0_i32, %c0_i32_0 : i32, i32
  }
  func.func @transform_6(%arg0: i32) -> (i32, i32) {
    %c0_i32 = arith.constant 0 : i32
    %c0_i32_0 = arith.constant 0 : i32
    %c0_i32_1 = arith.constant 0 : i32
    return %c0_i32, %c0_i32_0 : i32, i32
  }
  func.func @transform_7(%arg0: i32) -> (i32, i32) {
    %c0_i32 = arith.constant 0 : i32
    %c0_i32_0 = arith.constant 0 : i32
    return %arg0, %c0_i32 : i32, i32
  }
}

</mosaic_0001>

<bundles_post_ra>
// kernel: policy_forward.4
= control target key start
LH: loop header
LB: loop body
LE: loop exit
PB: predicated region body
PF: predicated region fallthrough
CT: control target
= control target key end

     0   :  { %s4794_s12 = smov 0   ;;  %s5596_s0 = inlined_call_operand.vmem [shape: bf16[2,21,25,64], index: 0, kind: input, shape index: {}]   ;;  %s5597_s1 = inlined_call_operand.vmem [shape: bf16[256,32], index: 1, kind: input, shape index: {}]   ;;  %s5598_s2 = inlined_call_operand.vmem [shape: f32[1,32], index: 2, kind: input, shape index: {}]   ;;  %s5599_s3 = inlined_call_operand.vmem [shape: bf16[2,20,20,32], index: 3, kind: output, shape index: {}]  }
   0x1 LB: > { %s3499_s13 = sadd.s32 4294967295, %s4772_s12   ;;  %p3503_p0 = scmp.ge.s32.totalorder %s4772_s12, 1  ;;  %s4772_s12 = sphi %s4794_s12, %s13_s12  }
   0x2   : > { %p137_p1 = scmp.lt.s32.totalorder %s4772_s12, 3 }
   0x4   : > { %p138_p2 = pnand %p3503_p0, %p137_p1 }
   0x5   : > { %v4663_v0 = vld [vmem:[%s5597_s1 + $0x20] sm:$0xff] (!%p138_p2)   ;;  %p161_p3 = scmp.lt.s32.totalorder (!%p138_p2), %s3499_s13, 1  ;;  %v4665_v2 = vld [vmem:[%s5597_s1 + $0x28] sm:$0xff] (!%p138_p2)   ;;  %v4667_v4 = vld [vmem:[%s5597_s1 + $0x30] sm:$0xff] (!%p138_p2)   ;;  %vm713_vm0 = vcmask (!%p138_p2), 523264   ;;  %vm450_vm1 = vcmask (!%p138_p2), 1046528  }
   0x6   : > { %141 = sbr.rel (%p138_p2) target bundleno = 484 (0x1e4), region = 32  ;;  %v4664_v1 = vld [vmem:[%s5597_s1 + $0x40] sm:$0xff] (!%p138_p2)   ;;  %4201 = vmatprep.subr.bf16.mxu1 (!%p138_p2), %v4663_v0  ;;  %v4666_v3 = vld [vmem:[%s5597_s1 + $0x48] sm:$0xff] (!%p138_p2)   ;;  %v4668_v5 = vld [vmem:[%s5597_s1 + $0x50] sm:$0xff] (!%p138_p2)   ;;  %vm3385_vm2 = vcmask (!%p138_p2), 254976   ;;  %vm3382_vm3 = vcmask (!%p138_p2), 257024  }
   0x7   : > { %4337 = vmatprep.subr.bf16.mxu0 (!%p138_p2), %v4664_v1  ;;  %4202 = vmatpush3.bf16.msra.mxu1 (!%p138_p2), %v4663_v0  ;;  %v4669_v6 = vld [vmem:[%s5597_s1 + $0x38] sm:$0xff] (!%p138_p2)   ;;  %v4673_v28 = vld [vmem:[%s5597_s1] sm:$0xff] (!%p138_p2)  }
   0x8   : > { %4338 = vmatpush3.bf16.msra.mxu0 (!%p138_p2), %v4664_v1  ;;  %4203 = vmatprep.subr.bf16.mxu1 (!%p138_p2), %v4665_v2  ;;  %v4670_v7 = vld [vmem:[%s5597_s1 + $0x58] sm:$0xff] (!%p138_p2)   ;;  %v4675_v32 = vld [vmem:[%s5597_s1 + $0x60] sm:$0xff] (!%p138_p2)  }
   0x9   : > { %4339 = vmatprep.subr.bf16.mxu0 (!%p138_p2), %v4666_v3 }
   0xb   : > { %4204 = vmatpush3.bf16.msra.mxu1 (!%p138_p2), %v4665_v2 }
   0xc   : > { %4340 = vmatpush3.bf16.msra.mxu0 (!%p138_p2), %v4666_v3  ;;  %4205 = vmatprep.subr.bf16.mxu1 (!%p138_p2), %v4667_v4 }
   0xd   : > { %s5602_s13 = smov (!%p161_p3, %s3499_s13), 1  ;;  %4341 = vmatprep.subr.bf16.mxu0 %v4668_v5 }
   0xe   : > { %s4653_s24 = smul.u32 336, %s5602_s13 }
   0xf   : > { %4206 = vmatpush3.bf16.msra.mxu1 %v4667_v4  ;;  %s4654_s27 = smul.u32 240, %s5602_s13 }
  0x10   : > { %s4829_s4 = scalar_lea.vmem %s5596_s0, %s4653_s24  ;;  %4342 = vmatpush3.bf16.msra.mxu0 %v4668_v5  ;;  %4207 = vmatprep.subr.bf16.mxu1 %v4669_v6 }
  0x11   : > { %v172_v8 = vld [vmem:[%s4829_s4] sm:$0xff]   ;;  %v4836_v9 = vld [vmem:[%s4829_s4 + $0x8] sm:$0xf]  ;;  %v4839_v10 = vld [vmem:[%s4829_s4 + $0x10] sm:$0xf]  ;;  %4343 = vmatprep.subr.bf16.mxu0 %v4670_v7  ;;  %s5414_s30 = scalar_lea.vmem %s5599_s3, %s4654_s27 }
  0x12   : > { %v232_v11 = vunpack.c.l.bf16 %v172_v8  ;;  %v233_v12 = vunpack.c.h.bf16 %v172_v8  ;;  %v234_v13 = vunpack.c.l.bf16 %v4836_v9  ;;  %v235_v14 = vunpack.c.l.bf16 %v4839_v10  ;;  %v4672_v15 = vld [vmem:[%s4829_s4 + $0x10] sm:$0xff]   ;;  %v330_v18 = vld [vmem:[%s4829_s4 + $0xc] sm:$0x1]  ;;  %v331_v33 = vld [vmem:[%s4829_s4 + $0x1c] sm:$0x1] }
  0x13   : > { %v3507_v16 = vcombine.low %v4836_v9, %v4839_v10  ;;  %v176_v17 = vld [vmem:[%s4829_s4 + $0x14] sm:$0xff]   ;;  %4345 = vmatprep.mubr.msk.bf16.mxu0 %vm713_vm0, %v4672_v15  ;;  %v350_v24 = vunpack.c.l.bf16 %v330_v18  ;;  %4208 = vmatpush3.bf16.msra.mxu1 %v4669_v6  ;;  %v351_v36 = vunpack.c.l.bf16 %v331_v33  ;;  %v178_v40 = vld [vmem:[%s4829_s4 + $0x20] sm:$0xff]   ;;  %v4865_v41 = vld [vmem:[%s4829_s4 + $0x28] sm:$0xf] }
  0x14   : > { %v451_v19 = vrot.slane %v232_v11, 1  ;;  %v452_v20 = vrot.slane %v233_v12, 1  ;;  %v454_v21 = vrot.slane %v234_v13, 1  ;;  %v458_v22 = vrot.slane %v235_v14, 1  ;;  %v4674_v35 = vld [vmem:[%s4829_s4 + $0x18] ss:$8 sps:$4 sm:$0xff]   ;;  %4344 = vmatpush3.bf16.msra.mxu0 %v4670_v7  ;;  %4269 = vmatprep.subr.bf16.mxu1 %v4673_v28 }
  0x15   : > { %v236_v23 = vunpack.c.l.bf16 %v176_v17  ;;  %v237_v25 = vunpack.c.h.bf16 %v176_v17  ;;  %v456_v30 = vrot.slane %v350_v24, 1  ;;  %4405 = vmatprep.subr.bf16.mxu0 %v4675_v32  ;;  %v463_v43 = vrot.slane %v351_v36, 1  ;;  %v4676_v44 = vld [vmem:[%s4829_s4 + $0x24] sm:$0xff]   ;;  %v4869_v47 = vld [vmem:[%s4829_s4 + $0x30] sm:$0xf]  ;;  %v182_v49 = vld [vmem:[%s4829_s4 + $0x34] sm:$0xff]  }
  0x16   : > { %v453_v26 = vsel %vm450_vm1, %v451_v19, %v452_v20  ;;  %v455_v27 = vsel %vm450_vm1, %v452_v20, %v454_v21  ;;  %v238_v45 = vunpack.c.l.bf16 %v178_v40  ;;  %v239_v46 = vunpack.c.h.bf16 %v178_v40  ;;  %v332_v51 = vld [vmem:[%s4829_s4 + $0x2c] sm:$0x1]  ;;  %v333_v60 = vld [vmem:[%s4829_s4 + $0x3c] sm:$0x1]  ;;  %v184_v1 = vld [vmem:[%s4829_s4 + $0x40] sm:$0xff]  }
  0x17   : > { %v659_v29 = vpack.c.bf16 %v455_v27, %v453_v26  ;;  %v459_v31 = vrot.slane %v236_v23, 1  ;;  %v461_v34 = vrot.slane %v237_v25, 1  ;;  %v457_v37 = vsel %vm450_vm1, %v454_v21, %v456_v30  ;;  %4346 = vmatmul.mubr.msk.bf16.vlgmr.msra.gmra.mrb[0].mxu0 %vm713_vm0, %v4674_v35  ;;  %v4677_v3 = vld [vmem:[%s4829_s4 + $0x30] sm:$0xff]   ;;  %v4886_v5 = vld [vmem:[%s4829_s4 + $0x48] sm:$0xf] }
  0x18   : > { %v240_v48 = vunpack.c.l.bf16 %v4865_v41  ;;  %v241_v50 = vunpack.c.l.bf16 %v4869_v47  ;;  %v465_v53 = vrot.slane %v238_v45, 1  ;;  %v466_v54 = vrot.slane %v239_v46, 1  ;;  %4406 = vmatpush3.bf16.msra.mxu0 %v4675_v32  ;;  %4349 = vmatprep.mubr.msk.bf16.mxu0 %vm713_vm0, %v4676_v44  ;;  %v4678_v12 = vld [vmem:[%s4829_s4 + $0x38] ss:$8 sps:$4 sm:$0xff]   ;;  %v4893_v20 = vld [vmem:[%s4829_s4 + $0x50] sm:$0xf] }
  0x19   : > { %4209 = vmatprep.mubr.msk.bf16.mxu1 %vm713_vm0, %v659_v29  ;;  %v460_v38 = vsel %vm450_vm1, %v458_v22, %v459_v31  ;;  %v462_v39 = vsel %vm450_vm1, %v459_v31, %v461_v34  ;;  %v464_v52 = vsel %vm450_vm1, %v461_v34, %v463_v43  ;;  %v242_v55 = vunpack.c.l.bf16 %v182_v49  ;;  %v188_v21 = vld [vmem:[%s4829_s4 + $0x54] sm:$0xff]   ;;  %v4682_v22 = vld [vmem:[%s5597_s1 + $0x8] sm:$0xff]   ;;  %v335_v34 = vld [vmem:[%s4829_s4 + $0x5c] sm:$0x1] }
  0x1a   : > { %v660_v42 = vpack.c.bf16 %v460_v38, %v457_v37  ;;  %v661_v56 = vpack.c.bf16 %v464_v52, %v462_v39  ;;  %v468_v57 = vrot.slane %v240_v48, 1  ;;  %v352_v58 = vunpack.c.l.bf16 %v332_v51  ;;  %v334_v24 = vld [vmem:[%s4829_s4 + $0x4c] sm:$0x1]  ;;  %v4679_v39 = vld [vmem:[%s4829_s4 + $0x44] sm:$0xff]   ;;  %v4680_v40 = vld [vmem:[%s4829_s4 + $0x50] sm:$0xff]  }
  0x1b   : > { %v472_v59 = vrot.slane %v241_v50, 1  ;;  %v467_v61 = vsel %vm450_vm1, %v465_v53, %v466_v54  ;;  %v473_v62 = vrot.slane %v242_v55, 1  ;;  %v243_v63 = vunpack.c.h.bf16 %v182_v49  ;;  %v4683_v26 = vld [vmem:[%s5597_s1 + $0x68] sm:$0xff]   ;;  %v4918_v44 = vld [vmem:[%s4829_s4 + $0x60] sm:$0xff]   ;;  %v4926_v52 = vld [vmem:[%s4829_s4 + $0x70] sm:$0xf] }
  0x1c   : > { %4210 = vmatmul.mubr.msk.bf16.vlgmr.msra.gmra.mrb[0].mxu1 %vm713_vm0, %v660_v42  ;;  %v353_v0 = vunpack.c.l.bf16 %v333_v60  ;;  %v469_v2 = vsel %vm450_vm1, %v466_v54, %v468_v57  ;;  %v470_v4 = vrot.slane %v352_v58, 1  ;;  %v244_v6 = vunpack.c.l.bf16 %v184_v1  ;;  %4407 = vmatprep.subr.bf16.mxu0 %v4683_v26  ;;  %v4923_v50 = vld [vmem:[%s4829_s4 + $0x68] sm:$0xf]  ;;  %v194_v53 = vld [vmem:[%s4829_s4 + $0x74] sm:$0xff]   ;;  %v336_v54 = vld [vmem:[%s4829_s4 + $0x6c] sm:$0x1] }
  0x1d   : > { %4270 = vmatpush3.bf16.msra.mxu1 %v4673_v28  ;;  %4213 = vmatprep.mubr.msk.bf16.mxu1 %vm713_vm0, %v661_v56  ;;  %v245_v7 = vunpack.c.h.bf16 %v184_v1  ;;  %v662_v8 = vpack.c.bf16 %v469_v2, %v467_v61  ;;  %v474_v11 = vsel %vm450_vm1, %v472_v59, %v473_v62  ;;  %v475_v13 = vrot.slane %v243_v63, 1  ;;  %v4681_v2 = vld [vmem:[%s4829_s4 + $0x58] ss:$8 sps:$4 sm:$0xff]  }
  0x1e   : > { %v477_v14 = vrot.slane %v353_v0, 1  ;;  %v471_v15 = vsel %vm450_vm1, %v468_v57, %v470_v4  ;;  %v246_v17 = vunpack.c.l.bf16 %v4886_v5  ;;  %v479_v18 = vrot.slane %v244_v6, 1  ;;  %4271 = vmatprep.subr.bf16.mxu1 %v4682_v22  ;;  %4408 = vmatpush3.bf16.msra.mxu0 %v4683_v26  ;;  %v4685_v26 = vld [vmem:[%s4829_s4 + $0x70] sm:$0xff]  }
  0x1f   : > { %v480_v19 = vrot.slane %v245_v7, 1  ;;  %v663_v23 = vpack.c.bf16 %v474_v11, %v471_v15  ;;  %4350 = vmatmul.mubr.msk.bf16.gmra.mrb[4].mxu0 %vm713_vm0, %v4677_v3  ;;  %v247_v27 = vunpack.c.l.bf16 %v4893_v20  ;;  %v248_v28 = vunpack.c.l.bf16 %v188_v21  ;;  %v4684_v3 = vld [vmem:[%s4829_s4 + $0x64] sm:$0xff]   ;;  %v337_v11 = vld [vmem:[%s4829_s4 + $0x7c] sm:$0x1] }
  0x20   : > { %v482_v25 = vrot.slane %v246_v17, 1  ;;  %v3510_v29 = vcombine.low %v4865_v41, %v4869_v47  ;;  %4353 = vmatprep.mubr.msk.bf16.mxu0 %vm713_vm0, %v4678_v12  ;;  %v476_v30 = vsel %vm450_vm1, %v473_v62, %v475_v13  ;;  %v478_v31 = vsel %vm450_vm1, %v475_v13, %v477_v14  ;;  %v4946_v15 = vld [vmem:[%s4829_s4 + $0x80] sm:$0xff]   ;;  %v4949_v17 = vld [vmem:[%s4829_s4 + $0x88] sm:$0xf] }
  0x21   : > { %v354_v32 = vunpack.c.l.bf16 %v334_v24  ;;  %v249_v33 = vunpack.c.h.bf16 %v188_v21  ;;  %v481_v35 = vsel %vm450_vm1, %v479_v18, %v480_v19  ;;  %v355_v37 = vunpack.c.l.bf16 %v335_v34  ;;  %4272 = vmatpush3.bf16.msra.mxu1 %v4682_v22  ;;  %v4692_v18 = vld [vmem:[%s5597_s1 + $0x10] sm:$0xff]   ;;  %v4763_v47 = vld [vmem:[%s4829_s4 + $0x40] sm:$0xff]  }
  0x22   : > { %v483_v36 = vsel %vm450_vm1, %v480_v19, %v482_v25  ;;  %v664_v38 = vpack.c.bf16 %v478_v31, %v476_v30  ;;  %v486_v42 = vrot.slane %v247_v27, 1  ;;  %v487_v43 = vrot.slane %v248_v28, 1  ;;  %4273 = vmatprep.subr.bf16.mxu1 %v4692_v18 }
  0x23   : > { %v3513_v45 = vcombine.low %v4886_v5, %v4893_v20  ;;  %v665_v46 = vpack.c.bf16 %v483_v36, %v481_v35  ;;  %v484_v48 = vrot.slane %v354_v32, 1  ;;  %v489_v49 = vrot.slane %v249_v33, 1  ;;  %v4686_v32 = vld [vmem:[%s4829_s4 + $0x78] ss:$8 sps:$4 sm:$0xff]   ;;  %v4971_v35 = vld [vmem:[%s4829_s4 + $0x90] sm:$0xf] }
  0x24   : > { %4214 = vmatmul.mubr.msk.bf16.gmra.mrb[4].mxu1 %vm713_vm0, %v662_v8  ;;  %v491_v51 = vrot.slane %v355_v37, 1  ;;  %v488_v55 = vsel %vm450_vm1, %v486_v42, %v487_v43  ;;  %v250_v56 = vunpack.c.l.bf16 %v4918_v44  ;;  %v251_v59 = vunpack.c.h.bf16 %v4918_v44  ;;  %v4974_v36 = vld [vmem:[%s4829_s4 + $0x94] sm:$0xff]  }
  0x25   : > { %4217 = vmatprep.mubr.msk.bf16.mxu1 %vm713_vm0, %v663_v23  ;;  %v485_v57 = vsel %vm450_vm1, %v482_v25, %v484_v48  ;;  %v490_v58 = vsel %vm450_vm1, %v487_v43, %v489_v49  ;;  %v252_v60 = vunpack.c.l.bf16 %v4923_v50  ;;  %v253_v62 = vunpack.c.l.bf16 %v4926_v52  ;;  %v4693_v25 = vld [vmem:[%s5597_s1 + $0x70] sm:$0xff]   ;;  %4274 = vmatpush3.bf16.msra.mxu1 %v4692_v18 }
  0x26   : > { %v492_v61 = vsel %vm450_vm1, %v489_v49, %v491_v51  ;;  %v254_v63 = vunpack.c.l.bf16 %v194_v53  ;;  %v356_v0 = vunpack.c.l.bf16 %v336_v54  ;;  %v666_v1 = vpack.c.bf16 %v488_v55, %v485_v57  ;;  %4409 = vmatprep.subr.bf16.mxu0 %v4693_v25 }
  0x27   : > { %4354 = vmatmul.mubr.msk.bf16.gmra.mrb[8].mxu0 %vm713_vm0, %v4679_v39  ;;  %v493_v4 = vrot.slane %v250_v56, 1  ;;  %v667_v6 = vpack.c.bf16 %v492_v61, %v490_v58  ;;  %v494_v7 = vrot.slane %v251_v59, 1  ;;  %v496_v8 = vrot.slane %v252_v60, 1  ;;  %v4687_v59 = vld [vmem:[%s4829_s4 + $0x84] sm:$0xff]   ;;  %v4688_v60 = vld [vmem:[%s4829_s4 + $0x90] sm:$0xff]  }
  0x28   : > { %4357 = vmatprep.mubr.msk.bf16.mxu0 %vm713_vm0, %v4680_v40  ;;  %v498_v12 = vrot.slane %v356_v0, 1  ;;  %v500_v13 = vrot.slane %v253_v62, 1  ;;  %v501_v14 = vrot.slane %v254_v63, 1  ;;  %v255_v19 = vunpack.c.h.bf16 %v194_v53  ;;  %4410 = vmatpush3.bf16.msra.mxu0 %v4693_v25  ;;  %v338_v40 = vld [vmem:[%s4829_s4 + $0x8c] sm:$0x1] }
  0x29   : > { %v495_v21 = vsel %vm450_vm1, %v493_v4, %v494_v7  ;;  %v497_v22 = vsel %vm450_vm1, %v494_v7, %v496_v8  ;;  %v357_v23 = vunpack.c.l.bf16 %v337_v11  ;;  %v256_v24 = vunpack.c.l.bf16 %v4946_v15  ;;  %v4992_v4 = vld [vmem:[%s4829_s4 + $0xa0] sm:$0xff]   ;;  %v4998_v7 = vld [vmem:[%s4829_s4 + $0xb0] sm:$0xf]  ;;  %v340_v11 = vld [vmem:[%s4829_s4 + $0xac] sm:$0x1] }
  0x2a   : > { %v499_v27 = vsel %vm450_vm1, %v496_v8, %v498_v12  ;;  %v502_v28 = vsel %vm450_vm1, %v500_v13, %v501_v14  ;;  %v257_v30 = vunpack.c.h.bf16 %v4946_v15  ;;  %v258_v31 = vunpack.c.l.bf16 %v4949_v17  ;;  %v5001_v8 = vld [vmem:[%s4829_s4 + $0xb4] sm:$0xff]  }
  0x2b   : > { %v668_v33 = vpack.c.bf16 %v497_v22, %v495_v21  ;;  %v503_v34 = vrot.slane %v255_v19, 1  ;;  %v669_v37 = vpack.c.bf16 %v502_v28, %v499_v27  ;;  %v507_v39 = vrot.slane %v256_v24, 1  ;;  %v4702_v12 = vld [vmem:[%s5597_s1 + $0x18] sm:$0xff]  }
  0x2c   : > { %4218 = vmatmul.mubr.msk.bf16.gmra.mrb[8].mxu1 %vm713_vm0, %v664_v38  ;;  %v505_v38 = vrot.slane %v357_v23, 1  ;;  %v508_v42 = vrot.slane %v257_v30, 1  ;;  %v510_v43 = vrot.slane %v258_v31, 1  ;;  %v260_v49 = vunpack.c.l.bf16 %v4974_v36  ;;  %4275 = vmatprep.subr.bf16.mxu1 %v4702_v12  ;;  %v4703_v27 = vld [vmem:[%s5597_s1 + $0x78] sm:$0xff]  }
  0x2d   : > { %4221 = vmatprep.mubr.msk.bf16.mxu1 %vm713_vm0, %v665_v46  ;;  %v339_v46 = vld [vmem:[%s4829_s4 + $0x9c] sm:$0x1]  ;;  %v504_v48 = vsel %vm450_vm1, %v501_v14, %v503_v34  ;;  %v358_v51 = vunpack.c.l.bf16 %v338_v40  ;;  %v259_v54 = vunpack.c.l.bf16 %v4971_v35  ;;  %v261_v55 = vunpack.c.h.bf16 %v4974_v36  ;;  %v4689_v28 = vld [vmem:[%s4829_s4 + $0x98] ss:$8 sps:$4 sm:$0xff]   ;;  %4276 = vmatpush3.bf16.msra.mxu1 %v4702_v12  ;;  %v5049_v12 = vld [vmem:[%s4829_s4 + $0xd0] sm:$0xf] }
  0x2e   : > { %v506_v53 = vsel %vm450_vm1, %v503_v34, %v505_v38  ;;  %v359_v56 = vunpack.c.l.bf16 %v339_v46  ;;  %v509_v57 = vsel %vm450_vm1, %v507_v39, %v508_v42  ;;  %v511_v58 = vsel %vm450_vm1, %v508_v42, %v510_v43  ;;  %4411 = vmatprep.subr.bf16.mxu0 %v4703_v27  ;;  %v341_v39 = vld [vmem:[%s4829_s4 + $0xbc] sm:$0x1]  ;;  %v5029_v40 = vld [vmem:[%s4829_s4 + $0xc0] sm:$0xff]   ;;  %v3746_v30 = vld [vmem:[%s4829_s4 + $0x58] ss:$16 sps:$4 sm:$0xff]  }
  0x2f   : > { %4358 = vmatmul.mubr.msk.bf16.gmra.mrb[12].mxu0 %vm713_vm0, %v4681_v2  ;;  %v670_v61 = vpack.c.bf16 %v506_v53, %v504_v48  ;;  %v512_v62 = vrot.slane %v358_v51, 1  ;;  %v515_v63 = vrot.slane %v260_v49, 1  ;;  %v671_v0 = vpack.c.bf16 %v511_v58, %v509_v57  ;;  %v5032_v48 = vld [vmem:[%s4829_s4 + $0xc8] sm:$0xf] }
  0x30   : > { %4361 = vmatprep.mubr.msk.bf16.mxu0 %vm713_vm0, %v4684_v3  ;;  %v517_v2 = vrot.slane %v261_v55, 1  ;;  %v519_v3 = vrot.slane %v359_v56, 1  ;;  %v262_v13 = vunpack.c.l.bf16 %v4992_v4  ;;  %v263_v14 = vunpack.c.h.bf16 %v4992_v4  ;;  %4412 = vmatpush3.bf16.msra.mxu0 %v4703_v27 }
  0x31   : > { %v513_v18 = vsel %vm450_vm1, %v510_v43, %v512_v62  ;;  %v265_v24 = vunpack.c.l.bf16 %v4998_v7  ;;  %v266_v25 = vunpack.c.l.bf16 %v5001_v8  ;;  %v267_v49 = vunpack.c.h.bf16 %v5001_v8  ;;  %v4694_v62 = vld [vmem:[%s4829_s4 + $0xb8] ss:$8 sps:$4 sm:$0xff]  }
  0x32   : > { %v518_v21 = vsel %vm450_vm1, %v515_v63, %v517_v2  ;;  %v520_v23 = vsel %vm450_vm1, %v517_v2, %v519_v3  ;;  %v522_v34 = vrot.slane %v263_v14, 1  ;;  %v268_v51 = vunpack.c.l.bf16 %v5029_v40  ;;  %v342_v14 = vld [vmem:[%s4829_s4 + $0xcc] sm:$0x1] }
  0x33   : > { %v528_v43 = vrot.slane %v265_v24, 1  ;;  %v529_v46 = vrot.slane %v266_v25, 1  ;;  %v361_v55 = vunpack.c.l.bf16 %v341_v39  ;;  %v269_v56 = vunpack.c.h.bf16 %v5029_v40 }
  0x34   : > { %4222 = vmatmul.mubr.msk.bf16.gmra.mrb[12].mxu1 %vm713_vm0, %v666_v1  ;;  %v514_v1 = vrot.slane %v259_v54, 1  ;;  %v362_v24 = vunpack.c.l.bf16 %v342_v14  ;;  %v4698_v14 = vld [vmem:[%s4829_s4 + $0xe4] sm:$0xff]  }
  0x35   : > { %4225 = vmatprep.mubr.msk.bf16.mxu1 %vm713_vm0, %v667_v6  ;;  %v4995_v6 = vld [vmem:[%s4829_s4 + $0xa8] sm:$0xf]  ;;  %v530_v58 = vsel %vm450_vm1, %v528_v43, %v529_v46  ;;  %v533_v2 = vrot.slane %v361_v55, 1  ;;  %v536_v3 = vrot.slane %v269_v56, 1 }
  0x36   : > { %v516_v19 = vsel %vm450_vm1, %v514_v1, %v515_v63  ;;  %v264_v22 = vunpack.c.l.bf16 %v4995_v6  ;;  %v531_v63 = vrot.slane %v267_v49, 1  ;;  %v5073_v49 = vld [vmem:[%s4829_s4 + $0xe8] sm:$0xf] }
  0x37   : > { %4362 = vmatmul.mubr.msk.bf16.gmra.mrb[16].mxu0 %vm713_vm0, %v4685_v26  ;;  %v360_v26 = vunpack.c.l.bf16 %v340_v11  ;;  %v672_v31 = vpack.c.bf16 %v516_v19, %v513_v18  ;;  %v343_v18 = vld [vmem:[%s4829_s4 + $0xdc] sm:$0x1] }
  0x38   : > { %4365 = vmatprep.mubr.msk.bf16.mxu0 %vm713_vm0, %v4686_v32  ;;  %v4690_v32 = vld [vmem:[%s4829_s4 + $0xa4] sm:$0xff]   ;;  %v524_v38 = vrot.slane %v264_v22, 1  ;;  %v532_v19 = vsel %vm450_vm1, %v529_v46, %v531_v63  ;;  %v271_v22 = vunpack.c.l.bf16 %v5049_v12 }
  0x39   : > { %v526_v42 = vrot.slane %v360_v26, 1 }
  0x3a   : > { %v525_v54 = vsel %vm450_vm1, %v522_v34, %v524_v38 }
  0x3b   : > { %v527_v57 = vsel %vm450_vm1, %v524_v38, %v526_v42  ;;  %v542_v38 = vrot.slane %v271_v22, 1  ;;  %v5070_v42 = vld [vmem:[%s4829_s4 + $0xe0] sm:$0xff]  }
  0x3c   : > { %4226 = vmatmul.mubr.msk.bf16.gmra.mrb[16].mxu1 %vm713_vm0, %v668_v33  ;;  %v521_v33 = vrot.slane %v262_v13, 1  ;;  %v675_v1 = vpack.c.bf16 %v530_v58, %v527_v57  ;;  %v5052_v13 = vld [vmem:[%s4829_s4 + $0xd4] sm:$0xff]   ;;  %v274_v55 = vunpack.c.l.bf16 %v5070_v42  ;;  %v275_v56 = vunpack.c.h.bf16 %v5070_v42 }
  0x3d   : > { %4229 = vmatprep.mubr.msk.bf16.mxu1 %vm713_vm0, %v669_v37  ;;  %v673_v37 = vpack.c.bf16 %v520_v23, %v518_v21  ;;  %v534_v21 = vsel %vm450_vm1, %v531_v63, %v533_v2  ;;  %v272_v23 = vunpack.c.l.bf16 %v5052_v13  ;;  %v273_v27 = vunpack.c.h.bf16 %v5052_v13  ;;  %v4697_v2 = vld [vmem:[%s4829_s4 + $0xd8] ss:$8 sps:$4 sm:$0xff]  }
  0x3e   : > { %v523_v53 = vsel %vm450_vm1, %v521_v33, %v522_v34  ;;  %v4696_v34 = vld [vmem:[%s4829_s4 + $0xd0] sm:$0xff]  }
  0x3f   : > { %4366 = vmatmul.mubr.msk.bf16.gmra.mrb[20].mxu0 %vm713_vm0, %v4687_v59  ;;  %v270_v59 = vunpack.c.l.bf16 %v5032_v48  ;;  %v543_v39 = vrot.slane %v272_v23, 1  ;;  %v545_v43 = vrot.slane %v273_v27, 1 }
  0x40   : > { %4369 = vmatprep.mubr.msk.bf16.mxu0 %vm713_vm0, %v4688_v60  ;;  %v674_v60 = vpack.c.bf16 %v525_v54, %v523_v53  ;;  %v5077_v53 = vld [vmem:[%s4829_s4 + $0xf0] sm:$0xf]  ;;  %v5080_v54 = vld [vmem:[%s4829_s4 + $0xf4] sm:$0xff]  }
  0x41   : > { %v538_v11 = vrot.slane %v270_v59, 1  ;;  %v544_v58 = vsel %vm450_vm1, %v542_v38, %v543_v39  ;;  %v276_v59 = vunpack.c.l.bf16 %v5073_v49  ;;  %v277_v63 = vunpack.c.l.bf16 %v5077_v53 }
  0x42   : > { %v279_v27 = vunpack.c.h.bf16 %v5080_v54 }
  0x43   : > { %v539_v26 = vsel %vm450_vm1, %v536_v3, %v538_v11  ;;  %v556_v22 = vrot.slane %v277_v63, 1  ;;  %v5123_v63 = vld [vmem:[%s4829_s4 + $0x114] sm:$0xff]  }
  0x44   : > { %4230 = vmatmul.mubr.msk.bf16.gmra.mrb[20].mxu1 %vm713_vm0, %v670_v61  ;;  %v4691_v61 = vld [vmem:[%s4829_s4 + $0xb0] sm:$0xff]  }
  0x45   : > { %4233 = vmatprep.mubr.msk.bf16.mxu1 %vm713_vm0, %v671_v0  ;;  %v535_v0 = vrot.slane %v268_v51, 1  ;;  %v344_v51 = vld [vmem:[%s4829_s4 + $0xec] sm:$0x1] }
  0x47   : > { %4370 = vmatmul.mubr.msk.bf16.gmra.mrb[24].mxu0 %vm713_vm0, %v4689_v28  ;;  %v537_v25 = vsel %vm450_vm1, %v535_v0, %v536_v3  ;;  %v363_v28 = vunpack.c.l.bf16 %v343_v18  ;;  %v278_v0 = vunpack.c.l.bf16 %v5080_v54  ;;  %v549_v3 = vrot.slane %v274_v55, 1 }
  0x48   : > { %4373 = vmatprep.mubr.msk.bf16.mxu0 %vm713_vm0, %v4690_v32  ;;  %v4695_v32 = vld [vmem:[%s4829_s4 + $0xc4] sm:$0xff]   ;;  %v677_v33 = vpack.c.bf16 %v539_v26, %v537_v25  ;;  %v550_v18 = vrot.slane %v275_v56, 1  ;;  %v4700_v56 = vld [vmem:[%s4829_s4 + $0xf8] ss:$8 sps:$4 sm:$0xff]  }
  0x49   : > { %v547_v46 = vrot.slane %v363_v28, 1  ;;  %v557_v23 = vrot.slane %v278_v0, 1  ;;  %v5099_v25 = vld [vmem:[%s4829_s4 + $0x100] sm:$0xff]   ;;  %v5102_v26 = vld [vmem:[%s4829_s4 + $0x108] sm:$0xf] }
  0x4a   : > { %v551_v28 = vsel %vm450_vm1, %v549_v3, %v550_v18  ;;  %v281_v38 = vunpack.c.h.bf16 %v5099_v25  ;;  %v347_v0 = vld [vmem:[%s4829_s4 + $0x11c] sm:$0x1] }
  0x4c   : > { %4234 = vmatmul.mubr.msk.bf16.gmra.mrb[24].mxu1 %vm713_vm0, %v672_v31  ;;  %v676_v31 = vpack.c.bf16 %v534_v21, %v532_v19  ;;  %v552_v19 = vrot.slane %v276_v59, 1 }
  0x4d   : > { %4237 = vmatprep.mubr.msk.bf16.mxu1 %vm713_vm0, %v673_v37  ;;  %v540_v37 = vrot.slane %v362_v24, 1  ;;  %v345_v24 = vld [vmem:[%s4829_s4 + $0xfc] sm:$0x1] }
  0x4f   : > { %4374 = vmatmul.mubr.msk.bf16.gmra.mrb[28].mxu0 %vm713_vm0, %v4691_v61  ;;  %v541_v57 = vsel %vm450_vm1, %v538_v11, %v540_v37  ;;  %v546_v61 = vsel %vm450_vm1, %v543_v39, %v545_v43  ;;  %v280_v37 = vunpack.c.l.bf16 %v5099_v25  ;;  %v282_v39 = vunpack.c.l.bf16 %v5102_v26 }
  0x50   : > { %4377 = vmatprep.mubr.msk.bf16.mxu0 %vm713_vm0, %v4694_v62  ;;  %v548_v62 = vsel %vm450_vm1, %v545_v43, %v547_v46  ;;  %v4699_v46 = vld [vmem:[%s4829_s4 + $0xf0] sm:$0xff]  }
  0x51   : > { %v679_v11 = vpack.c.bf16 %v548_v62, %v546_v61  ;;  %v563_v59 = vrot.slane %v280_v37, 1  ;;  %v566_v61 = vrot.slane %v282_v39, 1  ;;  %v5120_v62 = vld [vmem:[%s4829_s4 + $0x110] sm:$0xf]  ;;  %v5140_v37 = vld [vmem:[%s4829_s4 + $0x120] sm:$0xff]  }
  0x52   : > { %v5143_v39 = vld [vmem:[%s4829_s4 + $0x128] sm:$0xf] }
  0x54   : > { %4238 = vmatmul.mubr.msk.bf16.gmra.mrb[28].mxu1 %vm713_vm0, %v674_v60  ;;  %v364_v60 = vunpack.c.l.bf16 %v344_v51  ;;  %v559_v51 = vrot.slane %v279_v27, 1 }
  0x55   : > { %4241 = vmatprep.mubr.msk.bf16.mxu1 %vm713_vm0, %v675_v1  ;;  %v678_v1 = vpack.c.bf16 %v544_v58, %v541_v57  ;;  %v346_v58 = vld [vmem:[%s4829_s4 + $0x10c] sm:$0x1] }
  0x56   : > { %v554_v21 = vrot.slane %v364_v60, 1  ;;  %v564_v60 = vrot.slane %v281_v38, 1 }
  0x57   : > { %4378 = vmatmul.mubr.msk.bf16.gmra.mrb[32].mxu0 %vm713_vm0, %v4695_v32 }
  0x58   : > { %4381 = vmatprep.mubr.msk.bf16.mxu0 %vm713_vm0, %v4696_v34  ;;  %v555_v32 = vsel %vm450_vm1, %v552_v19, %v554_v21  ;;  %v558_v34 = vsel %vm450_vm1, %v556_v22, %v557_v23  ;;  %v567_v21 = vsel %vm450_vm1, %v564_v60, %v566_v61  ;;  %v367_v22 = vunpack.c.l.bf16 %v347_v0 }
  0x59   : > { %v681_v55 = vpack.c.bf16 %v558_v34, %v555_v32 }
  0x5a   : > { %v575_v38 = vrot.slane %v367_v22, 1 }
  0x5c   : > { %4242 = vmatmul.mubr.msk.bf16.gmra.mrb[32].mxu1 %vm713_vm0, %v676_v31  ;;  %v553_v31 = vsel %vm450_vm1, %v550_v18, %v552_v19  ;;  %v285_v18 = vunpack.c.h.bf16 %v5123_v63  ;;  %v565_v19 = vsel %vm450_vm1, %v563_v59, %v564_v60  ;;  %v287_v59 = vunpack.c.h.bf16 %v5140_v37 }
  0x5d   : > { %4245 = vmatprep.mubr.msk.bf16.mxu1 %vm713_vm0, %v677_v33  ;;  %v365_v33 = vunpack.c.l.bf16 %v345_v24  ;;  %v680_v43 = vpack.c.bf16 %v553_v31, %v551_v28  ;;  %v4701_v24 = vld [vmem:[%s4829_s4 + $0x104] sm:$0xff]   ;;  %v683_v28 = vpack.c.bf16 %v567_v21, %v565_v19  ;;  %v4704_v31 = vld [vmem:[%s4829_s4 + $0x110] sm:$0xff]   ;;  %v288_v60 = vunpack.c.l.bf16 %v5143_v39 }
  0x5e   : > { %v573_v34 = vrot.slane %v285_v18, 1  ;;  %v4706_v18 = vld [vmem:[%s4829_s4 + $0x124] sm:$0xff]   ;;  %v578_v21 = vrot.slane %v287_v59, 1 }
  0x5f   : > { %4382 = vmatmul.mubr.msk.bf16.gmra.mrb[36].mxu0 %vm713_vm0, %v4697_v2  ;;  %v561_v57 = vrot.slane %v365_v33, 1  ;;  %v366_v2 = vunpack.c.l.bf16 %v346_v58  ;;  %v580_v22 = vrot.slane %v288_v60, 1 }
  0x60   : > { %4385 = vmatprep.mubr.msk.bf16.mxu0 %vm713_vm0, %v4698_v14  ;;  %v284_v14 = vunpack.c.l.bf16 %v5123_v63  ;;  %v576_v0 = vsel %vm450_vm1, %v573_v34, %v575_v38 }
  0x61   : > { %v562_v3 = vsel %vm450_vm1, %v559_v51, %v561_v57  ;;  %v568_v27 = vrot.slane %v366_v2, 1  ;;  %v581_v38 = vsel %vm450_vm1, %v578_v21, %v580_v22 }
  0x62   : > { %v571_v33 = vrot.slane %v284_v14, 1 }
  0x64   : > { %4246 = vmatmul.mubr.msk.bf16.gmra.mrb[36].mxu1 %vm713_vm0, %v678_v1  ;;  %v560_v1 = vsel %vm450_vm1, %v557_v23, %v559_v51  ;;  %v348_v51 = vld [vmem:[%s4829_s4 + $0x12c] sm:$0x1]  ;;  %v574_v58 = vsel %vm450_vm1, %v571_v33, %v573_v34 }
  0x65   : > { %4249 = vmatprep.mubr.msk.bf16.mxu1 %vm713_vm0, %v679_v11  ;;  %v283_v11 = vunpack.c.l.bf16 %v5120_v62  ;;  %v682_v23 = vpack.c.bf16 %v562_v3, %v560_v1  ;;  %v368_v2 = vunpack.c.l.bf16 %v348_v51  ;;  %v685_v14 = vpack.c.bf16 %v576_v0, %v574_v58  ;;  %v4707_v0 = vld [vmem:[%s4829_s4 + $0x130] sm:$0xff]  }
  0x67   : > { %4386 = vmatmul.mubr.msk.bf16.gmra.mrb[40].mxu0 %vm713_vm0, %v4699_v46  ;;  %v570_v32 = vrot.slane %v283_v11, 1  ;;  %v5149_v46 = vld [vmem:[%s4829_s4 + $0x134] sm:$0xff]  }
  0x68   : > { %4389 = vmatprep.mubr.msk.bf16.mxu0 %vm713_vm0, %v4700_v56  ;;  %v286_v56 = vunpack.c.l.bf16 %v5140_v37  ;;  %v290_v1 = vunpack.c.l.bf16 %v5149_v46  ;;  %v4705_v11 = vld [vmem:[%s4829_s4 + $0x118] ss:$8 sps:$4 sm:$0xff]  }
  0x69   : > { %v572_v57 = vsel %vm450_vm1, %v570_v32, %v571_v33  ;;  %v3730_v32 = vld [vmem:[%s4829_s4 + $0x18] ss:$16 sps:$4 sm:$0xff]   ;;  %v291_v33 = vunpack.c.h.bf16 %v5149_v46 }
  0x6a   : > { %v577_v19 = vrot.slane %v286_v56, 1  ;;  %v2152_v59 = vunpack.c.l.bf16 %v3730_v32 }
  0x6c   : > { %4250 = vmatmul.mubr.msk.bf16.gmra.mrb[40].mxu1 %vm713_vm0, %v680_v43  ;;  %v5146_v43 = vld [vmem:[%s4829_s4 + $0x130] sm:$0xf]  ;;  %v579_v34 = vsel %vm450_vm1, %v577_v19, %v578_v21  ;;  %v2313_v19 = vrot.slane %v2152_v59, 1  ;;  %v4046_v21 = vld [vmem:[%s4829_s4 + $0x20] sm:$0xff]  }
  0x6d   : > { %4253 = vmatprep.mubr.msk.bf16.mxu1 %vm713_vm0, %v681_v55  ;;  %v569_v55 = vsel %vm450_vm1, %v566_v61, %v568_v27  ;;  %v289_v61 = vunpack.c.l.bf16 %v5146_v43  ;;  %v585_v27 = vrot.slane %v290_v1, 1  ;;  %v686_v60 = vpack.c.bf16 %v581_v38, %v579_v34  ;;  %v4708_v1 = vld [vmem:[%s4829_s4 + $0x138] ss:$8 sps:$4 sm:$0xff]  }
  0x6e   : > { %v684_v3 = vpack.c.bf16 %v572_v57, %v569_v55  ;;  %v4759_v59 = vld [vmem:[%s4829_s4] sm:$0xff]  }
  0x6f   : > { %4390 = vmatmul.mubr.msk.bf16.gmra.mrb[44].mxu0 %vm713_vm0, %v4701_v24  ;;  %v584_v24 = vrot.slane %v289_v61, 1 }
  0x70   : > { %4393 = vmatprep.mubr.msk.bf16.mxu0 %vm713_vm0, %v4704_v31  ;;  %v4045_v31 = vld [vmem:[%s4829_s4 + $0x10] sm:$0xff]  }
  0x71   : > { %v3967_v55 = vunpack.c.l.bf16 %v4045_v31  ;;  %v586_v57 = vsel %vm450_vm1, %v584_v24, %v585_v27  ;;  %v3968_v58 = vunpack.c.h.bf16 %v4045_v31  ;;  %v3971_v31 = vunpack.c.l.bf16 %v4046_v21 }
  0x74   : > { %4254 = vmatmul.mubr.msk.bf16.gmra.mrb[44].mxu1 %vm713_vm0, %v682_v23  ;;  %v582_v23 = vrot.slane %v368_v2, 1  ;;  %v587_v2 = vrot.slane %v291_v33, 1  ;;  %v3972_v33 = vunpack.c.h.bf16 %v4046_v21  ;;  %v3739_v21 = vld [vmem:[%s4829_s4 + $0x3c] sm:$0x1] }
  0x75   : > { %4257 = vmatprep.mubr.msk.bf16.mxu1 %vm713_vm0, %v683_v28  ;;  %v349_v28 = vld [vmem:[%s4829_s4 + $0x13c] sm:$0x1] }
  0x76   : > { %v369_v51 = vunpack.c.l.bf16 %v349_v28  ;;  %v583_v56 = vsel %vm450_vm1, %v580_v22, %v582_v23  ;;  %v3735_v28 = vld [vmem:[%s4829_s4 + $0x2c] sm:$0x1]  ;;  %v588_v23 = vsel %vm450_vm1, %v585_v27, %v587_v2  ;;  %v2318_v27 = vrot.slane %v3972_v33, 1 }
  0x77   : > { %4394 = vmatmul.mubr.msk.bf16.gmra.mrb[48].mxu0 %vm713_vm0, %v4705_v11  ;;  %v687_v61 = vpack.c.bf16 %v586_v57, %v583_v56  ;;  %v3731_v11 = vld [vmem:[%s4829_s4 + $0x1c] sm:$0x1]  ;;  %v4709_v57 = vld [vmem:[%s4829_s4 + $0x144] sm:$0xff]  }
  0x78   : > { %4397 = vmatprep.mubr.msk.bf16.mxu0 %vm713_vm0, %v4706_v18  ;;  %v2311_v18 = vrot.slane %v3968_v58, 1  ;;  %v2153_v22 = vunpack.c.l.bf16 %v3731_v11  ;;  %v4048_v11 = vld [vmem:[%s4829_s4 + $0x40] sm:$0xff]  }
  0x7a   : > { %v2314_v38 = vsel %vm450_vm1, %v2311_v18, %v2313_v19  ;;  %v2315_v58 = vrot.slane %v2153_v22, 1 }
  0x7c   : > { %4258 = vmatmul.mubr.msk.bf16.gmra.mrb[48].mxu1 %vm713_vm0, %v684_v3  ;;  %v589_v3 = vrot.slane %v369_v51, 1  ;;  %v2156_v51 = vunpack.c.h.bf16 %v3730_v32  ;;  %v2316_v32 = vsel %vm450_vm1, %v2313_v19, %v2315_v58 }
  0x7d   : > { %4261 = vmatprep.mubr.msk.bf16.mxu1 %vm713_vm0, %v685_v14  ;;  %v2310_v14 = vrot.slane %v3967_v55, 1  ;;  %v2157_v55 = vunpack.c.l.bf16 %v3735_v28 }
  0x7e   : > { %v590_v24 = vsel %vm450_vm1, %v587_v2, %v589_v3  ;;  %v3738_v3 = vld [vmem:[%s4829_s4 + $0x38] ss:$16 sps:$4 sm:$0xff]  }
  0x7f   : > { %4398 = vmatmul.mubr.msk.bf16.gmra.mrb[52].mxu0 %vm713_vm0, %v4707_v0  ;;  %v2312_v34 = vsel %vm450_vm1, %v2310_v14, %v2311_v18  ;;  %v688_v56 = vpack.c.bf16 %v590_v24, %v588_v23  ;;  %v2317_v0 = vrot.slane %v3971_v31, 1  ;;  %v2322_v2 = vrot.slane %v2157_v55, 1 }
  0x80   : > { %4401 = vmatprep.mubr.msk.bf16.mxu0 %vm713_vm0, %v4708_v1  ;;  %v2320_v1 = vrot.slane %v2156_v51, 1  ;;  %v2160_v22 = vunpack.c.l.bf16 %v3738_v3  ;;  %v3979_v23 = vunpack.c.l.bf16 %v4048_v11  ;;  %v3980_v24 = vunpack.c.h.bf16 %v4048_v11 }
  0x81   : > { %v2319_v28 = vsel %vm450_vm1, %v2317_v0, %v2318_v27  ;;  %v3743_v0 = vld [vmem:[%s4829_s4 + $0x4c] sm:$0x1]  ;;  %v2164_v11 = vunpack.c.h.bf16 %v3738_v3 }
  0x82   : > { %v2321_v31 = vsel %vm450_vm1, %v2318_v27, %v2320_v1  ;;  %v2323_v33 = vsel %vm450_vm1, %v2320_v1, %v2322_v2  ;;  %v2519_v19 = vpack.c.bf16 %v2319_v28, %v2316_v32  ;;  %v2331_v58 = vrot.slane %v3979_v23, 1 }
  0x83   : > { %v2168_v32 = vunpack.c.l.bf16 %v3746_v30 }
  0x84   : > { %4262 = vmatmul.mubr.msk.bf16.gmra.mrb[52].mxu1 %vm713_vm0, %v686_v60  ;;  %v2518_v60 = vpack.c.bf16 %v2314_v38, %v2312_v34  ;;  %v2161_v34 = vunpack.c.l.bf16 %v3739_v21  ;;  %v4760_v38 = vld [vmem:[%s4829_s4 + $0x14] sm:$0xff]   ;;  %v2165_v21 = vunpack.c.l.bf16 %v3743_v0 }
  0x85   : > { %4265 = vmatprep.mubr.msk.bf16.mxu1 %vm713_vm0, %v687_v61  ;;  %v4047_v61 = vld [vmem:[%s4829_s4 + $0x30] sm:$0xff]  }
  0x86   : > { %v3975_v14 = vunpack.c.l.bf16 %v4047_v61  ;;  %v3976_v18 = vunpack.c.h.bf16 %v4047_v61  ;;  %v4049_v61 = vld [vmem:[%s4829_s4 + $0x50] sm:$0xff]   ;;  %v2336_v23 = vrot.slane %v2165_v21, 1 }
  0x87   : > { %4402 = vmatmul.mubr.msk.bf16.gmra.mrb[56].mxu0 %vm713_vm0, %v4709_v57  ;;  %v2327_v57 = vrot.slane %v2160_v22, 1  ;;  %v3983_v10 = vunpack.c.l.bf16 %v4049_v61  ;;  %v2334_v22 = vrot.slane %v2164_v11, 1 }
  0x88   : > { %4413 = vmatprep.mubr.msk.bf16.mxu0 %vm713_vm0, %v2518_v60  ;;  %v2324_v51 = vrot.slane %v3975_v14, 1  ;;  %v2325_v55 = vrot.slane %v3976_v18, 1  ;;  %v2329_v60 = vrot.slane %v2161_v34, 1  ;;  %v4761_v14 = vld [vmem:[%s4829_s4 + $0x20] sm:$0xff]   ;;  %v2341_v34 = vrot.slane %v2168_v32, 1 }
  0x89   : > { %v3755_v32 = vld [vmem:[%s4829_s4 + $0x7c] sm:$0x1] }
  0x8a   : > { %v2326_v27 = vsel %vm450_vm1, %v2324_v51, %v2325_v55  ;;  %v2328_v1 = vsel %vm450_vm1, %v2325_v55, %v2327_v57  ;;  %v2330_v9 = vsel %vm450_vm1, %v2327_v57, %v2329_v60 }
  0x8b   : > { %v2521_v18 = vpack.c.bf16 %v2328_v1, %v2326_v27  ;;  %v4762_v27 = vld [vmem:[%s4829_s4 + $0x34] sm:$0xff]  }
  0x8c   : > { %4266 = vmatmul.mubr.msk.bf16.gmra.mrb[56].mxu1 %vm713_vm0, %v688_v56  ;;  %v2520_v56 = vpack.c.bf16 %v2323_v33, %v2321_v31  ;;  %v2338_v31 = vrot.slane %v3983_v10, 1  ;;  %v4051_v1 = vld [vmem:[%s4829_s4 + $0x70] sm:$0xff]  }
  0x8d   : > { %4277 = vmatprep.mubr.msk.bf16.mxu1 %vm713_vm0, %v4759_v59  ;;  %v2332_v59 = vrot.slane %v3980_v24, 1  ;;  %v4050_v24 = vld [vmem:[%s4829_s4 + $0x60] sm:$0xff]  }
  0x8e   : > { %v3987_v3 = vunpack.c.l.bf16 %v4050_v24  ;;  %v3988_v51 = vunpack.c.h.bf16 %v4050_v24 }
  0x8f   : > { %4414 = vmatmul.mubr.msk.bf16.vlgmr.msra.gmra.mrb[0].mxu0 %vm713_vm0, %v2519_v19  ;;  %v2333_v2 = vsel %vm450_vm1, %v2331_v58, %v2332_v59  ;;  %v3747_v19 = vld [vmem:[%s4829_s4 + $0x5c] sm:$0x1]  ;;  %v2335_v55 = vsel %vm450_vm1, %v2332_v59, %v2334_v22  ;;  %v2172_v58 = vunpack.c.h.bf16 %v3746_v30  ;;  %v3992_v30 = vunpack.c.h.bf16 %v4051_v1 }
  0x90   : > { %4417 = vmatprep.mubr.msk.bf16.mxu0 %vm713_vm0, %v2520_v56  ;;  %v2522_v28 = vpack.c.bf16 %v2333_v2, %v2330_v9  ;;  %v2337_v56 = vsel %vm450_vm1, %v2334_v22, %v2336_v23  ;;  %v2169_v57 = vunpack.c.l.bf16 %v3747_v19  ;;  %v2346_v59 = vrot.slane %v3988_v51, 1  ;;  %v3754_v9 = vld [vmem:[%s4829_s4 + $0x78] ss:$16 sps:$4 sm:$0xff]  }
  0x91   : > { %v2523_v41 = vpack.c.bf16 %v2337_v56, %v2335_v55  ;;  %v2348_v21 = vrot.slane %v2172_v58, 1  ;;  %v2177_v19 = vunpack.c.l.bf16 %v3755_v32  ;;  %v4764_v56 = vld [vmem:[%s4829_s4 + $0x54] sm:$0xff]   ;;  %v3759_v58 = vld [vmem:[%s4829_s4 + $0x8c] sm:$0x1] }
  0x92   : > { %v2343_v11 = vrot.slane %v2169_v57, 1 }
  0x93   : > { %v2349_v23 = vsel %vm450_vm1, %v2346_v59, %v2348_v21 }
  0x94   : > { %4278 = vmatmul.mubr.msk.bf16.vlgmr.msra.gmra.mrb[0].mxu1 %vm713_vm0, %v3507_v16  ;;  %v3984_v16 = vunpack.c.h.bf16 %v4049_v61 }
  0x95   : > { %4281 = vmatprep.mubr.msk.bf16.mxu1 %vm713_vm0, %v4760_v38  ;;  %v3751_v38 = vld [vmem:[%s4829_s4 + $0x6c] sm:$0x1] }
  0x96   : > { %v2339_v33 = vrot.slane %v3984_v16, 1  ;;  %v2173_v61 = vunpack.c.l.bf16 %v3751_v38  ;;  %v3991_v16 = vunpack.c.l.bf16 %v4051_v1  ;;  %v2181_v1 = vunpack.c.l.bf16 %v3759_v58 }
  0x97   : > { %4418 = vmatmul.mubr.msk.bf16.gmra.mrb[4].mxu0 %vm713_vm0, %v2521_v18  ;;  %v2176_v18 = vunpack.c.l.bf16 %v3754_v9 }
  0x98   : > { %4421 = vmatprep.mubr.msk.bf16.mxu0 %vm713_vm0, %v2522_v28  ;;  %v2340_v60 = vsel %vm450_vm1, %v2338_v31, %v2339_v33  ;;  %v2342_v0 = vsel %vm450_vm1, %v2339_v33, %v2341_v34  ;;  %v2350_v10 = vrot.slane %v2173_v61, 1  ;;  %v2344_v28 = vsel %vm450_vm1, %v2341_v34, %v2343_v11 }
  0x99   : > { %v2524_v2 = vpack.c.bf16 %v2342_v0, %v2340_v60  ;;  %v2352_v38 = vrot.slane %v3991_v16, 1  ;;  %v2355_v55 = vrot.slane %v2176_v18, 1  ;;  %v4053_v60 = vld [vmem:[%s4829_s4 + $0x90] sm:$0xff]   ;;  %v2357_v0 = vrot.slane %v2177_v19, 1  ;;  %v3763_v18 = vld [vmem:[%s4829_s4 + $0x9c] sm:$0x1] }
  0x9a   : > { %v2351_v24 = vsel %vm450_vm1, %v2348_v21, %v2350_v10  ;;  %v4000_v11 = vunpack.c.h.bf16 %v4053_v60 }
  0x9b   : > { %v2526_v57 = vpack.c.bf16 %v2351_v24, %v2349_v23  ;;  %v2358_v21 = vsel %vm450_vm1, %v2355_v55, %v2357_v0 }
  0x9c   : > { %4282 = vmatmul.mubr.msk.bf16.gmra.mrb[4].mxu1 %vm713_vm0, %v4761_v14  ;;  %v4052_v14 = vld [vmem:[%s4829_s4 + $0x80] sm:$0xff]   ;;  %v2367_v16 = vrot.slane %v4000_v11, 1 }
  0x9d   : > { %4285 = vmatprep.mubr.msk.bf16.mxu1 %vm713_vm0, %v3510_v29  ;;  %v2345_v29 = vrot.slane %v3987_v3, 1  ;;  %v3995_v31 = vunpack.c.l.bf16 %v4052_v14  ;;  %v3996_v33 = vunpack.c.h.bf16 %v4052_v14  ;;  %v2353_v3 = vrot.slane %v3992_v30, 1  ;;  %v4054_v14 = vld [vmem:[%s4829_s4 + $0xa0] sm:$0xff]  }
  0x9e   : > { %v4004_v19 = vunpack.c.h.bf16 %v4054_v14 }
  0x9f   : > { %4422 = vmatmul.mubr.msk.bf16.gmra.mrb[8].mxu0 %vm713_vm0, %v2523_v41  ;;  %v2347_v22 = vsel %vm450_vm1, %v2345_v29, %v2346_v59  ;;  %v2359_v34 = vrot.slane %v3995_v31, 1  ;;  %v2360_v61 = vrot.slane %v3996_v33, 1  ;;  %v2354_v41 = vsel %vm450_vm1, %v2352_v38, %v2353_v3 }
  0xa0   : > { %4425 = vmatprep.mubr.msk.bf16.mxu0 %vm713_vm0, %v2524_v2  ;;  %v2525_v51 = vpack.c.bf16 %v2347_v22, %v2344_v28  ;;  %v2356_v29 = vsel %vm450_vm1, %v2353_v3, %v2355_v55  ;;  %v3999_v2 = vunpack.c.l.bf16 %v4053_v60  ;;  %v3767_v28 = vld [vmem:[%s4829_s4 + $0xac] sm:$0x1]  ;;  %v4003_v31 = vunpack.c.l.bf16 %v4054_v14  ;;  %v4765_v55 = vld [vmem:[%s4829_s4 + $0x74] sm:$0xff]  }
  0xa1   : > { %v2361_v5 = vsel %vm450_vm1, %v2359_v34, %v2360_v61  ;;  %v2527_v20 = vpack.c.bf16 %v2356_v29, %v2354_v41  ;;  %v5600_v33 = vcombine.low %v4923_v50, %v4926_v52  ;;  %v2185_v38 = vunpack.c.l.bf16 %v3763_v18  ;;  %v4055_v52 = vld [vmem:[%s4829_s4 + $0xb0] sm:$0xff]   ;;  %v3771_v41 = vld [vmem:[%s4829_s4 + $0xbc] sm:$0x1] }
  0xa2   : > { %v2366_v10 = vrot.slane %v3999_v2, 1  ;;  %v2528_v30 = vpack.c.bf16 %v2361_v5, %v2358_v21  ;;  %v2373_v60 = vrot.slane %v4003_v31, 1  ;;  %v2374_v0 = vrot.slane %v4004_v19, 1 }
  0xa3   : > { %v2371_v58 = vrot.slane %v2185_v38, 1  ;;  %v4007_v29 = vunpack.c.l.bf16 %v4055_v52 }
  0xa4   : > { %4286 = vmatmul.mubr.msk.bf16.gmra.mrb[8].mxu1 %vm713_vm0, %v4762_v27  ;;  %v3762_v27 = vld [vmem:[%s4829_s4 + $0x98] ss:$16 sps:$4 sm:$0xff]   ;;  %v2368_v24 = vsel %vm450_vm1, %v2366_v10, %v2367_v16  ;;  %v2375_v2 = vsel %vm450_vm1, %v2373_v60, %v2374_v0  ;;  %v4058_v60 = vld [vmem:[%s4829_s4 + $0xe0] sm:$0xff]  }
  0xa5   : > { %4289 = vmatprep.mubr.msk.bf16.mxu1 %vm713_vm0, %v4763_v47  ;;  %v2180_v47 = vunpack.c.h.bf16 %v3754_v9  ;;  %v2184_v59 = vunpack.c.l.bf16 %v3762_v27  ;;  %v2364_v9 = vrot.slane %v2181_v1, 1  ;;  %v2188_v3 = vunpack.c.h.bf16 %v3762_v27 }
  0xa6   : > { %v4008_v1 = vunpack.c.h.bf16 %v4055_v52 }
  0xa7   : > { %4426 = vmatmul.mubr.msk.bf16.gmra.mrb[12].mxu0 %vm713_vm0, %v2525_v51  ;;  %v2369_v32 = vrot.slane %v2184_v59, 1  ;;  %v2189_v51 = vunpack.c.l.bf16 %v3767_v28  ;;  %v2376_v50 = vrot.slane %v2188_v3, 1 }
  0xa8   : > { %4429 = vmatprep.mubr.msk.bf16.mxu0 %vm713_vm0, %v2526_v57 }
  0xa9   : > { %v2378_v34 = vrot.slane %v2189_v51, 1  ;;  %v2372_v27 = vsel %vm450_vm1, %v2369_v32, %v2371_v58  ;;  %v2377_v11 = vsel %vm450_vm1, %v2374_v0, %v2376_v50 }
  0xab   : > { %v2379_v21 = vsel %vm450_vm1, %v2376_v50, %v2378_v34  ;;  %v3779_v34 = vld [vmem:[%s4829_s4 + $0xdc] sm:$0x1] }
  0xac   : > { %4290 = vmatmul.mubr.msk.bf16.gmra.mrb[12].mxu1 %vm713_vm0, %v3513_v45  ;;  %v2362_v45 = vrot.slane %v2180_v47, 1  ;;  %v4056_v47 = vld [vmem:[%s4829_s4 + $0xc0] sm:$0xff]   ;;  %v2532_v10 = vpack.c.bf16 %v2379_v21, %v2377_v11 }
  0xad   : > { %4293 = vmatprep.mubr.msk.bf16.mxu1 %vm713_vm0, %v4764_v56  ;;  %v4011_v5 = vunpack.c.l.bf16 %v4056_v47 }
  0xae   : > { %v2363_v22 = vsel %vm450_vm1, %v2360_v61, %v2362_v45  ;;  %v2365_v23 = vsel %vm450_vm1, %v2362_v45, %v2364_v9  ;;  %v3770_v61 = vld [vmem:[%s4829_s4 + $0xb8] ss:$16 sps:$4 sm:$0xff]   ;;  %v2193_v45 = vunpack.c.l.bf16 %v3771_v41  ;;  %v2531_v9 = vpack.c.bf16 %v2375_v2, %v2372_v27 }
  0xaf   : > { %4430 = vmatmul.mubr.msk.bf16.gmra.mrb[16].mxu0 %vm713_vm0, %v2527_v20  ;;  %v2529_v56 = vpack.c.bf16 %v2365_v23, %v2363_v22  ;;  %v2192_v59 = vunpack.c.l.bf16 %v3770_v61  ;;  %v4012_v20 = vunpack.c.h.bf16 %v4056_v47  ;;  %v2387_v18 = vrot.slane %v4011_v5, 1  ;;  %v3775_v22 = vld [vmem:[%s4829_s4 + $0xcc] sm:$0x1]  ;;  %v4057_v23 = vld [vmem:[%s4829_s4 + $0xd0] sm:$0xff]  }
  0xb0   : > { %4433 = vmatprep.mubr.msk.bf16.mxu0 %vm713_vm0, %v2528_v30  ;;  %v2381_v30 = vrot.slane %v4008_v1, 1  ;;  %v2385_v14 = vrot.slane %v2193_v45, 1  ;;  %v2196_v31 = vunpack.c.h.bf16 %v3770_v61  ;;  %v4016_v3 = vunpack.c.h.bf16 %v4057_v23  ;;  %v3783_v61 = vld [vmem:[%s4829_s4 + $0xec] sm:$0x1] }
  0xb1   : > { %v2388_v28 = vrot.slane %v4012_v20, 1  ;;  %v4019_v47 = vunpack.c.l.bf16 %v4058_v60  ;;  %v2205_v2 = vunpack.c.l.bf16 %v3783_v61 }
  0xb2   : > { %v2395_v50 = vrot.slane %v4016_v3, 1 }
  0xb3   : > { %v2389_v38 = vsel %vm450_vm1, %v2387_v18, %v2388_v28 }
  0xb4   : > { %4294 = vmatmul.mubr.msk.bf16.gmra.mrb[16].mxu1 %vm713_vm0, %v4918_v44  ;;  %v2370_v44 = vsel %vm450_vm1, %v2367_v16, %v2369_v32  ;;  %v2380_v16 = vrot.slane %v4007_v29, 1  ;;  %v2383_v32 = vrot.slane %v2192_v59, 1  ;;  %v2201_v29 = vunpack.c.l.bf16 %v3779_v34 }
  0xb5   : > { %4297 = vmatprep.mubr.msk.bf16.mxu1 %vm713_vm0, %v5600_v33  ;;  %v2530_v57 = vpack.c.bf16 %v2370_v44, %v2368_v24  ;;  %v3778_v24 = vld [vmem:[%s4829_s4 + $0xd8] ss:$16 sps:$4 sm:$0xff]   ;;  %v2197_v33 = vunpack.c.l.bf16 %v3775_v22  ;;  %v4015_v44 = vunpack.c.l.bf16 %v4057_v23  ;;  %v2401_v59 = vrot.slane %v4019_v47, 1 }
  0xb6   : > { %v2386_v19 = vsel %vm450_vm1, %v2383_v32, %v2385_v14  ;;  %v2200_v51 = vunpack.c.l.bf16 %v3778_v24  ;;  %v2204_v1 = vunpack.c.h.bf16 %v3778_v24  ;;  %v2399_v5 = vrot.slane %v2201_v29, 1  ;;  %v4062_v29 = vld [vmem:[%s4829_s4 + $0x120] sm:$0xff]  }
  0xb7   : > { %4434 = vmatmul.mubr.msk.bf16.gmra.mrb[20].mxu0 %vm713_vm0, %v2529_v56  ;;  %v2390_v56 = vrot.slane %v2196_v31, 1  ;;  %v2392_v58 = vrot.slane %v2197_v33, 1  ;;  %v2394_v0 = vrot.slane %v4015_v44, 1 }
  0xb8   : > { %4437 = vmatprep.mubr.msk.bf16.mxu0 %vm713_vm0, %v2530_v57  ;;  %v2534_v57 = vpack.c.bf16 %v2389_v38, %v2386_v19  ;;  %v2397_v52 = vrot.slane %v2200_v51, 1  ;;  %v2404_v45 = vrot.slane %v2204_v1, 1 }
  0xb9   : > { %v2391_v41 = vsel %vm450_vm1, %v2388_v28, %v2390_v56 }
  0xba   : > { %v2398_v27 = vsel %vm450_vm1, %v2395_v50, %v2397_v52  ;;  %v2400_v18 = vsel %vm450_vm1, %v2397_v52, %v2399_v5 }
  0xbc   : > { %4298 = vmatmul.mubr.msk.bf16.gmra.mrb[20].mxu1 %vm713_vm0, %v4765_v55 }
  0xbd   : > { %4301 = vmatprep.mubr.msk.bf16.mxu1 %vm713_vm0, %v4946_v15  ;;  %v3519_v15 = vcombine.low %v4949_v17, %v4971_v35  ;;  %v2382_v17 = vsel %vm450_vm1, %v2380_v16, %v2381_v30  ;;  %v2384_v35 = vsel %vm450_vm1, %v2381_v30, %v2383_v32  ;;  %v3787_v16 = vld [vmem:[%s4829_s4 + $0xfc] sm:$0x1]  ;;  %v4060_v30 = vld [vmem:[%s4829_s4 + $0x100] sm:$0xff]  }
  0xbe   : > { %v2533_v55 = vpack.c.bf16 %v2384_v35, %v2382_v17  ;;  %v4027_v24 = vunpack.c.l.bf16 %v4060_v30  ;;  %v4028_v31 = vunpack.c.h.bf16 %v4060_v30  ;;  %v2209_v17 = vunpack.c.l.bf16 %v3787_v16 }
  0xbf   : > { %4438 = vmatmul.mubr.msk.bf16.gmra.mrb[24].mxu0 %vm713_vm0, %v2531_v9  ;;  %v2406_v9 = vrot.slane %v2205_v2, 1  ;;  %v3795_v2 = vld [vmem:[%s4829_s4 + $0x11c] sm:$0x1] }
  0xc0   : > { %4441 = vmatprep.mubr.msk.bf16.mxu0 %vm713_vm0, %v2532_v10  ;;  %v3786_v10 = vld [vmem:[%s4829_s4 + $0xf8] ss:$16 sps:$4 sm:$0xff]   ;;  %v2413_v3 = vrot.slane %v2209_v17, 1  ;;  %v2415_v51 = vrot.slane %v4027_v24, 1  ;;  %v2217_v5 = vunpack.c.l.bf16 %v3795_v2 }
  0xc1   : > { %v2208_v23 = vunpack.c.l.bf16 %v3786_v10 }
  0xc2   : > { %v2427_v30 = vrot.slane %v2217_v5, 1 }
  0xc3   : > { %v2411_v38 = vrot.slane %v2208_v23, 1  ;;  %v3803_v23 = vld [vmem:[%s4829_s4 + $0x13c] sm:$0x1] }
  0xc4   : > { %4302 = vmatmul.mubr.msk.bf16.gmra.mrb[24].mxu1 %vm713_vm0, %v3519_v15  ;;  %v4059_v15 = vld [vmem:[%s4829_s4 + $0xf0] sm:$0xff]  }
  0xc5   : > { %4305 = vmatprep.mubr.msk.bf16.mxu1 %vm713_vm0, %v4974_v36  ;;  %v3522_v36 = vcombine.low %v4995_v6, %v4998_v7  ;;  %v2393_v6 = vsel %vm450_vm1, %v2390_v56, %v2392_v58  ;;  %v4020_v7 = vunpack.c.h.bf16 %v4058_v60  ;;  %v4023_v32 = vunpack.c.l.bf16 %v4059_v15  ;;  %v3791_v56 = vld [vmem:[%s4829_s4 + $0x10c] sm:$0x1] }
  0xc6   : > { %v2535_v11 = vpack.c.bf16 %v2393_v6, %v2391_v41  ;;  %v4024_v14 = vunpack.c.h.bf16 %v4059_v15  ;;  %v2212_v58 = vunpack.c.h.bf16 %v3786_v10  ;;  %v2213_v60 = vunpack.c.l.bf16 %v3791_v56 }
  0xc7   : > { %4442 = vmatmul.mubr.msk.bf16.gmra.mrb[28].mxu0 %vm713_vm0, %v2533_v55  ;;  %v2402_v20 = vrot.slane %v4020_v7, 1  ;;  %v2408_v44 = vrot.slane %v4023_v32, 1  ;;  %v2416_v55 = vrot.slane %v4028_v31, 1 }
  0xc8   : > { %4445 = vmatprep.mubr.msk.bf16.mxu0 %vm713_vm0, %v2534_v57  ;;  %v2409_v19 = vrot.slane %v4024_v14, 1  ;;  %v3794_v57 = vld [vmem:[%s4829_s4 + $0x118] ss:$16 sps:$4 sm:$0xff]   ;;  %v2418_v47 = vrot.slane %v2212_v58, 1  ;;  %v2420_v7 = vrot.slane %v2213_v60, 1 }
  0xc9   : > { %v2403_v28 = vsel %vm450_vm1, %v2401_v59, %v2402_v20  ;;  %v2405_v22 = vsel %vm450_vm1, %v2402_v20, %v2404_v45  ;;  %v2417_v52 = vsel %vm450_vm1, %v2415_v51, %v2416_v55  ;;  %v2216_v61 = vunpack.c.l.bf16 %v3794_v57 }
  0xca   : > { %v2537_v35 = vpack.c.bf16 %v2403_v28, %v2400_v18  ;;  %v2419_v59 = vsel %vm450_vm1, %v2416_v55, %v2418_v47  ;;  %v2220_v20 = vunpack.c.h.bf16 %v3794_v57  ;;  %v4063_v18 = vld [vmem:[%s4829_s4 + $0x130] sm:$0xff]  }
  0xcb   : > { %v4039_v24 = vunpack.c.l.bf16 %v4063_v18  ;;  %v4040_v31 = vunpack.c.h.bf16 %v4063_v18 }
  0xcc   : > { %4306 = vmatmul.mubr.msk.bf16.gmra.mrb[28].mxu1 %vm713_vm0, %v4992_v4  ;;  %v2396_v4 = vsel %vm450_vm1, %v2394_v0, %v2395_v50  ;;  %v2414_v50 = vsel %vm450_vm1, %v2411_v38, %v2413_v3  ;;  %v2432_v14 = vrot.slane %v2220_v20, 1  ;;  %v3531_v3 = vcombine.low %v5102_v26, %v5120_v62 }
  0xcd   : > { %4309 = vmatprep.mubr.msk.bf16.mxu1 %vm713_vm0, %v3522_v36  ;;  %v2536_v21 = vpack.c.bf16 %v2398_v27, %v2396_v4  ;;  %v4061_v36 = vld [vmem:[%s4829_s4 + $0x110] sm:$0xff]   ;;  %v2540_v6 = vpack.c.bf16 %v2417_v52, %v2414_v50  ;;  %v2425_v27 = vrot.slane %v2216_v61, 1  ;;  %v2436_v55 = vrot.slane %v4039_v24, 1 }
  0xce   : > { %v4031_v0 = vunpack.c.l.bf16 %v4061_v36  ;;  %v4032_v34 = vunpack.c.h.bf16 %v4061_v36  ;;  %v2437_v56 = vrot.slane %v4040_v31, 1  ;;  %v3534_v61 = vcombine.low %v5143_v39, %v5146_v43 }
  0xcf   : > { %4446 = vmatmul.mubr.msk.bf16.gmra.mrb[32].mxu0 %vm713_vm0, %v2535_v11  ;;  %v3799_v11 = vld [vmem:[%s4829_s4 + $0x12c] sm:$0x1]  ;;  %v2428_v17 = vsel %vm450_vm1, %v2425_v27, %v2427_v30 }
  0xd0   : > { %4449 = vmatprep.mubr.msk.bf16.mxu0 %vm713_vm0, %v2536_v21  ;;  %v2422_v1 = vrot.slane %v4031_v0, 1  ;;  %v2423_v4 = vrot.slane %v4032_v34, 1  ;;  %v4035_v21 = vunpack.c.l.bf16 %v4062_v29  ;;  %v2221_v15 = vunpack.c.l.bf16 %v3799_v11 }
  0xd1   : > { %v2438_v26 = vsel %vm450_vm1, %v2436_v55, %v2437_v56 }
  0xd2   : > { %v2429_v10 = vrot.slane %v4035_v21, 1  ;;  %v2434_v28 = vrot.slane %v2221_v15, 1 }
  0xd4   : > { %4310 = vmatmul.mubr.msk.bf16.gmra.mrb[32].mxu1 %vm713_vm0, %v5001_v8  ;;  %v2407_v8 = vsel %vm450_vm1, %v2404_v45, %v2406_v9  ;;  %v2426_v45 = vsel %vm450_vm1, %v2423_v4, %v2425_v27 }
  0xd5   : > { %4313 = vmatprep.mubr.msk.bf16.mxu1 %vm713_vm0, %v5029_v40  ;;  %v3525_v40 = vcombine.low %v5032_v48, %v5049_v12  ;;  %v2538_v33 = vpack.c.bf16 %v2407_v8, %v2405_v22  ;;  %v2410_v48 = vsel %vm450_vm1, %v2408_v44, %v2409_v19  ;;  %v2412_v12 = vsel %vm450_vm1, %v2409_v19, %v2411_v38  ;;  %v3802_v22 = vld [vmem:[%s4829_s4 + $0x138] ss:$16 sps:$4 sm:$0xff]   ;;  %v4064_v8 = vld [vmem:[%s4829_s4 + $0x140] sm:$0xff]  }
  0xd6   : > { %v2539_v41 = vpack.c.bf16 %v2412_v12, %v2410_v48  ;;  %v2435_v44 = vsel %vm450_vm1, %v2432_v14, %v2434_v28  ;;  %v4044_v19 = vunpack.c.h.bf16 %v4064_v8  ;;  %v2225_v38 = vunpack.c.l.bf16 %v3803_v23  ;;  %v3807_v12 = vld [vmem:[%s4829_s4 + $0x14c] sm:$0x1] }
  0xd7   : > { %4450 = vmatmul.mubr.msk.bf16.gmra.mrb[36].mxu0 %vm713_vm0, %v2537_v35  ;;  %v2228_v60 = vunpack.c.h.bf16 %v3802_v22  ;;  %v2229_v0 = vunpack.c.l.bf16 %v3807_v12 }
  0xd8   : > { %4453 = vmatprep.mubr.msk.bf16.mxu0 %vm713_vm0, %v2538_v33  ;;  %v2224_v33 = vunpack.c.l.bf16 %v3802_v22  ;;  %v2441_v57 = vrot.slane %v2225_v38, 1  ;;  %v2444_v48 = vrot.slane %v4044_v19, 1 }
  0xda   : > { %v2439_v36 = vrot.slane %v2224_v33, 1 }
  0xdc   : > { %4314 = vmatmul.mubr.msk.bf16.gmra.mrb[36].mxu1 %vm713_vm0, %v3525_v40  ;;  %v2440_v62 = vsel %vm450_vm1, %v2437_v56, %v2439_v36  ;;  %v2442_v50 = vsel %vm450_vm1, %v2439_v36, %v2441_v57 }
  0xdd   : > { %4317 = vmatprep.mubr.msk.bf16.mxu1 %vm713_vm0, %v5052_v13  ;;  %v3528_v13 = vcombine.low %v5073_v49, %v5077_v53  ;;  %v2421_v49 = vsel %vm450_vm1, %v2418_v47, %v2420_v7  ;;  %v4036_v53 = vunpack.c.h.bf16 %v4062_v29  ;;  %v2545_v34 = vpack.c.bf16 %v2440_v62, %v2438_v26 }
  0xde   : > { %v2541_v9 = vpack.c.bf16 %v2421_v49, %v2419_v59  ;;  %v2446_v47 = vrot.slane %v2228_v60, 1 }
  0xdf   : > { %4454 = vmatmul.mubr.msk.bf16.gmra.mrb[40].mxu0 %vm713_vm0, %v2539_v41  ;;  %v2430_v32 = vrot.slane %v4036_v53, 1 }
  0xe0   : > { %4457 = vmatprep.mubr.msk.bf16.mxu0 %vm713_vm0, %v2540_v6 }
  0xe1   : > { %v2431_v40 = vsel %vm450_vm1, %v2429_v10, %v2430_v32  ;;  %v2433_v35 = vsel %vm450_vm1, %v2430_v32, %v2432_v14 }
  0xe2   : > { %v2543_v51 = vpack.c.bf16 %v2431_v40, %v2428_v17 }
  0xe4   : > { %4318 = vmatmul.mubr.msk.bf16.gmra.mrb[40].mxu1 %vm713_vm0, %v5070_v42  ;;  %v2424_v42 = vsel %vm450_vm1, %v2422_v1, %v2423_v4 }
  0xe5   : > { %4321 = vmatprep.mubr.msk.bf16.mxu1 %vm713_vm0, %v3528_v13  ;;  %v2542_v16 = vpack.c.bf16 %v2426_v45, %v2424_v42  ;;  %v2448_v13 = vrot.slane %v2229_v0, 1 }
  0xe7   : > { %4458 = vmatmul.mubr.msk.bf16.gmra.mrb[44].mxu0 %vm713_vm0, %v2541_v9  ;;  %v2449_v6 = vsel %vm450_vm1, %v2446_v47, %v2448_v13 }
  0xe8   : > { %4461 = vmatprep.mubr.msk.bf16.mxu0 %vm713_vm0, %v2542_v16 }
  0xec   : > { %4322 = vmatmul.mubr.msk.bf16.gmra.mrb[44].mxu1 %vm713_vm0, %v5080_v54  ;;  %v4043_v54 = vunpack.c.l.bf16 %v4064_v8 }
  0xed   : > { %4325 = vmatprep.mubr.msk.bf16.mxu1 %vm713_vm0, %v5099_v25  ;;  %v2544_v25 = vpack.c.bf16 %v2435_v44, %v2433_v35 }
  0xee   : > { %v2443_v58 = vrot.slane %v4043_v54, 1 }
  0xef   : > { %4462 = vmatmul.mubr.msk.bf16.gmra.mrb[48].mxu0 %vm713_vm0, %v2543_v51 }
  0xf0   : > { %4465 = vmatprep.mubr.msk.bf16.mxu0 %vm713_vm0, %v2544_v25  ;;  %v2445_v52 = vsel %vm450_vm1, %v2443_v58, %v2444_v48 }
  0xf1   : > { %v2546_v41 = vpack.c.bf16 %v2445_v52, %v2442_v50 }
  0xf4   : > { %4326 = vmatmul.mubr.msk.bf16.gmra.mrb[48].mxu1 %vm713_vm0, %v3531_v3 }
  0xf5   : > { %4329 = vmatprep.mubr.msk.bf16.mxu1 %vm713_vm0, %v5123_v63  ;;  %v2447_v63 = vsel %vm450_vm1, %v2444_v48, %v2446_v47 }
  0xf6   : > { %v2547_v7 = vpack.c.bf16 %v2449_v6, %v2447_v63 }
  0xf7   : > { %4466 = vmatmul.mubr.msk.bf16.gmra.mrb[52].mxu0 %vm713_vm0, %v2545_v34 }
  0xf8   : > { %4469 = vmatprep.mubr.msk.bf16.mxu0 %vm713_vm0, %v2546_v41 }
  0xfc   : > { %4330 = vmatmul.mubr.msk.bf16.gmra.mrb[52].mxu1 %vm713_vm0, %v5140_v37  ;;  %v5405_v37 = vld [vmem:[%s5598_s2] ss:$0 sm:$0xff] }
  0xfd   : > { %4333 = vmatprep.mubr.msk.bf16.mxu1 %vm713_vm0, %v3534_v61 }
  0xff   : > { %4470 = vmatmul.mubr.msk.bf16.gmra.mrb[56].mxu0 %vm713_vm0, %v2547_v7 }
 0x104   : > { %4334 = vmatmul.mubr.msk.bf16.gmra.mrb[56].mxu1 %vm713_vm0, %v5149_v46 }
 0x162   : > { %v4415_v43 = vpop.f32.mrb[0].mxu0 }
 0x163   : > { %v2696_v4 = vpop.f32.mrb[1].mxu0 }
 0x164   : > { %v4416_v11 = vpop.f32.mrb[2].mxu0 }
 0x165   : > { %v2699_v49 = vpop.f32.mrb[3].mxu0 }
 0x167   : > { %v4279_v39 = vpop.f32.mrb[0].mxu1 }
 0x168   : > { %v4473_v29 = vadd.f32 %v4415_v43, %v4279_v39  ;;  %v1225_v1 = vpop.f32.mrb[1].mxu1 }
 0x169   : > { %v4474_v27 = vadd.f32 %v2696_v4, %v1225_v1  ;;  %v4280_v2 = vpop.f32.mrb[2].mxu1 }
 0x16a   : > { %v3004_v59 = vadd.f32 %v4473_v29, %v5405_v37  ;;  %v4475_v21 = vadd.f32 %v4416_v11, %v4280_v2  ;;  %v1228_v46 = vpop.f32.mrb[3].mxu1  ;;  %v4419_v14 = vpop.f32.mrb[4].mxu0 }
 0x16b   : > { %v3002_v53 = vadd.f32 %v4474_v27, %v5405_v37  ;;  %v4476_v5 = vadd.f32 %v2699_v49, %v1228_v46  ;;  %v2712_v23 = vpop.f32.mrb[5].mxu0 }
 0x16c   : > { %v3064_v20 = vmax.f32 %v3004_v59, 0.0  ;;  %v3005_v42 = vadd.f32 %v4475_v21, %v5405_v37  ;;  %v4420_v17 = vpop.f32.mrb[6].mxu0 }
 0x16d   : > { %v3062_v45 = vmax.f32 %v3002_v53, 0.0  ;;  %v3003_v15 = vadd.f32 %v4476_v5, %v5405_v37  ;;  %v2715_v44 = vpop.f32.mrb[7].mxu0 }
 0x16e   : > { %v3907_v9 = vpack.c.bf16 %v3064_v20, %v3064_v20  ;;  %v3065_v10 = vmax.f32 %v3005_v42, 0.0 }
 0x16f   : > { %v3905_v16 = vpack.c.bf16 %v3062_v45, %v3062_v45  ;;  %v3063_v30 = vmax.f32 %v3003_v15, 0.0  ;;  %v4283_v32 = vpop.f32.mrb[4].mxu1 }
 0x170   : > { %3386 = vst.msk [vmem:[%s5414_s30 + $0x8] sm:$0x3] %vm3385_vm2, %v3907_v9  ;;  %v3908_v18 = vpack.c.bf16 %v3065_v10, %v3065_v10  ;;  %v4477_v28 = vadd.f32 %v4419_v14, %v4283_v32  ;;  %v1241_v22 = vpop.f32.mrb[5].mxu1 }
 0x171   : > { %3383 = vst.msk [vmem:[%s5414_s30] sm:$0xf] %vm3382_vm3, %v3905_v16  ;;  %v3906_v8 = vpack.c.bf16 %v3063_v30, %v3063_v30  ;;  %v4478_v24 = vadd.f32 %v2712_v23, %v1241_v22  ;;  %v4284_v31 = vpop.f32.mrb[6].mxu1 }
 0x172   : > { %3387 = vst.msk [vmem:[%s5414_s30 + $0xc] sm:$0xf] %vm3382_vm3, %v3908_v18  ;;  %v3008_v40 = vadd.f32 %v4477_v28, %v5405_v37  ;;  %v4479_v35 = vadd.f32 %v4420_v17, %v4284_v31  ;;  %v1244_v33 = vpop.f32.mrb[7].mxu1  ;;  %v4423_v48 = vpop.f32.mrb[8].mxu0 }
 0x173   : > { %3384 = vst.msk [vmem:[%s5414_s30 + $0x4] sm:$0xf] %vm3382_vm3, %v3906_v8  ;;  %v3006_v54 = vadd.f32 %v4478_v24, %v5405_v37  ;;  %v4480_v19 = vadd.f32 %v2715_v44, %v1244_v33  ;;  %v2728_v60 = vpop.f32.mrb[9].mxu0 }
 0x174   : > { %v3068_v38 = vmax.f32 %v3008_v40, 0.0  ;;  %v3009_v3 = vadd.f32 %v4479_v35, %v5405_v37  ;;  %v4424_v34 = vpop.f32.mrb[10].mxu0 }
 0x175   : > { %v3066_v51 = vmax.f32 %v3006_v54, 0.0  ;;  %v3007_v25 = vadd.f32 %v4480_v19, %v5405_v37  ;;  %v2731_v13 = vpop.f32.mrb[11].mxu0 }
 0x176   : > { %v3911_v55 = vpack.c.bf16 %v3068_v38, %v3068_v38  ;;  %v3069_v56 = vmax.f32 %v3009_v3, 0.0 }
 0x177   : > { %v3909_v36 = vpack.c.bf16 %v3066_v51, %v3066_v51  ;;  %v3067_v57 = vmax.f32 %v3007_v25, 0.0  ;;  %v4287_v58 = vpop.f32.mrb[8].mxu1 }
 0x178   : > { %3390 = vst.msk [vmem:[%s5414_s30 + $0x18] sm:$0xf] %vm3382_vm3, %v3911_v55  ;;  %v3912_v12 = vpack.c.bf16 %v3069_v56, %v3069_v56  ;;  %v4481_v26 = vadd.f32 %v4423_v48, %v4287_v58  ;;  %v1257_v62 = vpop.f32.mrb[9].mxu1 }
 0x179   : > { %3388 = vst.msk [vmem:[%s5414_s30 + $0x10] sm:$0xf] %vm3382_vm3, %v3909_v36  ;;  %v3910_v0 = vpack.c.bf16 %v3067_v57, %v3067_v57  ;;  %v4482_v50 = vadd.f32 %v2728_v60, %v1257_v62  ;;  %v4288_v52 = vpop.f32.mrb[10].mxu1 }
 0x17a   : > { %3391 = vst.msk [vmem:[%s5414_s30 + $0x1c] sm:$0xf] %vm3382_vm3, %v3912_v12  ;;  %v3012_v61 = vadd.f32 %v4481_v26, %v5405_v37  ;;  %v4483_v41 = vadd.f32 %v4424_v34, %v4288_v52  ;;  %v1260_v47 = vpop.f32.mrb[11].mxu1  ;;  %v4427_v59 = vpop.f32.mrb[12].mxu0 }
 0x17b   : > { %3389 = vst.msk [vmem:[%s5414_s30 + $0x14] sm:$0x3] %vm3385_vm2, %v3910_v0  ;;  %v3010_v63 = vadd.f32 %v4482_v50, %v5405_v37  ;;  %v4484_v6 = vadd.f32 %v2731_v13, %v1260_v47  ;;  %v2744_v53 = vpop.f32.mrb[13].mxu0 }
 0x17c   : > { %v3072_v7 = vmax.f32 %v3012_v61, 0.0  ;;  %v3013_v39 = vadd.f32 %v4483_v41, %v5405_v37  ;;  %v4428_v45 = vpop.f32.mrb[14].mxu0 }
 0x17d   : > { %v3070_v43 = vmax.f32 %v3010_v63, 0.0  ;;  %v3011_v29 = vadd.f32 %v4484_v6, %v5405_v37  ;;  %v2747_v16 = vpop.f32.mrb[15].mxu0 }
 0x17e   : > { %v3915_v1 = vpack.c.bf16 %v3072_v7, %v3072_v7  ;;  %v3073_v4 = vmax.f32 %v3013_v39, 0.0 }
 0x17f   : > { %v3913_v27 = vpack.c.bf16 %v3070_v43, %v3070_v43  ;;  %v3071_v2 = vmax.f32 %v3011_v29, 0.0  ;;  %v4291_v11 = vpop.f32.mrb[12].mxu1 }
 0x180   : > { %3394 = vst.msk [vmem:[%s5414_s30 + $0x28] sm:$0xf] %vm3382_vm3, %v3915_v1  ;;  %v3916_v21 = vpack.c.bf16 %v3073_v4, %v3073_v4  ;;  %v4485_v46 = vadd.f32 %v4427_v59, %v4291_v11  ;;  %v1273_v49 = vpop.f32.mrb[13].mxu1 }
 0x181   : > { %3392 = vst.msk [vmem:[%s5414_s30 + $0x20] sm:$0x3] %vm3385_vm2, %v3913_v27  ;;  %v3914_v5 = vpack.c.bf16 %v3071_v2, %v3071_v2  ;;  %v4486_v20 = vadd.f32 %v2744_v53, %v1273_v49  ;;  %v4292_v42 = vpop.f32.mrb[14].mxu1 }
 0x182   : > { %3395 = vst.msk [vmem:[%s5414_s30 + $0x2c] sm:$0x3] %vm3385_vm2, %v3916_v21  ;;  %v3016_v15 = vadd.f32 %v4485_v46, %v5405_v37  ;;  %v4487_v9 = vadd.f32 %v4428_v45, %v4292_v42  ;;  %v1276_v10 = vpop.f32.mrb[15].mxu1  ;;  %v4431_v40 = vpop.f32.mrb[16].mxu0 }
 0x183   : > { %3393 = vst.msk [vmem:[%s5414_s30 + $0x24] sm:$0xf] %vm3382_vm3, %v3914_v5  ;;  %v3014_v30 = vadd.f32 %v4486_v20, %v5405_v37  ;;  %v4488_v32 = vadd.f32 %v2747_v16, %v1276_v10  ;;  %v2760_v54 = vpop.f32.mrb[17].mxu0 }
 0x184   : > { %v3076_v14 = vmax.f32 %v3016_v15, 0.0  ;;  %v3017_v18 = vadd.f32 %v4487_v9, %v5405_v37  ;;  %v4432_v51 = vpop.f32.mrb[18].mxu0 }
 0x185   : > { %v3074_v28 = vmax.f32 %v3014_v30, 0.0  ;;  %v3015_v22 = vadd.f32 %v4488_v32, %v5405_v37  ;;  %v2763_v36 = vpop.f32.mrb[19].mxu0 }
 0x186   : > { %v3919_v23 = vpack.c.bf16 %v3076_v14, %v3076_v14  ;;  %v3077_v8 = vmax.f32 %v3017_v18, 0.0 }
 0x187   : > { %v3917_v24 = vpack.c.bf16 %v3074_v28, %v3074_v28  ;;  %v3075_v31 = vmax.f32 %v3015_v22, 0.0  ;;  %v4295_v17 = vpop.f32.mrb[16].mxu1 }
 0x188   : > { %3398 = vst.msk [vmem:[%s5414_s30 + $0x38] sm:$0x3] %vm3385_vm2, %v3919_v23  ;;  %v3920_v35 = vpack.c.bf16 %v3077_v8, %v3077_v8  ;;  %v4489_v33 = vadd.f32 %v4431_v40, %v4295_v17  ;;  %v1289_v44 = vpop.f32.mrb[17].mxu1 }
 0x189   : > { %3396 = vst.msk [vmem:[%s5414_s30 + $0x30] sm:$0xf] %vm3382_vm3, %v3917_v24  ;;  %v3918_v19 = vpack.c.bf16 %v3075_v31, %v3075_v31  ;;  %v4490_v38 = vadd.f32 %v2760_v54, %v1289_v44  ;;  %v4296_v3 = vpop.f32.mrb[18].mxu1 }
 0x18a   : > { %3399 = vst.msk [vmem:[%s5414_s30 + $0x3c] sm:$0xf] %vm3382_vm3, %v3920_v35  ;;  %v3020_v25 = vadd.f32 %v4489_v33, %v5405_v37  ;;  %v4491_v55 = vadd.f32 %v4432_v51, %v4296_v3  ;;  %v1292_v56 = vpop.f32.mrb[19].mxu1  ;;  %v4435_v61 = vpop.f32.mrb[20].mxu0 }
 0x18b   : > { %3397 = vst.msk [vmem:[%s5414_s30 + $0x34] sm:$0xf] %vm3382_vm3, %v3918_v19  ;;  %v3018_v57 = vadd.f32 %v4490_v38, %v5405_v37  ;;  %v4492_v58 = vadd.f32 %v2763_v36, %v1292_v56  ;;  %v2776_v63 = vpop.f32.mrb[21].mxu0 }
 0x18c   : > { %v3080_v48 = vmax.f32 %v3020_v25, 0.0  ;;  %v3021_v12 = vadd.f32 %v4491_v55, %v5405_v37  ;;  %v4436_v43 = vpop.f32.mrb[22].mxu0 }
 0x18d   : > { %v3078_v26 = vmax.f32 %v3018_v57, 0.0  ;;  %v3019_v62 = vadd.f32 %v4492_v58, %v5405_v37  ;;  %v2779_v27 = vpop.f32.mrb[23].mxu0 }
 0x18e   : > { %v3923_v60 = vpack.c.bf16 %v3080_v48, %v3080_v48  ;;  %v3081_v0 = vmax.f32 %v3021_v12, 0.0 }
 0x18f   : > { %v3921_v50 = vpack.c.bf16 %v3078_v26, %v3078_v26  ;;  %v3079_v52 = vmax.f32 %v3019_v62, 0.0  ;;  %v4299_v34 = vpop.f32.mrb[20].mxu1 }
 0x190   : > { %3402 = vst.msk [vmem:[%s5414_s30 + $0x48] sm:$0xf] %vm3382_vm3, %v3923_v60  ;;  %v3924_v41 = vpack.c.bf16 %v3081_v0, %v3081_v0  ;;  %v4493_v47 = vadd.f32 %v4435_v61, %v4299_v34  ;;  %v1305_v13 = vpop.f32.mrb[21].mxu1 }
 0x191   : > { %3400 = vst.msk [vmem:[%s5414_s30 + $0x40] sm:$0xf] %vm3382_vm3, %v3921_v50  ;;  %v3922_v6 = vpack.c.bf16 %v3079_v52, %v3079_v52  ;;  %v4494_v7 = vadd.f32 %v2776_v63, %v1305_v13  ;;  %v4300_v39 = vpop.f32.mrb[22].mxu1 }
 0x192   : > { %3403 = vst.msk [vmem:[%s5414_s30 + $0x4c] sm:$0xf] %vm3382_vm3, %v3924_v41  ;;  %v3024_v29 = vadd.f32 %v4493_v47, %v5405_v37  ;;  %v4495_v1 = vadd.f32 %v4436_v43, %v4300_v39  ;;  %v1308_v4 = vpop.f32.mrb[23].mxu1  ;;  %v4439_v15 = vpop.f32.mrb[24].mxu0 }
 0x193   : > { %3401 = vst.msk [vmem:[%s5414_s30 + $0x44] sm:$0x3] %vm3385_vm2, %v3922_v6  ;;  %v3022_v2 = vadd.f32 %v4494_v7, %v5405_v37  ;;  %v4496_v11 = vadd.f32 %v2779_v27, %v1308_v4  ;;  %v2792_v30 = vpop.f32.mrb[25].mxu0 }
 0x194   : > { %v3084_v59 = vmax.f32 %v3024_v29, 0.0  ;;  %v3025_v21 = vadd.f32 %v4495_v1, %v5405_v37  ;;  %v4440_v28 = vpop.f32.mrb[26].mxu0 }
 0x195   : > { %v3082_v46 = vmax.f32 %v3022_v2, 0.0  ;;  %v3023_v49 = vadd.f32 %v4496_v11, %v5405_v37  ;;  %v2795_v24 = vpop.f32.mrb[27].mxu0 }
 0x196   : > { %v3927_v53 = vpack.c.bf16 %v3084_v59, %v3084_v59  ;;  %v3085_v5 = vmax.f32 %v3025_v21, 0.0 }
 0x197   : > { %v3925_v20 = vpack.c.bf16 %v3082_v46, %v3082_v46  ;;  %v3083_v42 = vmax.f32 %v3023_v49, 0.0  ;;  %v4303_v45 = vpop.f32.mrb[24].mxu1 }
 0x198   : > { %3406 = vst.msk [vmem:[%s5414_s30 + $0x58] sm:$0xf] %vm3382_vm3, %v3927_v53  ;;  %v3928_v9 = vpack.c.bf16 %v3085_v5, %v3085_v5  ;;  %v4497_v10 = vadd.f32 %v4439_v15, %v4303_v45  ;;  %v1321_v16 = vpop.f32.mrb[25].mxu1 }
 0x199   : > { %3404 = vst.msk [vmem:[%s5414_s30 + $0x50] sm:$0x3] %vm3385_vm2, %v3925_v20  ;;  %v3926_v32 = vpack.c.bf16 %v3083_v42, %v3083_v42  ;;  %v4498_v14 = vadd.f32 %v2792_v30, %v1321_v16  ;;  %v4304_v18 = vpop.f32.mrb[26].mxu1 }
 0x19a   : > { %3407 = vst.msk [vmem:[%s5414_s30 + $0x5c] sm:$0x3] %vm3385_vm2, %v3928_v9  ;;  %v3028_v22 = vadd.f32 %v4497_v10, %v5405_v37  ;;  %v4499_v23 = vadd.f32 %v4440_v28, %v4304_v18  ;;  %v1324_v8 = vpop.f32.mrb[27].mxu1  ;;  %v4443_v25 = vpop.f32.mrb[28].mxu0 }
 0x19b   : > { %3405 = vst.msk [vmem:[%s5414_s30 + $0x54] sm:$0xf] %vm3382_vm3, %v3926_v32  ;;  %v3026_v31 = vadd.f32 %v4498_v14, %v5405_v37  ;;  %v4500_v17 = vadd.f32 %v2795_v24, %v1324_v8  ;;  %v2808_v57 = vpop.f32.mrb[29].mxu0 }
 0x19c   : > { %v3088_v40 = vmax.f32 %v3028_v22, 0.0  ;;  %v3029_v35 = vadd.f32 %v4499_v23, %v5405_v37  ;;  %v4444_v26 = vpop.f32.mrb[30].mxu0 }
 0x19d   : > { %v3086_v33 = vmax.f32 %v3026_v31, 0.0  ;;  %v3027_v44 = vadd.f32 %v4500_v17, %v5405_v37  ;;  %v2811_v50 = vpop.f32.mrb[31].mxu0 }
 0x19e   : > { %v3931_v54 = vpack.c.bf16 %v3088_v40, %v3088_v40  ;;  %v3089_v19 = vmax.f32 %v3029_v35, 0.0 }
 0x19f   : > { %v3929_v38 = vpack.c.bf16 %v3086_v33, %v3086_v33  ;;  %v3087_v3 = vmax.f32 %v3027_v44, 0.0  ;;  %v4307_v51 = vpop.f32.mrb[28].mxu1 }
 0x1a0   : > { %3410 = vst.msk [vmem:[%s5414_s30 + $0x68] sm:$0x3] %vm3385_vm2, %v3931_v54  ;;  %v3932_v55 = vpack.c.bf16 %v3089_v19, %v3089_v19  ;;  %v4501_v56 = vadd.f32 %v4443_v25, %v4307_v51  ;;  %v1337_v36 = vpop.f32.mrb[29].mxu1 }
 0x1a1   : > { %3408 = vst.msk [vmem:[%s5414_s30 + $0x60] sm:$0xf] %vm3382_vm3, %v3929_v38  ;;  %v3930_v58 = vpack.c.bf16 %v3087_v3, %v3087_v3  ;;  %v4502_v48 = vadd.f32 %v2808_v57, %v1337_v36  ;;  %v4308_v12 = vpop.f32.mrb[30].mxu1 }
 0x1a2   : > { %3411 = vst.msk [vmem:[%s5414_s30 + $0x6c] sm:$0xf] %vm3382_vm3, %v3932_v55  ;;  %v3032_v62 = vadd.f32 %v4501_v56, %v5405_v37  ;;  %v4503_v60 = vadd.f32 %v4444_v26, %v4308_v12  ;;  %v1340_v0 = vpop.f32.mrb[31].mxu1  ;;  %v4447_v29 = vpop.f32.mrb[32].mxu0 }
 0x1a3   : > { %3409 = vst.msk [vmem:[%s5414_s30 + $0x64] sm:$0xf] %vm3382_vm3, %v3930_v58  ;;  %v3030_v52 = vadd.f32 %v4502_v48, %v5405_v37  ;;  %v4504_v34 = vadd.f32 %v2811_v50, %v1340_v0  ;;  %v2824_v2 = vpop.f32.mrb[33].mxu0 }
 0x1a4   : > { %v3092_v61 = vmax.f32 %v3032_v62, 0.0  ;;  %v3033_v41 = vadd.f32 %v4503_v60, %v5405_v37  ;;  %v4448_v46 = vpop.f32.mrb[34].mxu0 }
 0x1a5   : > { %v3090_v47 = vmax.f32 %v3030_v52, 0.0  ;;  %v3031_v13 = vadd.f32 %v4504_v34, %v5405_v37  ;;  %v2827_v20 = vpop.f32.mrb[35].mxu0 }
 0x1a6   : > { %v3935_v63 = vpack.c.bf16 %v3092_v61, %v3092_v61  ;;  %v3093_v6 = vmax.f32 %v3033_v41, 0.0 }
 0x1a7   : > { %v3933_v7 = vpack.c.bf16 %v3090_v47, %v3090_v47  ;;  %v3091_v39 = vmax.f32 %v3031_v13, 0.0  ;;  %v4311_v43 = vpop.f32.mrb[32].mxu1 }
 0x1a8   : > { %3414 = vst.msk [vmem:[%s5414_s30 + $0x78] sm:$0xf] %vm3382_vm3, %v3935_v63  ;;  %v3936_v1 = vpack.c.bf16 %v3093_v6, %v3093_v6  ;;  %v4505_v4 = vadd.f32 %v4447_v29, %v4311_v43  ;;  %v1353_v27 = vpop.f32.mrb[33].mxu1 }
 0x1a9   : > { %3412 = vst.msk [vmem:[%s5414_s30 + $0x70] sm:$0xf] %vm3382_vm3, %v3933_v7  ;;  %v3934_v11 = vpack.c.bf16 %v3091_v39, %v3091_v39  ;;  %v4506_v59 = vadd.f32 %v2824_v2, %v1353_v27  ;;  %v4312_v21 = vpop.f32.mrb[34].mxu1 }
 0x1aa   : > { %3415 = vst.msk [vmem:[%s5414_s30 + $0x7c] sm:$0xf] %vm3382_vm3, %v3936_v1  ;;  %v3036_v49 = vadd.f32 %v4505_v4, %v5405_v37  ;;  %v4507_v53 = vadd.f32 %v4448_v46, %v4312_v21  ;;  %v1356_v5 = vpop.f32.mrb[35].mxu1  ;;  %v4451_v22 = vpop.f32.mrb[36].mxu0 }
 0x1ab   : > { %3413 = vst.msk [vmem:[%s5414_s30 + $0x74] sm:$0x3] %vm3385_vm2, %v3934_v11  ;;  %v3034_v42 = vadd.f32 %v4506_v59, %v5405_v37  ;;  %v4508_v45 = vadd.f32 %v2827_v20, %v1356_v5  ;;  %v2840_v31 = vpop.f32.mrb[37].mxu0 }
 0x1ac   : > { %v3096_v15 = vmax.f32 %v3036_v49, 0.0  ;;  %v3037_v9 = vadd.f32 %v4507_v53, %v5405_v37  ;;  %v4452_v33 = vpop.f32.mrb[38].mxu0 }
 0x1ad   : > { %v3094_v10 = vmax.f32 %v3034_v42, 0.0  ;;  %v3035_v16 = vadd.f32 %v4508_v45, %v5405_v37  ;;  %v2843_v38 = vpop.f32.mrb[39].mxu0 }
 0x1ae   : > { %v3939_v30 = vpack.c.bf16 %v3096_v15, %v3096_v15  ;;  %v3097_v32 = vmax.f32 %v3037_v9, 0.0 }
 0x1af   : > { %v3937_v14 = vpack.c.bf16 %v3094_v10, %v3094_v10  ;;  %v3095_v18 = vmax.f32 %v3035_v16, 0.0  ;;  %v4315_v28 = vpop.f32.mrb[36].mxu1 }
 0x1b0   : > { %3418 = vst.msk [vmem:[%s5414_s30 + $0x88] sm:$0xf] %vm3382_vm3, %v3939_v30  ;;  %v3940_v23 = vpack.c.bf16 %v3097_v32, %v3097_v32  ;;  %v4509_v8 = vadd.f32 %v4451_v22, %v4315_v28  ;;  %v1369_v24 = vpop.f32.mrb[37].mxu1 }
 0x1b1   : > { %3416 = vst.msk [vmem:[%s5414_s30 + $0x80] sm:$0x3] %vm3385_vm2, %v3937_v14  ;;  %v3938_v17 = vpack.c.bf16 %v3095_v18, %v3095_v18  ;;  %v4510_v40 = vadd.f32 %v2840_v31, %v1369_v24  ;;  %v4316_v35 = vpop.f32.mrb[38].mxu1 }
 0x1b2   : > { %3419 = vst.msk [vmem:[%s5414_s30 + $0x8c] sm:$0x3] %vm3385_vm2, %v3940_v23  ;;  %v3040_v44 = vadd.f32 %v4509_v8, %v5405_v37  ;;  %v4511_v54 = vadd.f32 %v4452_v33, %v4316_v35  ;;  %v1372_v19 = vpop.f32.mrb[39].mxu1  ;;  %v4455_v62 = vpop.f32.mrb[40].mxu0 }
 0x1b3   : > { %3417 = vst.msk [vmem:[%s5414_s30 + $0x84] sm:$0xf] %vm3382_vm3, %v3938_v17  ;;  %v3038_v3 = vadd.f32 %v4510_v40, %v5405_v37  ;;  %v4512_v51 = vadd.f32 %v2843_v38, %v1372_v19  ;;  %v2856_v52 = vpop.f32.mrb[41].mxu0 }
 0x1b4   : > { %v3100_v25 = vmax.f32 %v3040_v44, 0.0  ;;  %v3041_v55 = vadd.f32 %v4511_v54, %v5405_v37  ;;  %v4456_v47 = vpop.f32.mrb[42].mxu0 }
 0x1b5   : > { %v3098_v56 = vmax.f32 %v3038_v3, 0.0  ;;  %v3039_v36 = vadd.f32 %v4512_v51, %v5405_v37  ;;  %v2859_v7 = vpop.f32.mrb[43].mxu0 }
 0x1b6   : > { %v3943_v57 = vpack.c.bf16 %v3100_v25, %v3100_v25  ;;  %v3101_v58 = vmax.f32 %v3041_v55, 0.0 }
 0x1b7   : > { %v3941_v48 = vpack.c.bf16 %v3098_v56, %v3098_v56  ;;  %v3099_v12 = vmax.f32 %v3039_v36, 0.0  ;;  %v4319_v26 = vpop.f32.mrb[40].mxu1 }
 0x1b8   : > { %3422 = vst.msk [vmem:[%s5414_s30 + $0x98] sm:$0x3] %vm3385_vm2, %v3943_v57  ;;  %v3944_v60 = vpack.c.bf16 %v3101_v58, %v3101_v58  ;;  %v4513_v0 = vadd.f32 %v4455_v62, %v4319_v26  ;;  %v1385_v50 = vpop.f32.mrb[41].mxu1 }
 0x1b9   : > { %3420 = vst.msk [vmem:[%s5414_s30 + $0x90] sm:$0xf] %vm3382_vm3, %v3941_v48  ;;  %v3942_v34 = vpack.c.bf16 %v3099_v12, %v3099_v12  ;;  %v4514_v61 = vadd.f32 %v2856_v52, %v1385_v50  ;;  %v4320_v41 = vpop.f32.mrb[42].mxu1 }
 0x1ba   : > { %3423 = vst.msk [vmem:[%s5414_s30 + $0x9c] sm:$0xf] %vm3382_vm3, %v3944_v60  ;;  %v3044_v13 = vadd.f32 %v4513_v0, %v5405_v37  ;;  %v4515_v63 = vadd.f32 %v4456_v47, %v4320_v41  ;;  %v1388_v6 = vpop.f32.mrb[43].mxu1  ;;  %v4459_v49 = vpop.f32.mrb[44].mxu0 }
 0x1bb   : > { %3421 = vst.msk [vmem:[%s5414_s30 + $0x94] sm:$0xf] %vm3382_vm3, %v3942_v34  ;;  %v3042_v39 = vadd.f32 %v4514_v61, %v5405_v37  ;;  %v4516_v43 = vadd.f32 %v2859_v7, %v1388_v6  ;;  %v2872_v42 = vpop.f32.mrb[45].mxu0 }
 0x1bc   : > { %v3104_v29 = vmax.f32 %v3044_v13, 0.0  ;;  %v3045_v1 = vadd.f32 %v4515_v63, %v5405_v37  ;;  %v4460_v10 = vpop.f32.mrb[46].mxu0 }
 0x1bd   : > { %v3102_v4 = vmax.f32 %v3042_v39, 0.0  ;;  %v3043_v27 = vadd.f32 %v4516_v43, %v5405_v37  ;;  %v2875_v14 = vpop.f32.mrb[47].mxu0 }
 0x1be   : > { %v3947_v2 = vpack.c.bf16 %v3104_v29, %v3104_v29  ;;  %v3105_v11 = vmax.f32 %v3045_v1, 0.0 }
 0x1bf   : > { %v3945_v59 = vpack.c.bf16 %v3102_v4, %v3102_v4  ;;  %v3103_v21 = vmax.f32 %v3043_v27, 0.0  ;;  %v4323_v46 = vpop.f32.mrb[44].mxu1 }
 0x1c0   : > { %3426 = vst.msk [vmem:[%s5414_s30 + $0xa8] sm:$0xf] %vm3382_vm3, %v3947_v2  ;;  %v3948_v53 = vpack.c.bf16 %v3105_v11, %v3105_v11  ;;  %v4517_v5 = vadd.f32 %v4459_v49, %v4323_v46  ;;  %v1401_v20 = vpop.f32.mrb[45].mxu1 }
 0x1c1   : > { %3424 = vst.msk [vmem:[%s5414_s30 + $0xa0] sm:$0xf] %vm3382_vm3, %v3945_v59  ;;  %v3946_v45 = vpack.c.bf16 %v3103_v21, %v3103_v21  ;;  %v4518_v15 = vadd.f32 %v2872_v42, %v1401_v20  ;;  %v4324_v9 = vpop.f32.mrb[46].mxu1 }
 0x1c2   : > { %3427 = vst.msk [vmem:[%s5414_s30 + $0xac] sm:$0xf] %vm3382_vm3, %v3948_v53  ;;  %v3048_v16 = vadd.f32 %v4517_v5, %v5405_v37  ;;  %v4519_v30 = vadd.f32 %v4460_v10, %v4324_v9  ;;  %v1404_v32 = vpop.f32.mrb[47].mxu1  ;;  %v4463_v44 = vpop.f32.mrb[48].mxu0 }
 0x1c3   : > { %3425 = vst.msk [vmem:[%s5414_s30 + $0xa4] sm:$0x3] %vm3385_vm2, %v3946_v45  ;;  %v3046_v18 = vadd.f32 %v4518_v15, %v5405_v37  ;;  %v4520_v28 = vadd.f32 %v2875_v14, %v1404_v32  ;;  %v2888_v3 = vpop.f32.mrb[49].mxu0 }
 0x1c4   : > { %v3108_v22 = vmax.f32 %v3048_v16, 0.0  ;;  %v3049_v23 = vadd.f32 %v4519_v30, %v5405_v37  ;;  %v4464_v56 = vpop.f32.mrb[50].mxu0 }
 0x1c5   : > { %v3106_v8 = vmax.f32 %v3046_v18, 0.0  ;;  %v3047_v24 = vadd.f32 %v4520_v28, %v5405_v37  ;;  %v2891_v48 = vpop.f32.mrb[51].mxu0 }
 0x1c6   : > { %v3951_v31 = vpack.c.bf16 %v3108_v22, %v3108_v22  ;;  %v3109_v17 = vmax.f32 %v3049_v23, 0.0 }
 0x1c7   : > { %v3949_v40 = vpack.c.bf16 %v3106_v8, %v3106_v8  ;;  %v3107_v35 = vmax.f32 %v3047_v24, 0.0  ;;  %v4327_v33 = vpop.f32.mrb[48].mxu1 }
 0x1c8   : > { %3430 = vst.msk [vmem:[%s5414_s30 + $0xb8] sm:$0xf] %vm3382_vm3, %v3951_v31  ;;  %v3952_v54 = vpack.c.bf16 %v3109_v17, %v3109_v17  ;;  %v4521_v19 = vadd.f32 %v4463_v44, %v4327_v33  ;;  %v1417_v38 = vpop.f32.mrb[49].mxu1 }
 0x1c9   : > { %3428 = vst.msk [vmem:[%s5414_s30 + $0xb0] sm:$0x3] %vm3385_vm2, %v3949_v40  ;;  %v3950_v51 = vpack.c.bf16 %v3107_v35, %v3107_v35  ;;  %v4522_v25 = vadd.f32 %v2888_v3, %v1417_v38  ;;  %v4328_v55 = vpop.f32.mrb[50].mxu1 }
 0x1ca   : > { %3431 = vst.msk [vmem:[%s5414_s30 + $0xbc] sm:$0x3] %vm3385_vm2, %v3952_v54  ;;  %v3052_v36 = vadd.f32 %v4521_v19, %v5405_v37  ;;  %v4523_v57 = vadd.f32 %v4464_v56, %v4328_v55  ;;  %v1420_v58 = vpop.f32.mrb[51].mxu1  ;;  %v4467_v13 = vpop.f32.mrb[52].mxu0 }
 0x1cb   : > { %3429 = vst.msk [vmem:[%s5414_s30 + $0xb4] sm:$0xf] %vm3382_vm3, %v3950_v51  ;;  %v3050_v12 = vadd.f32 %v4522_v25, %v5405_v37  ;;  %v4524_v26 = vadd.f32 %v2891_v48, %v1420_v58  ;;  %v2904_v39 = vpop.f32.mrb[53].mxu0 }
 0x1cc   : > { %v3112_v62 = vmax.f32 %v3052_v36, 0.0  ;;  %v3053_v60 = vadd.f32 %v4523_v57, %v5405_v37  ;;  %v4468_v4 = vpop.f32.mrb[54].mxu0 }
 0x1cd   : > { %v3110_v0 = vmax.f32 %v3050_v12, 0.0  ;;  %v3051_v50 = vadd.f32 %v4524_v26, %v5405_v37  ;;  %v2907_v59 = vpop.f32.mrb[55].mxu0 }
 0x1ce   : > { %v3955_v52 = vpack.c.bf16 %v3112_v62, %v3112_v62  ;;  %v3113_v34 = vmax.f32 %v3053_v60, 0.0 }
 0x1cf   : > { %v3953_v61 = vpack.c.bf16 %v3110_v0, %v3110_v0  ;;  %v3111_v41 = vmax.f32 %v3051_v50, 0.0  ;;  %v4331_v47 = vpop.f32.mrb[52].mxu1 }
 0x1d0   : > { %3434 = vst.msk [vmem:[%s5414_s30 + $0xc8] sm:$0x3] %vm3385_vm2, %v3955_v52  ;;  %v3956_v63 = vpack.c.bf16 %v3113_v34, %v3113_v34  ;;  %v4525_v6 = vadd.f32 %v4467_v13, %v4331_v47  ;;  %v1433_v7 = vpop.f32.mrb[53].mxu1 }
 0x1d1   : > { %3432 = vst.msk [vmem:[%s5414_s30 + $0xc0] sm:$0xf] %vm3382_vm3, %v3953_v61  ;;  %v3954_v43 = vpack.c.bf16 %v3111_v41, %v3111_v41  ;;  %v4526_v29 = vadd.f32 %v2904_v39, %v1433_v7  ;;  %v4332_v1 = vpop.f32.mrb[54].mxu1 }
 0x1d2   : > { %3435 = vst.msk [vmem:[%s5414_s30 + $0xcc] sm:$0xf] %vm3382_vm3, %v3956_v63  ;;  %v3056_v27 = vadd.f32 %v4525_v6, %v5405_v37  ;;  %v4527_v2 = vadd.f32 %v4468_v4, %v4332_v1  ;;  %v1436_v11 = vpop.f32.mrb[55].mxu1  ;;  %v4471_v16 = vpop.f32.mrb[56].mxu0 }
 0x1d3   : > { %3433 = vst.msk [vmem:[%s5414_s30 + $0xc4] sm:$0xf] %vm3382_vm3, %v3954_v43  ;;  %v3054_v21 = vadd.f32 %v4526_v29, %v5405_v37  ;;  %v4528_v46 = vadd.f32 %v2907_v59, %v1436_v11  ;;  %v2920_v18 = vpop.f32.mrb[57].mxu0 }
 0x1d4   : > { %v3116_v49 = vmax.f32 %v3056_v27, 0.0  ;;  %v3057_v53 = vadd.f32 %v4527_v2, %v5405_v37  ;;  %v4472_v8 = vpop.f32.mrb[58].mxu0 }
 0x1d5   : > { %v3114_v5 = vmax.f32 %v3054_v21, 0.0  ;;  %v3055_v20 = vadd.f32 %v4528_v46, %v5405_v37  ;;  %v2923_v40 = vpop.f32.mrb[59].mxu0 }
 0x1d6   : > { %v3959_v42 = vpack.c.bf16 %v3116_v49, %v3116_v49  ;;  %v3117_v45 = vmax.f32 %v3057_v53, 0.0 }
 0x1d7   : > { %v3957_v15 = vpack.c.bf16 %v3114_v5, %v3114_v5  ;;  %v3115_v9 = vmax.f32 %v3055_v20, 0.0  ;;  %v4335_v10 = vpop.f32.mrb[56].mxu1 }
 0x1d8   : > { %3438 = vst.msk [vmem:[%s5414_s30 + $0xd8] sm:$0xf] %vm3382_vm3, %v3959_v42  ;;  %v3960_v30 = vpack.c.bf16 %v3117_v45, %v3117_v45  ;;  %v4529_v32 = vadd.f32 %v4471_v16, %v4335_v10  ;;  %v1449_v14 = vpop.f32.mrb[57].mxu1 }
 0x1d9   : > { %3436 = vst.msk [vmem:[%s5414_s30 + $0xd0] sm:$0xf] %vm3382_vm3, %v3957_v15  ;;  %v3958_v28 = vpack.c.bf16 %v3115_v9, %v3115_v9  ;;  %v4530_v22 = vadd.f32 %v2920_v18, %v1449_v14  ;;  %v4336_v23 = vpop.f32.mrb[58].mxu1 }
 0x1da   : > { %3439 = vst.msk [vmem:[%s5414_s30 + $0xdc] sm:$0xf] %vm3382_vm3, %v3960_v30  ;;  %v3060_v24 = vadd.f32 %v4529_v32, %v5405_v37  ;;  %v4531_v31 = vadd.f32 %v4472_v8, %v4336_v23  ;;  %v1452_v17 = vpop.f32.mrb[59].mxu1 }
 0x1db   : > { %3437 = vst.msk [vmem:[%s5414_s30 + $0xd4] sm:$0x3] %vm3385_vm2, %v3958_v28  ;;  %v3058_v35 = vadd.f32 %v4530_v22, %v5405_v37  ;;  %v4532_v33 = vadd.f32 %v2923_v40, %v1452_v17 }
 0x1dc   : > { %v3120_v44 = vmax.f32 %v3060_v24, 0.0  ;;  %v3061_v54 = vadd.f32 %v4531_v31, %v5405_v37 }
 0x1dd   : > { %v3118_v19 = vmax.f32 %v3058_v35, 0.0  ;;  %v3059_v38 = vadd.f32 %v4532_v33, %v5405_v37 }
 0x1de   : > { %v3963_v3 = vpack.c.bf16 %v3120_v44, %v3120_v44  ;;  %v3121_v51 = vmax.f32 %v3061_v54, 0.0 }
 0x1df   : > { %v3961_v25 = vpack.c.bf16 %v3118_v19, %v3118_v19  ;;  %v3119_v55 = vmax.f32 %v3059_v38, 0.0 }
 0x1e0   : > { %3442 = vst.msk [vmem:[%s5414_s30 + $0xe8] sm:$0xf] %vm3382_vm3, %v3963_v3  ;;  %v3964_v56 = vpack.c.bf16 %v3121_v51, %v3121_v51 }
 0x1e1   : > { %3440 = vst.msk [vmem:[%s5414_s30 + $0xe0] sm:$0x3] %vm3385_vm2, %v3961_v25  ;;  %v3962_v36 = vpack.c.bf16 %v3119_v55, %v3119_v55 }
 0x1e2   : > { %3443 = vst.msk [vmem:[%s5414_s30 + $0xec] sm:$0x3] %vm3385_vm2, %v3964_v56 }
 0x1e3   : > { %3441 = vst.msk [vmem:[%s5414_s30 + $0xe4] sm:$0xf] %vm3382_vm3, %v3962_v36 }
 0x1e4 PF: > { %s13_s12 = sadd.s32 1, %s4772_s12  }
 0x1e5   : > { %p10_p4 = scmp.ge.s32.totalorder %s13_s12, 4  }
 0x1e7   :  { %12 = sbr.rel (!%p10_p4) target bundleno = 1 (0x1), region = 63 }

// kernel: policy_forward.6
= control target key start
LH: loop header
LB: loop body
LE: loop exit
PB: predicated region body
PF: predicated region fallthrough
CT: control target
= control target key end

     0   :  { %s2218_s12 = smov 0   ;;  %s2687_s0 = inlined_call_operand.vmem [shape: bf16[2,9,10,64], index: 0, kind: input, shape index: {}]   ;;  %s2688_s1 = inlined_call_operand.vmem [shape: bf16[576,64], index: 1, kind: input, shape index: {}]   ;;  %s2689_s2 = inlined_call_operand.vmem [shape: f32[1,64], index: 2, kind: input, shape index: {}]   ;;  %s2690_s3 = inlined_call_operand.vmem [shape: bf16[2,7,7,64], index: 3, kind: output, shape index: {}]  }
   0x1 LB: > { %s1726_s13 = sadd.s32 4294967295, %s2196_s12   ;;  %p1730_p0 = scmp.ge.s32.totalorder %s2196_s12, 1  ;;  %s2196_s12 = sphi %s2218_s12, %s13_s12  }
   0x2   : > { %p137_p1 = scmp.lt.s32.totalorder %s2196_s12, 3 }
   0x4   : > { %p138_p2 = pnand %p1730_p0, %p137_p1 }
   0x5   : > { %v2142_v0 = vld [vmem:[%s2688_s1 + $0x20] sm:$0xff] (!%p138_p2)   ;;  %p161_p3 = scmp.lt.s32.totalorder (!%p138_p2), %s1726_s13, 1  ;;  %v2144_v2 = vld [vmem:[%s2688_s1 + $0x28] sm:$0xff] (!%p138_p2)   ;;  %v2146_v4 = vld [vmem:[%s2688_s1 + $0x30] sm:$0xff] (!%p138_p2)   ;;  %vm226_vm0 = vcmask (!%p138_p2), 1046528   ;;  %vm291_vm1 = vcmask (!%p138_p2), 523264  }
   0x6   : > { %141 = sbr.rel (%p138_p2) target bundleno = 325 (0x145), region = 32  ;;  %v2143_v1 = vld [vmem:[%s2688_s1 + $0x80] sm:$0xff] (!%p138_p2)   ;;  %1948 = vmatprep.subr.bf16.mxu1 (!%p138_p2), %v2142_v0  ;;  %v2145_v3 = vld [vmem:[%s2688_s1 + $0x88] sm:$0xff] (!%p138_p2)   ;;  %v2147_v5 = vld [vmem:[%s2688_s1 + $0x90] sm:$0xff] (!%p138_p2)   ;;  %vm489_vm2 = vcmask (!%p138_p2), 1045504   ;;  %vm1647_vm3 = vcmask (!%p138_p2), 519168  }
   0x7   : > { %2012 = vmatprep.subr.bf16.mxu0 (!%p138_p2), %v2143_v1  ;;  %1949 = vmatpush3.bf16.msra.mxu1 (!%p138_p2), %v2142_v0  ;;  %v2148_v6 = vld [vmem:[%s2688_s1 + $0x38] sm:$0xff] (!%p138_p2)   ;;  %v2296_v32 = vld [vmem:[%s2688_s1] sm:$0xff] (!%p138_p2)   ;;  %vm1648_vm4 = vsmask.f32 (!%p138_p2), 3328 }
   0x8   : > { %2013 = vmatpush3.bf16.msra.mxu0 (!%p138_p2), %v2143_v1  ;;  %1950 = vmatprep.subr.bf16.mxu1 (!%p138_p2), %v2144_v2  ;;  %v2149_v7 = vld [vmem:[%s2688_s1 + $0x98] sm:$0xff] (!%p138_p2)   ;;  %v2302_v36 = vld [vmem:[%s2688_s1 + $0xa0] sm:$0xff] (!%p138_p2)   ;;  %vm2652_vm5 = vmand (!%p138_p2), %vm1647_vm3, %vm1648_vm4 }
   0x9   : > { %2014 = vmatprep.subr.bf16.mxu0 (!%p138_p2), %v2145_v3 }
   0xb   : > { %1951 = vmatpush3.bf16.msra.mxu1 (!%p138_p2), %v2144_v2 }
   0xc   : > { %2015 = vmatpush3.bf16.msra.mxu0 (!%p138_p2), %v2145_v3  ;;  %1952 = vmatprep.subr.bf16.mxu1 (!%p138_p2), %v2146_v4  ;;  %v2153_v3 = vld [vmem:[%s2688_s1 + $0x8] sm:$0xff] (!%p138_p2)  }
   0xd   : > { %s2694_s13 = smov (!%p161_p3, %s1726_s13), 1  ;;  %2016 = vmatprep.subr.bf16.mxu0 %v2147_v5 }
   0xe   : > { %s2132_s24 = smul.u32 72, %s2694_s13 }
   0xf   : > { %1953 = vmatpush3.bf16.msra.mxu1 %v2146_v4 }
  0x10   : > { %s2253_s4 = scalar_lea.vmem %s2687_s0, %s2132_s24  ;;  %2017 = vmatpush3.bf16.msra.mxu0 %v2147_v5  ;;  %1954 = vmatprep.subr.bf16.mxu1 %v2148_v6 }
  0x11   : > { %v2259_v8 = vld [vmem:[%s2253_s4] sm:$0xf]  ;;  %v2262_v9 = vld [vmem:[%s2253_s4 + $0x8] sm:$0xf]  ;;  %v2265_v10 = vld [vmem:[%s2253_s4 + $0x4] sm:$0x1]  ;;  %2018 = vmatprep.subr.bf16.mxu0 %v2149_v7 }
  0x12   : > { %v179_v11 = vunpack.c.l.bf16 %v2259_v8  ;;  %v180_v12 = vunpack.c.l.bf16 %v2262_v9  ;;  %v2270_v13 = vld [vmem:[%s2253_s4 + $0xc] sm:$0x1]  ;;  %v205_v14 = vunpack.c.l.bf16 %v2265_v10  ;;  %v1780_v15 = vld [vmem:[%s2253_s4 + $0x8] ss:$8 sps:$4 sm:$0xff]   ;;  %v1783_v18 = vld [vmem:[%s2253_s4 + $0x14] sm:$0x1] }
  0x13   : > { %v1781_v16 = vld [vmem:[%s2253_s4 + $0xc] sm:$0x1]  ;;  %v206_v17 = vunpack.c.l.bf16 %v2270_v13  ;;  %v785_v19 = vunpack.c.l.bf16 %v1780_v15  ;;  %v787_v21 = vunpack.c.h.bf16 %v1780_v15  ;;  %v2278_v22 = vld [vmem:[%s2253_s4 + $0x10] sm:$0xf]  ;;  %v2281_v23 = vld [vmem:[%s2253_s4 + $0x18] sm:$0xf]  ;;  %v788_v29 = vunpack.c.l.bf16 %v1783_v18  ;;  %1955 = vmatpush3.bf16.msra.mxu1 %v2148_v6 }
  0x14   : > { %v786_v20 = vunpack.c.l.bf16 %v1781_v16  ;;  %v227_v24 = vrot.slane %v179_v11, 1  ;;  %v228_v25 = vrot.slane %v205_v14, 1  ;;  %v230_v26 = vrot.slane %v180_v12, 1  ;;  %v2286_v27 = vld [vmem:[%s2253_s4 + $0x14] sm:$0x1]  ;;  %2019 = vmatpush3.bf16.msra.mxu0 %v2149_v7  ;;  %1964 = vmatprep.subr.bf16.mxu1 %v2296_v32 }
  0x15   : > { %v231_v28 = vrot.slane %v206_v17, 1  ;;  %v813_v30 = vrot.slane %v785_v19, 1  ;;  %v2291_v31 = vld [vmem:[%s2253_s4 + $0x1c] sm:$0x1]  ;;  %v816_v35 = vrot.slane %v787_v21, 1  ;;  %v817_v38 = vrot.slane %v788_v29, 1  ;;  %2028 = vmatprep.subr.bf16.mxu0 %v2302_v36 }
  0x16   : > { %v229_v33 = vsel %vm226_vm0, %v227_v24, %v228_v25  ;;  %v814_v34 = vrot.slane %v786_v20, 1  ;;  %v181_v39 = vunpack.c.l.bf16 %v2278_v22  ;;  %v1784_v40 = vld [vmem:[%s2253_s4 + $0x18] ss:$8 sps:$4 sm:$0xff]   ;;  %v182_v43 = vunpack.c.l.bf16 %v2281_v23  ;;  %v1785_v44 = vld [vmem:[%s2253_s4 + $0x1c] sm:$0x1] }
  0x17   : > { %v232_v37 = vsel %vm226_vm0, %v230_v26, %v231_v28  ;;  %v1787_v45 = vld [vmem:[%s2253_s4 + $0x24] sm:$0x1]  ;;  %v818_v46 = vsel %vm226_vm0, %v816_v35, %v817_v38  ;;  %v207_v47 = vunpack.c.l.bf16 %v2286_v27  ;;  %v208_v48 = vunpack.c.l.bf16 %v2291_v31  ;;  %v2327_v62 = vld [vmem:[%s2253_s4 + $0x20] sm:$0xf]  ;;  %v2330_v63 = vld [vmem:[%s2253_s4 + $0x28] sm:$0xf] }
  0x18   : > { %v263_v41 = vpack.c.bf16 %v232_v37, %v229_v33  ;;  %v815_v42 = vsel %vm226_vm0, %v813_v30, %v814_v34  ;;  %v233_v49 = vrot.slane %v181_v39, 1  ;;  %v236_v51 = vrot.slane %v182_v43, 1  ;;  %v2341_v5 = vld [vmem:[%s2253_s4 + $0x24] sm:$0x1]  ;;  %v2344_v6 = vld [vmem:[%s2253_s4 + $0x2c] sm:$0x1] }
  0x19   : > { %v849_v50 = vpack.c.bf16 %v818_v46, %v815_v42  ;;  %v789_v52 = vunpack.c.l.bf16 %v1784_v40  ;;  %v790_v53 = vunpack.c.l.bf16 %v1785_v44  ;;  %v2317_v54 = vrot.slane %v786_v20, 2  ;;  %v1788_v16 = vld [vmem:[%s2253_s4 + $0x28] ss:$8 sps:$4 sm:$0xff]   ;;  %v2349_v18 = vld [vmem:[%s2253_s4 + $0x2c] sm:$0x1]  ;;  %v2168_v27 = vld [vmem:[%s2688_s1 + $0x58] sm:$0xff]  }
  0x1a   : > { %1956 = vmatprep.mubr.msk.bf16.mxu1 %vm291_vm1, %v263_v41  ;;  %v2319_v55 = vrot.slane %v788_v29, 2  ;;  %v234_v56 = vrot.slane %v207_v47, 1  ;;  %v237_v57 = vrot.slane %v208_v48, 1  ;;  %v791_v58 = vunpack.c.h.bf16 %v1784_v40  ;;  %v2357_v25 = vld [vmem:[%s2253_s4 + $0x34] sm:$0x1]  ;;  %v2154_v29 = vld [vmem:[%s2688_s1 + $0xa8] sm:$0xff]  }
  0x1b   : > { %2020 = vmatprep.mubr.msk.bf16.mxu0 %vm291_vm1, %v849_v50  ;;  %v792_v59 = vunpack.c.l.bf16 %v1787_v45  ;;  %v819_v60 = vrot.slane %v789_v52, 1  ;;  %v820_v61 = vrot.slane %v790_v53, 1  ;;  %v2334_v2 = vrot.slane %v790_v53, 2  ;;  %v2360_v26 = vld [vmem:[%s2253_s4 + $0x30] sm:$0xf] }
  0x1c   : > { %v235_v0 = vsel %vm226_vm0, %v233_v49, %v234_v56  ;;  %v238_v1 = vsel %vm226_vm0, %v236_v51, %v237_v57  ;;  %v183_v4 = vunpack.c.l.bf16 %v2327_v62  ;;  %v822_v12 = vrot.slane %v791_v58, 1  ;;  %v2369_v35 = vld [vmem:[%s2253_s4 + $0x34] sm:$0x1]  ;;  %v2386_v46 = vld [vmem:[%s2253_s4 + $0x3c] sm:$0x1] }
  0x1d   : > { %v264_v7 = vpack.c.bf16 %v238_v1, %v235_v0  ;;  %v821_v11 = vsel %vm226_vm0, %v819_v60, %v820_v61  ;;  %v823_v15 = vrot.slane %v792_v59, 1  ;;  %v2351_v19 = vrot.slane %v792_v59, 2  ;;  %v2155_v41 = vld [vmem:[%s2688_s1 + $0x10] sm:$0xff]  }
  0x1e   : > { %v184_v20 = vunpack.c.l.bf16 %v2330_v63  ;;  %v209_v21 = vunpack.c.l.bf16 %v2341_v5  ;;  %v210_v24 = vunpack.c.l.bf16 %v2344_v6  ;;  %v239_v30 = vrot.slane %v183_v4, 1  ;;  %v2156_v53 = vld [vmem:[%s2688_s1 + $0xb0] sm:$0xff]  }
  0x1f   : > { %1957 = vmatmul.mubr.msk.bf16.vlgmr.msra.gmra.mrb[0].mxu1 %vm291_vm1, %v264_v7  ;;  %v824_v28 = vsel %vm226_vm0, %v822_v12, %v823_v15  ;;  %v793_v33 = vunpack.c.l.bf16 %v1788_v16  ;;  %v794_v34 = vunpack.c.l.bf16 %v2349_v18  ;;  %v795_v42 = vunpack.c.h.bf16 %v1788_v16 }
  0x20   : > { %v850_v37 = vpack.c.bf16 %v824_v28, %v821_v11  ;;  %1965 = vmatpush3.bf16.msra.mxu1 %v2296_v32  ;;  %v240_v38 = vrot.slane %v209_v21, 1  ;;  %v242_v39 = vrot.slane %v184_v20, 1  ;;  %v243_v40 = vrot.slane %v210_v24, 1  ;;  %v2383_v32 = vld [vmem:[%s2253_s4 + $0x10] ss:$40 sps:$4 sm:$0xff]  }
  0x21   : > { %1966 = vmatprep.subr.bf16.mxu1 %v2153_v3  ;;  %v796_v43 = vunpack.c.l.bf16 %v2357_v25  ;;  %v825_v44 = vrot.slane %v793_v33, 1  ;;  %v826_v45 = vrot.slane %v794_v34, 1  ;;  %v185_v51 = vunpack.c.l.bf16 %v2360_v26  ;;  %v2157_v28 = vld [vmem:[%s2688_s1 + $0x18] sm:$0xff]   ;;  %v2163_v25 = vld [vmem:[%s2688_s1 + $0xc8] sm:$0xff]  }
  0x22   : > { %2021 = vmatmul.mubr.msk.bf16.vlgmr.msra.gmra.mrb[0].mxu0 %vm291_vm1, %v850_v37  ;;  %v241_v49 = vsel %vm226_vm0, %v239_v30, %v240_v38  ;;  %v244_v50 = vsel %vm226_vm0, %v242_v39, %v243_v40  ;;  %v211_v52 = vunpack.c.l.bf16 %v2369_v35  ;;  %v828_v58 = vrot.slane %v795_v42, 1  ;;  %v1804_v30 = vld [vmem:[%s2253_s4 + $0x18] sm:$0xe]  ;;  %v1805_v38 = vld [vmem:[%s2253_s4 + $0x20] sm:$0xe] }
  0x23   : > { %2029 = vmatpush3.bf16.msra.mxu0 %v2302_v36  ;;  %v265_v56 = vpack.c.bf16 %v244_v50, %v241_v49  ;;  %v827_v57 = vsel %vm226_vm0, %v825_v44, %v826_v45  ;;  %v829_v59 = vrot.slane %v796_v43, 1  ;;  %v245_v60 = vrot.slane %v185_v51, 1  ;;  %v1802_v36 = vld [vmem:[%s2253_s4 + $0x8] sm:$0xe]  ;;  %v2530_v35 = vld [vmem:[%s2253_s4 + $0x1c] sm:$0x1] }
  0x24   : > { %2030 = vmatprep.subr.bf16.mxu0 %v2154_v29  ;;  %1967 = vmatpush3.bf16.msra.mxu1 %v2153_v3  ;;  %v246_v61 = vrot.slane %v211_v52, 1  ;;  %v797_v0 = vunpack.c.h.bf16 %v2383_v32  ;;  %v798_v1 = vunpack.c.l.bf16 %v2386_v46  ;;  %v1733_v7 = vcombine.low %v2259_v8, %v2262_v9  ;;  %v1803_v3 = vld [vmem:[%s2253_s4 + $0x10] sm:$0xe]  ;;  %v2158_v8 = vld [vmem:[%s2688_s1 + $0xb8] sm:$0xff]   ;;  %v1806_v51 = vld [vmem:[%s2253_s4 + $0x28] sm:$0xe] }
  0x25   : > { %1960 = vmatprep.mubr.msk.bf16.mxu1 %vm291_vm1, %v265_v56  ;;  %v830_v4 = vsel %vm226_vm0, %v828_v58, %v829_v59  ;;  %1968 = vmatprep.subr.bf16.mxu1 %v2155_v41  ;;  %v967_v11 = vunpack.c.l.bf16 %v1802_v36  ;;  %v968_v9 = vunpack.c.l.bf16 %v1803_v3  ;;  %v969_v39 = vunpack.c.l.bf16 %v1804_v30  ;;  %v1807_v56 = vld [vmem:[%s2253_s4 + $0x30] sm:$0xe]  ;;  %v2160_v58 = vld [vmem:[%s2688_s1 + $0x40] sm:$0xff]   ;;  %v1808_v36 = vld [vmem:[%s2253_s4 + $0x38] sm:$0xe] }
  0x26   : > { %v851_v12 = vpack.c.bf16 %v830_v4, %v827_v57  ;;  %v247_v15 = vsel %vm226_vm0, %v245_v60, %v246_v61  ;;  %v831_v16 = vrot.slane %v797_v0, 1  ;;  %v832_v20 = vrot.slane %v798_v1, 1  ;;  %v471_v46 = vld [vmem:[%s2253_s4 + $0x18] sm:$0xe] }
  0x27   : > { %2031 = vmatpush3.bf16.msra.mxu0 %v2154_v29  ;;  %v266_v33 = vpack.c.bf16 %v247_v15, %v247_v15  ;;  %v981_v37 = vrot.slane %v967_v11, 2  ;;  %v970_v42 = vunpack.c.l.bf16 %v1805_v38  ;;  %v984_v45 = vrot.slane %v968_v9, 2  ;;  %v469_v15 = vld [vmem:[%s2253_s4 + $0x8] sm:$0xe]  ;;  %v2167_v38 = vld [vmem:[%s2688_s1 + $0xd0] sm:$0xff]  }
  0x28   : > { %2024 = vmatprep.mubr.msk.bf16.mxu0 %vm291_vm1, %v851_v12  ;;  %v833_v40 = vsel %vm226_vm0, %v831_v16, %v832_v20  ;;  %2032 = vmatprep.subr.bf16.mxu0 %v2156_v53  ;;  %v987_v49 = vrot.slane %v969_v39, 2  ;;  %v972_v59 = vunpack.c.l.bf16 %v1807_v56  ;;  %v994_v0 = vrot.slane %v794_v34, 2  ;;  %v468_v12 = vld [vmem:[%s2253_s4] sm:$0xe]  ;;  %v2169_v56 = vld [vmem:[%s2688_s1 + $0xd8] sm:$0xff]  }
  0x29   : > { %1961 = vmatmul.mubr.msk.bf16.gmra.mrb[4].mxu1 %vm291_vm1, %v266_v33  ;;  %v852_v29 = vpack.c.bf16 %v833_v40, %v833_v40  ;;  %v983_v44 = vsel %vm489_vm2, %v981_v37, %v2317_v54  ;;  %v990_v50 = vrot.slane %v970_v42, 2  ;;  %v986_v57 = vsel %vm489_vm2, %v984_v45, %v2319_v55  ;;  %v2170_v42 = vld [vmem:[%s2253_s4 + $0x10] ss:$8 sps:$4 sm:$0xff]  }
  0x2a   : > { %1969 = vmatpush3.bf16.msra.mxu1 %v2155_v41  ;;  %1972 = vmatprep.mubr.msk.bf16.mxu1 %vm291_vm1, %v1733_v7  ;;  %v989_v54 = vsel %vm489_vm2, %v987_v49, %v2334_v2  ;;  %v971_v41 = vunpack.c.l.bf16 %v1806_v51  ;;  %v1017_v60 = vpack.c.bf16 %v986_v57, %v983_v44  ;;  %v997_v55 = vrot.slane %v796_v43, 2  ;;  %v2161_v2 = vld [vmem:[%s2688_s1 + $0xc0] sm:$0xff]   ;;  %v473_v44 = vld [vmem:[%s2253_s4 + $0x28] sm:$0xe] }
  0x2b   : > { %2025 = vmatmul.mubr.msk.bf16.gmra.mrb[4].mxu0 %vm291_vm1, %v852_v29  ;;  %1970 = vmatprep.subr.bf16.mxu1 %v2157_v28  ;;  %v992_v61 = vsel %vm489_vm2, %v990_v50, %v2351_v19  ;;  %v1734_v4 = vcombine.low %v2278_v22, %v2281_v23  ;;  %v996_v7 = vrot.slane %v972_v59, 2  ;;  %v973_v3 = vunpack.c.l.bf16 %v1808_v36  ;;  %v2162_v22 = vld [vmem:[%s2688_s1 + $0x48] sm:$0xff]   ;;  %v472_v29 = vld [vmem:[%s2253_s4 + $0x20] sm:$0xe] }
  0x2c   : > { %2033 = vmatpush3.bf16.msra.mxu0 %v2156_v53  ;;  %v993_v53 = vrot.slane %v971_v41, 2  ;;  %v491_v18 = vrot.slane %v205_v14, 2  ;;  %2036 = vmatprep.mubr.msk.bf16.mxu0 %vm291_vm1, %v1017_v60  ;;  %v1018_v19 = vpack.c.bf16 %v992_v61, %v989_v54  ;;  %v1735_v23 = vcombine.low %v2327_v62, %v2330_v63  ;;  %v2166_v63 = vld [vmem:[%s2688_s1 + $0x50] sm:$0xff]   ;;  %v2173_v41 = vld [vmem:[%s2688_s1 + $0xe0] sm:$0xff]  }
  0x2d   : > { %2034 = vmatprep.subr.bf16.mxu0 %v2158_v8  ;;  %v998_v14 = vsel %vm489_vm2, %v996_v7, %v997_v55  ;;  %v999_v34 = vrot.slane %v973_v3, 2  ;;  %v1000_v43 = vrot.slane %v798_v1, 2  ;;  %v494_v62 = vrot.slane %v206_v17, 2  ;;  %v474_v54 = vld [vmem:[%s2253_s4 + $0x30] sm:$0xe] }
  0x2e   : > { %1971 = vmatpush3.bf16.msra.mxu1 %v2157_v28  ;;  %v995_v10 = vsel %vm489_vm2, %v993_v53, %v994_v0  ;;  %v475_v16 = vunpack.c.l.bf16 %v468_v12  ;;  %v476_v20 = vunpack.c.l.bf16 %v469_v15  ;;  %v470_v28 = vld [vmem:[%s2253_s4 + $0x10] sm:$0xe]  ;;  %v478_v30 = vunpack.c.l.bf16 %v471_v46  ;;  %v2172_v36 = vld [vmem:[%s2253_s4 + $0x20] ss:$8 sps:$4 sm:$0xff]   ;;  %v2526_v3 = vld [vmem:[%s2253_s4 + $0x14] sm:$0x1] }
  0x2f   : > { %1980 = vmatprep.subr.bf16.mxu1 %v2160_v58  ;;  %v1019_v11 = vpack.c.bf16 %v998_v14, %v995_v10  ;;  %v477_v1 = vunpack.c.l.bf16 %v470_v28  ;;  %v497_v33 = vrot.slane %v207_v47, 2  ;;  %v1736_v9 = vcombine.low %v2360_v26, %v2360_v26  ;;  %v2176_v7 = vld [vmem:[%s2253_s4 + $0x30] ss:$8 sps:$4 sm:$0xff]   ;;  %v2540_v10 = vld [vmem:[%s2253_s4 + $0x24] sm:$0x1] }
  0x30   : > { %2035 = vmatpush3.bf16.msra.mxu0 %v2158_v8  ;;  %v490_v13 = vrot.slane %v475_v16, 2  ;;  %v493_v17 = vrot.slane %v476_v20, 2  ;;  %v500_v8 = vrot.slane %v208_v48, 2  ;;  %v1001_v37 = vsel %vm489_vm2, %v999_v34, %v1000_v43  ;;  %v1842_v14 = vld [vmem:[%s2253_s4 + $0x28] ss:$8 sps:$4 sm:$0xff]  }
  0x31   : > { %1973 = vmatmul.mubr.msk.bf16.vlgmr.msra.gmra.mrb[0].mxu1 %vm291_vm1, %v1734_v4  ;;  %2044 = vmatprep.subr.bf16.mxu0 %v2161_v2  ;;  %v496_v48 = vrot.slane %v477_v1, 2  ;;  %v499_v39 = vrot.slane %v478_v30, 2  ;;  %v1020_v26 = vpack.c.bf16 %v1001_v37, %v1001_v37  ;;  %v479_v45 = vunpack.c.l.bf16 %v472_v29  ;;  %v2547_v12 = vld [vmem:[%s2253_s4 + $0x2c] sm:$0x1]  ;;  %v2179_v16 = vld [vmem:[%s2688_s1 + $0xf0] sm:$0xff]  }
  0x32   : > { %1981 = vmatpush3.bf16.msra.mxu1 %v2160_v58  ;;  %1976 = vmatprep.mubr.msk.bf16.mxu1 %vm291_vm1, %v1735_v23  ;;  %v492_v31 = vsel %vm489_vm2, %v490_v13, %v491_v18  ;;  %v495_v47 = vsel %vm489_vm2, %v493_v17, %v494_v62  ;;  %v480_v49 = vunpack.c.l.bf16 %v473_v44  ;;  %v503_v50 = vrot.slane %v209_v21, 2  ;;  %v2171_v58 = vld [vmem:[%s2688_s1 + $0x60] sm:$0xff]   ;;  %v2182_v13 = vld [vmem:[%s2253_s4 + $0x8] ss:$8 sps:$4 sm:$0xff]  }
  0x33   : > { %2037 = vmatmul.mubr.msk.bf16.vlgmr.msra.gmra.mrb[0].mxu0 %vm291_vm1, %v1018_v19  ;;  %1982 = vmatprep.subr.bf16.mxu1 %v2162_v22  ;;  %v526_v40 = vpack.c.bf16 %v495_v47, %v492_v31  ;;  %v506_v51 = vrot.slane %v210_v24, 2  ;;  %v498_v57 = vsel %vm489_vm2, %v496_v48, %v497_v33  ;;  %v501_v5 = vsel %vm489_vm2, %v499_v39, %v500_v8  ;;  %v1838_v18 = vld [vmem:[%s2253_s4 + $0x18] ss:$8 sps:$4 sm:$0xff]   ;;  %v2175_v19 = vld [vmem:[%s2688_s1 + $0xe8] sm:$0xff]   ;;  %v1847_v48 = vld [vmem:[%s2253_s4 + $0x3c] sm:$0x1] }
  0x34   : > { %2045 = vmatpush3.bf16.msra.mxu0 %v2161_v2  ;;  %2040 = vmatprep.mubr.msk.bf16.mxu0 %vm291_vm1, %v1019_v11  ;;  %v502_v6 = vrot.slane %v479_v45, 2  ;;  %v505_v21 = vrot.slane %v480_v49, 2  ;;  %v481_v24 = vunpack.c.l.bf16 %v474_v54  ;;  %v509_v0 = vrot.slane %v211_v52, 2  ;;  %v2174_v2 = vld [vmem:[%s2688_s1 + $0x68] sm:$0xff]   ;;  %v2178_v17 = vld [vmem:[%s2253_s4 + $0x40] ss:$0 sps:$4 sm:$0xff]  }
  0x35   : > { %2046 = vmatprep.subr.bf16.mxu0 %v2163_v25  ;;  %v527_v55 = vpack.c.bf16 %v501_v5, %v498_v57  ;;  %v1276_v4 = vunpack.c.l.bf16 %v2383_v32  ;;  %v1277_v52 = vunpack.c.l.bf16 %v2526_v3  ;;  %v1278_v32 = vunpack.c.l.bf16 %v1838_v18  ;;  %v1846_v31 = vld [vmem:[%s2253_s4 + $0x38] ss:$8 sps:$4 sm:$0xff]   ;;  %v2576_v45 = vld [vmem:[%s2253_s4 + $0x44] sm:$0x1]  ;;  %v1858_v54 = vld [vmem:[%s2253_s4 + $0x10] sm:$0xe] }
  0x36   : > { %1983 = vmatpush3.bf16.msra.mxu1 %v2162_v22  ;;  %v504_v59 = vsel %vm489_vm2, %v502_v6, %v503_v50  ;;  %v507_v60 = vsel %vm489_vm2, %v505_v21, %v506_v51  ;;  %v508_v61 = vrot.slane %v481_v24, 2  ;;  %v1279_v23 = vunpack.c.l.bf16 %v2530_v35  ;;  %v2180_v47 = vld [vmem:[%s2688_s1 + $0x78] sm:$0xff]   ;;  %v2184_v5 = vld [vmem:[%s2688_s1 + $0x100] sm:$0xff]   ;;  %v1862_v24 = vld [vmem:[%s2253_s4 + $0x30] sm:$0xe] }
  0x37   : > { %1984 = vmatprep.subr.bf16.mxu1 %v2166_v63  ;;  %v528_v53 = vpack.c.bf16 %v507_v60, %v504_v59  ;;  %v1280_v34 = vunpack.c.h.bf16 %v1838_v18  ;;  %v1305_v43 = vrot.slane %v1277_v52, 1  ;;  %v1307_v11 = vrot.slane %v1278_v32, 1  ;;  %v2181_v49 = vld [vmem:[%s2688_s1 + $0xf8] sm:$0xff]   ;;  %v2188_v3 = vld [vmem:[%s2688_s1 + $0x110] sm:$0xff]  }
  0x38   : > { %2047 = vmatpush3.bf16.msra.mxu0 %v2163_v25  ;;  %v510_v22 = vsel %vm489_vm2, %v508_v61, %v509_v0  ;;  %v1304_v25 = vrot.slane %v1276_v4, 1  ;;  %v1281_v15 = vunpack.c.l.bf16 %v2540_v10  ;;  %v1282_v62 = vunpack.c.l.bf16 %v1842_v14  ;;  %v1859_v21 = vld [vmem:[%s2253_s4 + $0x18] sm:$0xe] }
  0x39   : > { %1977 = vmatmul.mubr.msk.bf16.gmra.mrb[8].mxu1 %vm291_vm1, %v1736_v9  ;;  %2048 = vmatprep.subr.bf16.mxu0 %v2167_v38  ;;  %v1308_v20 = vrot.slane %v1279_v23, 1  ;;  %v1283_v28 = vunpack.c.l.bf16 %v2547_v12  ;;  %v1284_v46 = vunpack.c.h.bf16 %v1842_v14  ;;  %v529_v1 = vpack.c.bf16 %v510_v22, %v510_v22  ;;  %v1863_v0 = vld [vmem:[%s2253_s4 + $0x38] sm:$0xe] }
  0x3a   : > { %1985 = vmatpush3.bf16.msra.mxu1 %v2166_v63  ;;  %1988 = vmatprep.mubr.msk.bf16.mxu1 %vm291_vm1, %v526_v40  ;;  %v2177_v63 = vld [vmem:[%s2688_s1 + $0x70] sm:$0xff]   ;;  %v1306_v30 = vsel %vm226_vm0, %v1304_v25, %v1305_v43  ;;  %v1310_v8 = vrot.slane %v1280_v34, 1  ;;  %v1311_v9 = vrot.slane %v1281_v15, 1  ;;  %v1313_v37 = vrot.slane %v1282_v62, 1  ;;  %v1864_v34 = vld [vmem:[%s2253_s4 + $0x40] sm:$0xe] }
  0x3b   : > { %2041 = vmatmul.mubr.msk.bf16.gmra.mrb[8].mxu0 %vm291_vm1, %v1020_v26  ;;  %1986 = vmatprep.subr.bf16.mxu1 %v2168_v27  ;;  %v1309_v33 = vsel %vm226_vm0, %v1307_v11, %v1308_v20  ;;  %v1286_v40 = vunpack.c.l.bf16 %v1846_v31  ;;  %v1316_v26 = vrot.slane %v1284_v46, 1  ;;  %v1287_v44 = vunpack.c.l.bf16 %v1847_v48  ;;  %v1860_v46 = vld [vmem:[%s2253_s4 + $0x20] sm:$0xe] }
  0x3c   : > { %2049 = vmatpush3.bf16.msra.mxu0 %v2167_v38  ;;  %2052 = vmatprep.mubr.msk.bf16.mxu0 %vm291_vm1, %v2170_v42  ;;  %v1314_v38 = vrot.slane %v1283_v28, 1  ;;  %v1288_v42 = vunpack.c.h.bf16 %v1846_v31  ;;  %v1340_v29 = vpack.c.bf16 %v1309_v33, %v1306_v30  ;;  %v1458_v61 = vunpack.c.l.bf16 %v1858_v54  ;;  %v2187_v30 = vld [vmem:[%s2253_s4 + $0x38] ss:$0 sps:$4 sm:$0xff]  }
  0x3d   : > { %2050 = vmatprep.subr.bf16.mxu0 %v2169_v56  ;;  %v1319_v51 = vrot.slane %v1286_v40, 1  ;;  %v1463_v18 = vunpack.c.l.bf16 %v1863_v0  ;;  %v1488_v14 = vrot.slane %v1287_v44, 2  ;;  %v1473_v11 = vrot.slane %v1277_v52, 2  ;;  %v2189_v31 = vld [vmem:[%s2688_s1 + $0x118] sm:$0xff]  }
  0x3e   : > { %1987 = vmatpush3.bf16.msra.mxu1 %v2168_v27  ;;  %v1845_v27 = vld [vmem:[%s2253_s4 + $0x34] sm:$0x1]  ;;  %v1322_v57 = vrot.slane %v1288_v42, 1  ;;  %v1315_v59 = vsel %vm226_vm0, %v1313_v37, %v1314_v38  ;;  %v1476_v62 = vrot.slane %v1279_v23, 2  ;;  %v1460_v23 = vunpack.c.l.bf16 %v1860_v46 }
  0x3f   : > { %1996 = vmatprep.subr.bf16.mxu1 %v2171_v58  ;;  %v1285_v39 = vunpack.c.l.bf16 %v1845_v27 }
  0x40   : > { %2051 = vmatpush3.bf16.msra.mxu0 %v2169_v56  ;;  %v1289_v56 = vunpack.c.l.bf16 %v2576_v45 }
  0x41   : > { %1989 = vmatmul.mubr.msk.bf16.vlgmr.msra.gmra.mrb[0].mxu1 %vm291_vm1, %v527_v55  ;;  %2060 = vmatprep.subr.bf16.mxu0 %v2173_v41  ;;  %v1317_v50 = vrot.slane %v1285_v39, 1  ;;  %v2183_v55 = vld [vmem:[%s2253_s4 + $0x18] ss:$8 sps:$4 sm:$0xff]   ;;  %v1485_v25 = vrot.slane %v1285_v39, 2  ;;  %v1478_v39 = vrot.slane %v1460_v23, 2 }
  0x42   : > { %1997 = vmatpush3.bf16.msra.mxu1 %v2171_v58  ;;  %1992 = vmatprep.mubr.msk.bf16.mxu1 %vm291_vm1, %v528_v53  ;;  %v1320_v58 = vrot.slane %v1287_v44, 1  ;;  %v1323_v6 = vrot.slane %v1289_v56, 1  ;;  %v1462_v53 = vunpack.c.l.bf16 %v1862_v24 }
  0x43   : > { %2053 = vmatmul.mubr.msk.bf16.vlgmr.msra.gmra.mrb[0].mxu0 %vm291_vm1, %v2172_v36  ;;  %1998 = vmatprep.subr.bf16.mxu1 %v2174_v2  ;;  %v1318_v60 = vsel %vm226_vm0, %v1316_v26, %v1317_v50  ;;  %v1482_v26 = vrot.slane %v1283_v28, 2 }
  0x44   : > { %2061 = vmatpush3.bf16.msra.mxu0 %v2173_v41  ;;  %2056 = vmatprep.mubr.msk.bf16.mxu0 %vm291_vm1, %v2176_v7  ;;  %v1312_v41 = vsel %vm226_vm0, %v1310_v8, %v1311_v9  ;;  %v1321_v36 = vsel %vm226_vm0, %v1319_v51, %v1320_v58  ;;  %v1324_v4 = vsel %vm226_vm0, %v1322_v57, %v1323_v6  ;;  %v2186_v7 = vld [vmem:[%s2253_s4 + $0x28] ss:$8 sps:$4 sm:$0xff]   ;;  %v1484_v22 = vrot.slane %v1462_v53, 2 }
  0x45   : > { %2062 = vmatprep.subr.bf16.mxu0 %v2175_v19  ;;  %v1341_v32 = vpack.c.bf16 %v1315_v59, %v1312_v41  ;;  %v1342_v43 = vpack.c.bf16 %v1321_v36, %v1318_v60  ;;  %v1491_v9 = vrot.slane %v1289_v56, 2  ;;  %v1343_v27 = vpack.c.bf16 %v1324_v4, %v1324_v4 }
  0x46   : > { %1999 = vmatpush3.bf16.msra.mxu1 %v2174_v2  ;;  %v1459_v2 = vunpack.c.l.bf16 %v1859_v21  ;;  %v1486_v35 = vsel %vm489_vm2, %v1484_v22, %v1485_v25 }
  0x47   : > { %2000 = vmatprep.subr.bf16.mxu1 %v2177_v63 }
  0x48   : > { %2063 = vmatpush3.bf16.msra.mxu0 %v2175_v19  ;;  %v2185_v19 = vld [vmem:[%s2688_s1 + $0x108] sm:$0xff]   ;;  %v1475_v20 = vrot.slane %v1459_v2, 2 }
  0x49   : > { %1993 = vmatmul.mubr.msk.bf16.gmra.mrb[12].mxu1 %vm291_vm1, %v529_v1  ;;  %2064 = vmatprep.subr.bf16.mxu0 %v2179_v16  ;;  %v1861_v1 = vld [vmem:[%s2253_s4 + $0x28] sm:$0xe]  ;;  %s2133_s4 = smul.u32 28, %s2694_s13 }
  0x4a   : > { %2001 = vmatpush3.bf16.msra.mxu1 %v2177_v63  ;;  %2004 = vmatprep.mubr.msk.bf16.mxu1 %vm291_vm1, %v2182_v13  ;;  %v1487_v63 = vrot.slane %v1463_v18, 2  ;;  %v1464_v13 = vunpack.c.l.bf16 %v1864_v34  ;;  %v1477_v8 = vsel %vm489_vm2, %v1475_v20, %v1476_v62 }
  0x4b   : > { %2057 = vmatmul.mubr.msk.bf16.gmra.mrb[12].mxu0 %vm291_vm1, %v2178_v17  ;;  %2002 = vmatprep.subr.bf16.mxu1 %v2180_v47  ;;  %v1461_v17 = vunpack.c.l.bf16 %v1861_v1  ;;  %s2649_s20 = scalar_lea.vmem %s2690_s3, %s2133_s4 }
  0x4c   : > { %2065 = vmatpush3.bf16.msra.mxu0 %v2179_v16  ;;  %2068 = vmatprep.mubr.msk.bf16.mxu0 %vm291_vm1, %v1340_v29  ;;  %v1472_v16 = vrot.slane %v1458_v61, 2  ;;  %v1489_v52 = vsel %vm489_vm2, %v1487_v63, %v1488_v14  ;;  %v1490_v38 = vrot.slane %v1464_v13, 2 }
  0x4d   : > { %2066 = vmatprep.subr.bf16.mxu0 %v2181_v49  ;;  %v1510_v37 = vpack.c.bf16 %v1489_v52, %v1486_v35  ;;  %v1481_v40 = vrot.slane %v1461_v17, 2 }
  0x4e   : > { %2003 = vmatpush3.bf16.msra.mxu1 %v2180_v47  ;;  %v1474_v33 = vsel %vm489_vm2, %v1472_v16, %v1473_v11  ;;  %v1479_v47 = vrot.slane %v1281_v15, 2  ;;  %v1492_v42 = vsel %vm489_vm2, %v1490_v38, %v1491_v9 }
  0x4f   : > { %2092 = vmatprep.subr.bf16.mxu1 %v2184_v5  ;;  %v1508_v48 = vpack.c.bf16 %v1477_v8, %v1474_v33  ;;  %v1483_v15 = vsel %vm489_vm2, %v1481_v40, %v1482_v26  ;;  %v1511_v12 = vpack.c.bf16 %v1492_v42, %v1492_v42  ;;  %v1873_v42 = vld [vmem:[%s2689_s2] ss:$0 sm:$0xff] }
  0x50   : > { %2067 = vmatpush3.bf16.msra.mxu0 %v2181_v49  ;;  %v1480_v10 = vsel %vm489_vm2, %v1478_v39, %v1479_v47 }
  0x51   : > { %2005 = vmatmul.mubr.msk.bf16.vlgmr.msra.gmra.mrb[0].mxu1 %vm291_vm1, %v2183_v55  ;;  %2076 = vmatprep.subr.bf16.mxu0 %v2184_v5  ;;  %v1509_v28 = vpack.c.bf16 %v1483_v15, %v1480_v10 }
  0x52   : > { %2096 = vmatpush3.bf16.msra.mxu1 %v2184_v5  ;;  %2008 = vmatprep.mubr.msk.bf16.mxu1 %vm291_vm1, %v2186_v7 }
  0x53   : > { %2069 = vmatmul.mubr.msk.bf16.vlgmr.msra.gmra.mrb[0].mxu0 %vm291_vm1, %v1341_v32  ;;  %2093 = vmatprep.subr.bf16.mxu1 %v2185_v19 }
  0x54   : > { %2077 = vmatpush3.bf16.msra.mxu0 %v2184_v5  ;;  %2072 = vmatprep.mubr.msk.bf16.mxu0 %vm291_vm1, %v1342_v43 }
  0x55   : > { %2078 = vmatprep.subr.bf16.mxu0 %v2185_v19 }
  0x56   : > { %2097 = vmatpush3.bf16.msra.mxu1 %v2185_v19 }
  0x57   : > { %2094 = vmatprep.subr.bf16.mxu1 %v2188_v3 }
  0x58   : > { %2079 = vmatpush3.bf16.msra.mxu0 %v2185_v19 }
  0x59   : > { %2009 = vmatmul.mubr.msk.bf16.gmra.mrb[16].mxu1 %vm291_vm1, %v2187_v30  ;;  %2080 = vmatprep.subr.bf16.mxu0 %v2188_v3 }
  0x5a   : > { %2098 = vmatpush3.bf16.msra.mxu1 %v2188_v3  ;;  %2088 = vmatprep.mubr.msk.bf16.mxu1 %vm291_vm1, %v1510_v37 }
  0x5b   : > { %2073 = vmatmul.mubr.msk.bf16.gmra.mrb[16].mxu0 %vm291_vm1, %v1343_v27  ;;  %2095 = vmatprep.subr.bf16.mxu1 %v2189_v31 }
  0x5c   : > { %2081 = vmatpush3.bf16.msra.mxu0 %v2188_v3  ;;  %2084 = vmatprep.mubr.msk.bf16.mxu0 %vm291_vm1, %v1508_v48 }
  0x5d   : > { %2082 = vmatprep.subr.bf16.mxu0 %v2189_v31 }
  0x5e   : > { %2099 = vmatpush3.bf16.msra.mxu1 %v2189_v31 }
  0x60   : > { %2083 = vmatpush3.bf16.msra.mxu0 %v2189_v31 }
  0x61   : > { %2089 = vmatmul.mubr.msk.bf16.vlgmr.msra.gmra.mrb[20].mxu1 %vm291_vm1, %v1511_v12 }
  0x63   : > { %2085 = vmatmul.mubr.msk.bf16.vlgmr.msra.gmra.mrb[0].mxu0 %vm291_vm1, %v1509_v28 }
  0xfc   : > { %v1962_v29 = vpop.f32.mrb[4].mxu1 }
  0xfd   : > { %v354_v44 = vpop.f32.mrb[5].mxu1 }
  0xfe   : > { %v2026_v45 = vpop.f32.mrb[4].mxu0  ;;  %v1963_v49 = vpop.f32.mrb[6].mxu1 }
  0xff   : > { %v939_v50 = vpop.f32.mrb[5].mxu0  ;;  %v357_v51 = vpop.f32.mrb[7].mxu1 }
 0x100   : > { %v2027_v56 = vpop.f32.mrb[6].mxu0 }
 0x101   : > { %v942_v57 = vpop.f32.mrb[7].mxu0 }
 0x10c   : > { %v1978_v58 = vpop.f32.mrb[8].mxu1 }
 0x10d   : > { %v463_v54 = vadd.f32 %v1978_v58, %v1962_v29  ;;  %v454_v5 = vpop.f32.mrb[9].mxu1 }
 0x10e   : > { %v2042_v6 = vpop.f32.mrb[8].mxu0  ;;  %v455_v21 = vadd.f32 %v454_v5, %v354_v44  ;;  %v1979_v24 = vpop.f32.mrb[10].mxu1 }
 0x10f   : > { %v1107_v41 = vpop.f32.mrb[9].mxu0  ;;  %v457_v59 = vpop.f32.mrb[11].mxu1 }
 0x110   : > { %v2043_v60 = vpop.f32.mrb[10].mxu0  ;;  %v458_v61 = vadd.f32 %v457_v59, %v357_v51 }
 0x111   : > { %v1110_v0 = vpop.f32.mrb[11].mxu0 }
 0x11c   : > { %v1994_v55 = vpop.f32.mrb[12].mxu1 }
 0x11d   : > { %v636_v36 = vadd.f32 %v1994_v55, %v463_v54  ;;  %v616_v4 = vpop.f32.mrb[13].mxu1 }
 0x11e   : > { %v2058_v2 = vpop.f32.mrb[12].mxu0  ;;  %v634_v53 = vadd.f32 %v616_v4, %v455_v21  ;;  %v1995_v7 = vpop.f32.mrb[14].mxu1 }
 0x11f   : > { %v1241_v18 = vpop.f32.mrb[13].mxu0  ;;  %v619_v32 = vpop.f32.mrb[15].mxu1 }
 0x120   : > { %v2059_v19 = vpop.f32.mrb[14].mxu0  ;;  %v635_v22 = vadd.f32 %v619_v32, %v458_v61  ;;  %v1656_v61 = vld [vmem:[%s2649_s20 + $0x8] sm:$0xf]  ;;  %v1662_v32 = vld [vmem:[%s2649_s20 + $0x10] sm:$0xf] }
 0x121   : > { %v1244_v25 = vpop.f32.mrb[15].mxu0 }
 0x124   : > { %v2006_v14 = vpop.f32.mrb[0].mxu1 }
 0x125   : > { %v734_v34 = vpop.f32.mrb[1].mxu1 }
 0x126   : > { %v2007_v43 = vpop.f32.mrb[2].mxu1 }
 0x127   : > { %v737_v11 = vpop.f32.mrb[3].mxu1 }
 0x12c   : > { %v2010_v62 = vpop.f32.mrb[16].mxu1 }
 0x12d   : > { %v770_v63 = vadd.f32 %v2010_v62, %v636_v36  ;;  %v750_v16 = vpop.f32.mrb[17].mxu1 }
 0x12e   : > { %v2074_v20 = vpop.f32.mrb[16].mxu0  ;;  %v768_v46 = vadd.f32 %v750_v16, %v634_v53  ;;  %v2011_v1 = vpop.f32.mrb[18].mxu1  ;;  %v1653_v16 = vld [vmem:[%s2649_s20 + $0x4] sm:$0xf] }
 0x12f   : > { %v959_v13 = vadd.f32 %v2026_v45, %v770_v63  ;;  %v1430_v3 = vpop.f32.mrb[17].mxu0  ;;  %v753_v35 = vpop.f32.mrb[19].mxu1 }
 0x130   : > { %v957_v52 = vadd.f32 %v939_v50, %v768_v46  ;;  %v2075_v23 = vpop.f32.mrb[18].mxu0  ;;  %v769_v17 = vadd.f32 %v753_v35, %v635_v22 }
 0x131   : > { %v1127_v30 = vadd.f32 %v2042_v6, %v959_v13  ;;  %v1433_v33 = vpop.f32.mrb[19].mxu0 }
 0x132   : > { %v1125_v8 = vadd.f32 %v1107_v41, %v957_v52  ;;  %v958_v9 = vadd.f32 %v942_v57, %v769_v17 }
 0x133   : > { %v1261_v37 = vadd.f32 %v2058_v2, %v1127_v30 }
 0x134   : > { %v1259_v38 = vadd.f32 %v1241_v18, %v1125_v8  ;;  %v1126_v27 = vadd.f32 %v1110_v0, %v958_v9  ;;  %v2090_v31 = vpop.f32.mrb[20].mxu1  ;;  %v1668_v0 = vld [vmem:[%s2649_s20 + $0x18] sm:$0xf]  ;;  %v1650_v18 = vld [vmem:[%s2649_s20] sm:$0xf] }
 0x135   : > { %v1450_v47 = vadd.f32 %v2074_v20, %v1261_v37  ;;  %v1598_v48 = vpop.f32.mrb[21].mxu1  ;;  %v1665_v20 = vld [vmem:[%s2649_s20 + $0x14] sm:$0xf] }
 0x136   : > { %v1448_v39 = vadd.f32 %v1430_v3, %v1259_v38  ;;  %v1260_v40 = vadd.f32 %v1244_v25, %v1126_v27  ;;  %v2086_v26 = vpop.f32.mrb[0].mxu0  ;;  %v2091_v10 = vpop.f32.mrb[22].mxu1 }
 0x137   : > { %v2100_v15 = vadd.f32 %v2086_v26, %v2006_v14  ;;  %v1618_v12 = vadd.f32 %v2090_v31, %v1450_v47  ;;  %v1582_v28 = vpop.f32.mrb[1].mxu0  ;;  %v1601_v29 = vpop.f32.mrb[23].mxu1  ;;  %v1659_v14 = vld [vmem:[%s2649_s20 + $0xc] sm:$0xf] }
 0x138   : > { %v1449_v44 = vadd.f32 %v1433_v33, %v1260_v40  ;;  %v2101_v45 = vadd.f32 %v1582_v28, %v734_v34  ;;  %v1616_v49 = vadd.f32 %v1598_v48, %v1448_v39  ;;  %v2087_v50 = vpop.f32.mrb[2].mxu0 }
 0x139   : > { %v1628_v51 = vadd.f32 %v2100_v15, %v1873_v42  ;;  %v1632_v56 = vadd.f32 %v1873_v42, %v1618_v12  ;;  %v2102_v57 = vadd.f32 %v2087_v50, %v2007_v43  ;;  %v1585_v58 = vpop.f32.mrb[3].mxu0 }
 0x13a   : > { %v1626_v54 = vadd.f32 %v2101_v45, %v1873_v42  ;;  %v1630_v5 = vadd.f32 %v1873_v42, %v1616_v49  ;;  %v2103_v6 = vadd.f32 %v1585_v58, %v737_v11  ;;  %v1617_v21 = vadd.f32 %v1601_v29, %v1449_v44 }
 0x13b   : > { %v1635_v24 = vmax.f32 %v1628_v51, 0.0  ;;  %v1639_v41 = vmax.f32 %v1632_v56, 0.0  ;;  %v1629_v59 = vadd.f32 %v2102_v57, %v1873_v42 }
 0x13c   : > { %v1633_v55 = vmax.f32 %v1626_v54, 0.0  ;;  %v1637_v36 = vmax.f32 %v1630_v5, 0.0  ;;  %v1627_v4 = vadd.f32 %v2103_v6, %v1873_v42  ;;  %v1631_v2 = vadd.f32 %v1873_v42, %v1617_v21 }
 0x13d   : > { %v1642_v53 = vpack.c.bf16 %v1635_v24, %v1635_v24  ;;  %v1646_v7 = vpack.c.bf16 %v1639_v41, %v1639_v41  ;;  %v1636_v19 = vmax.f32 %v1629_v59, 0.0 }
 0x13e   : > { %v1640_v22 = vpack.c.bf16 %v1633_v55, %v1633_v55  ;;  %v1644_v25 = vpack.c.bf16 %v1637_v36, %v1637_v36  ;;  %v1634_v34 = vmax.f32 %v1627_v4, 0.0  ;;  %v1638_v43 = vmax.f32 %v1631_v2, 0.0 }
 0x13f   : > { %v1657_v11 = vsel %vm2652_vm5, %v1642_v53, %v1656_v61  ;;  %v1669_v62 = vsel %vm2652_vm5, %v1646_v7, %v1668_v0  ;;  %v1643_v63 = vpack.c.bf16 %v1636_v19, %v1636_v19 }
 0x140   : > { %1658 = vst [vmem:[%s2649_s20 + $0x8] sm:$0xf] %v1657_v11  ;;  %1670 = vst [vmem:[%s2649_s20 + $0x18] sm:$0xf] %v1669_v62  ;;  %v1651_v46 = vsel %vm2652_vm5, %v1640_v22, %v1650_v18  ;;  %v1663_v1 = vsel %vm2652_vm5, %v1644_v25, %v1662_v32  ;;  %v1641_v13 = vpack.c.bf16 %v1634_v34, %v1634_v34 }
 0x141   : > { %v1645_v3 = vpack.c.bf16 %v1638_v43, %v1638_v43  ;;  %1652 = vst [vmem:[%s2649_s20] sm:$0xf] %v1651_v46  ;;  %1664 = vst [vmem:[%s2649_s20 + $0x10] sm:$0xf] %v1663_v1  ;;  %v1660_v35 = vsel %vm2652_vm5, %v1643_v63, %v1659_v14 }
 0x142   : > { %1661 = vst [vmem:[%s2649_s20 + $0xc] sm:$0xf] %v1660_v35  ;;  %v1654_v52 = vsel %vm2652_vm5, %v1641_v13, %v1653_v16 }
 0x143   : > { %v1666_v23 = vsel %vm2652_vm5, %v1645_v3, %v1665_v20  ;;  %1655 = vst [vmem:[%s2649_s20 + $0x4] sm:$0xf] %v1654_v52 }
 0x144   : > { %1667 = vst [vmem:[%s2649_s20 + $0x14] sm:$0xf] %v1666_v23 }
 0x145 PF: > { %s13_s12 = sadd.s32 1, %s2196_s12  }
 0x146   : > { %p10_p4 = scmp.ge.s32.totalorder %s13_s12, 4  }
 0x148   :  { %12 = sbr.rel (!%p10_p4) target bundleno = 1 (0x1), region = 64 }

// kernel: policy_forward.5
= control target key start
LH: loop header
LB: loop body
LE: loop exit
PB: predicated region body
PF: predicated region fallthrough
CT: control target
= control target key end

     0   :  { %s1994_s12 = smov 0   ;;  %s2597_s0 = inlined_call_operand.vmem [shape: bf16[2,10,17,128], index: 0, kind: input, shape index: {}]   ;;  %s2598_s1 = inlined_call_operand.vmem [shape: bf16[512,64], index: 1, kind: input, shape index: {}]   ;;  %s2599_s2 = inlined_call_operand.vmem [shape: f32[1,64], index: 2, kind: input, shape index: {}]   ;;  %s2600_s3 = inlined_call_operand.vmem [shape: bf16[2,9,9,64], index: 3, kind: output, shape index: {}]  }
   0x1 LB: > { %s1456_s13 = sadd.s32 4294967295, %s1970_s12   ;;  %p1460_p0 = scmp.ge.s32.totalorder %s1970_s12, 1  ;;  %s1970_s12 = sphi %s1994_s12, %s13_s12  }
   0x2   : > { %p137_p1 = scmp.lt.s32.totalorder %s1970_s12, 3 }
   0x4   : > { %p138_p2 = pnand %p1460_p0, %p137_p1 }
   0x5   : > { %v1905_v0 = vld [vmem:[%s2598_s1 + $0x40] sm:$0xff] (!%p138_p2)   ;;  %v1972_v1 = vmov (!%p138_p2), 0.0   ;;  %v1907_v3 = vld [vmem:[%s2598_s1 + $0x48] sm:$0xff] (!%p138_p2)   ;;  %vm1973_vm0 = vmmov (!%p138_p2), 0   ;;  %p161_p3 = scmp.lt.s32.totalorder (!%p138_p2), %s1456_s13, 1  ;;  %v1909_v5 = vld [vmem:[%s2598_s1 + $0x50] sm:$0xff] (!%p138_p2)  }
   0x6   : > { %141 = sbr.rel (%p138_p2) target bundleno = 400 (0x190), region = 32  ;;  %1685 = vmatprep.subr.bf16.mxu0 (!%p138_p2), %v1972_v1  ;;  %1737 = vmatprep.subr.bf16.mxu1 (!%p138_p2), %v1972_v1  ;;  %v1906_v2 = vld [vmem:[%s2598_s1] sm:$0xff] (!%p138_p2)   ;;  %v1908_v4 = vld [vmem:[%s2598_s1 + $0x8] sm:$0xff] (!%p138_p2)   ;;  %v1910_v6 = vld [vmem:[%s2598_s1 + $0x10] sm:$0xff] (!%p138_p2)   ;;  %vm278_vm1 = vcmask (!%p138_p2), 1046528   ;;  %vm1363_vm2 = vcmask (!%p138_p2), 516096  }
   0x7   : > { %1686 = vmatpush3.bf16.msra.mxu0 (!%p138_p2), %v1905_v0  ;;  %1701 = vmatprep.mubr.msk.bf16.mxu0 (!%p138_p2), %vm1973_vm0, %v1972_v1  ;;  %v1911_v7 = vld [vmem:[%s2598_s1 + $0x58] sm:$0xff] (!%p138_p2)   ;;  %v1913_v9 = vld [vmem:[%s2598_s1 + $0x60] sm:$0xff] (!%p138_p2)   ;;  %v1915_v13 = vld [vmem:[%s2598_s1 + $0x68] sm:$0xff] (!%p138_p2)   ;;  %vm1364_vm3 = vsmask.f32 (!%p138_p2), 256  ;;  %vm1361_vm4 = vcmask (!%p138_p2), 519168  }
   0x8   : > { %1738 = vmatpush3.bf16.msra.mxu1 (!%p138_p2), %v1906_v2  ;;  %1687 = vmatprep.subr.bf16.mxu0 (!%p138_p2), %v1972_v1  ;;  %v1912_v8 = vld [vmem:[%s2598_s1 + $0x18] sm:$0xff] (!%p138_p2)   ;;  %v1914_v10 = vld [vmem:[%s2598_s1 + $0x20] sm:$0xff] (!%p138_p2)   ;;  %v1916_v17 = vld [vmem:[%s2598_s1 + $0x28] sm:$0xff] (!%p138_p2)  }
   0x9   : > { %1739 = vmatprep.subr.bf16.mxu1 (!%p138_p2), %v1972_v1  ;;  %1753 = vmatprep.mubr.msk.bf16.mxu1 (!%p138_p2), %vm1973_vm0, %v1972_v1  ;;  %v1917_v18 = vld [vmem:[%s2598_s1 + $0x70] sm:$0xff] (!%p138_p2)   ;;  %v1919_v27 = vld [vmem:[%s2598_s1 + $0x78] sm:$0xff] (!%p138_p2)   ;;  %v1922_v44 = vld [vmem:[%s2598_s1 + $0x80] sm:$0xff] (!%p138_p2)  }
   0xa   : > { %v1918_v20 = vld [vmem:[%s2598_s1 + $0x30] sm:$0xff] (!%p138_p2)   ;;  %v1920_v34 = vld [vmem:[%s2598_s1 + $0x38] sm:$0xff] (!%p138_p2)   ;;  %v1923_v49 = vld [vmem:[%s2598_s1 + $0xc0] sm:$0xff] (!%p138_p2)  }
   0xb   : > { %1688 = vmatpush3.bf16.msra.mxu0 (!%p138_p2), %v1907_v3  ;;  %v1925_v56 = vld [vmem:[%s2598_s1 + $0x88] sm:$0xff] (!%p138_p2)   ;;  %vm2505_vm5 = vmand (!%p138_p2), %vm1363_vm2, %vm1364_vm3 }
   0xc   : > { %1740 = vmatpush3.bf16.msra.mxu1 (!%p138_p2), %v1908_v4  ;;  %1689 = vmatprep.subr.bf16.mxu0 (!%p138_p2), %v1972_v1  ;;  %v1926_v62 = vld [vmem:[%s2598_s1 + $0xc8] sm:$0xff] (!%p138_p2)  }
   0xd   : > { %s2604_s13 = smov (!%p161_p3, %s1456_s13), 1  ;;  %1741 = vmatprep.subr.bf16.mxu1 %v1972_v1 }
   0xe   : > { %s1893_s26 = smul.u32 120, %s2604_s13 }
   0xf   : > { %1690 = vmatpush3.bf16.msra.mxu0 %v1909_v5  ;;  %s1894_s8 = smul.u32 72, %s2604_s13 }
  0x10   : > { %1742 = vmatpush3.bf16.msra.mxu1 %v1910_v6  ;;  %1691 = vmatprep.subr.bf16.mxu0 %v1972_v1  ;;  %s2044_s6 = scalar_lea.vmem %s2597_s0, %s1893_s26 }
  0x11   : > { %1743 = vmatprep.subr.bf16.mxu1 %v1972_v1  ;;  %v2055_v11 = vld [vmem:[%s2044_s6] sm:$0xff]   ;;  %v233_v12 = vld [vmem:[%s2044_s6 + $0x8] sm:$0x1]  ;;  %v2072_v19 = vld [vmem:[%s2044_s6 + $0xc] sm:$0xff]   ;;  %s2501_s11 = scalar_lea.vmem %s2600_s3, %s1894_s8 }
  0x12   : > { %v190_v14 = vunpack.c.l.bf16 %v2055_v11  ;;  %v191_v15 = vunpack.c.h.bf16 %v2055_v11  ;;  %v242_v16 = vunpack.c.l.bf16 %v233_v12  ;;  %v234_v24 = vld [vmem:[%s2044_s6 + $0x14] sm:$0x1]  ;;  %v192_v25 = vunpack.c.l.bf16 %v2072_v19  ;;  %v2082_v26 = vld [vmem:[%s2044_s6 + $0x18] sm:$0xff]   ;;  %v235_v28 = vld [vmem:[%s2044_s6 + $0x20] sm:$0x1] }
  0x13   : > { %1692 = vmatpush3.bf16.msra.mxu0 %v1911_v7  ;;  %v193_v31 = vunpack.c.h.bf16 %v2072_v19  ;;  %v243_v32 = vunpack.c.l.bf16 %v234_v24  ;;  %v2092_v33 = vld [vmem:[%s2044_s6 + $0x24] sm:$0xff]   ;;  %v194_v35 = vunpack.c.l.bf16 %v2082_v26  ;;  %v195_v36 = vunpack.c.h.bf16 %v2082_v26  ;;  %v236_v37 = vld [vmem:[%s2044_s6 + $0x2c] sm:$0x1]  ;;  %v2103_v40 = vld [vmem:[%s2044_s6 + $0x30] sm:$0xff]  }
  0x14   : > { %1744 = vmatpush3.bf16.msra.mxu1 %v1912_v8  ;;  %1693 = vmatprep.subr.bf16.mxu0 %v1972_v1  ;;  %v279_v21 = vrot.slane %v190_v14, 1  ;;  %v280_v22 = vrot.slane %v191_v15, 1  ;;  %v282_v23 = vrot.slane %v242_v16, 1  ;;  %v284_v38 = vrot.slane %v192_v25, 1  ;;  %v237_v43 = vld [vmem:[%s2044_s6 + $0x38] sm:$0x1] }
  0x15   : > { %1745 = vmatprep.subr.bf16.mxu1 %v1972_v1  ;;  %v244_v39 = vunpack.c.l.bf16 %v235_v28  ;;  %v196_v42 = vunpack.c.l.bf16 %v2092_v33  ;;  %v285_v45 = vrot.slane %v193_v31, 1  ;;  %v287_v46 = vrot.slane %v243_v32, 1  ;;  %v2139_v5 = vld [vmem:[%s2044_s6 + $0x3c] sm:$0xff]   ;;  %v241_v8 = vld [vmem:[%s2044_s6 + $0x68] sm:$0x1] }
  0x16   : > { %v281_v29 = vsel %vm278_vm1, %v279_v21, %v280_v22  ;;  %v283_v30 = vsel %vm278_vm1, %v280_v22, %v282_v23  ;;  %v197_v47 = vunpack.c.h.bf16 %v2092_v33  ;;  %v245_v48 = vunpack.c.l.bf16 %v236_v37  ;;  %v2143_v7 = vld [vmem:[%s2044_s6 + $0x60] sm:$0xff]   ;;  %v1525_v28 = vld [vmem:[%s2044_s6 + $0x14] sm:$0x1] }
  0x17   : > { %1694 = vmatpush3.bf16.msra.mxu0 %v1913_v9  ;;  %v358_v41 = vpack.c.bf16 %v283_v30, %v281_v29  ;;  %v289_v50 = vrot.slane %v194_v35, 1  ;;  %v290_v51 = vrot.slane %v195_v36, 1  ;;  %v292_v52 = vrot.slane %v244_v39, 1  ;;  %v1928_v9 = vld [vmem:[%s2598_s1 + $0x90] sm:$0xff]   ;;  %v2161_v15 = vld [vmem:[%s2044_s6 + $0x44] sm:$0x1] }
  0x18   : > { %1746 = vmatpush3.bf16.msra.mxu1 %v1914_v10  ;;  %1695 = vmatprep.subr.bf16.mxu0 %v1972_v1  ;;  %v198_v53 = vunpack.c.l.bf16 %v2103_v40  ;;  %v199_v54 = vunpack.c.h.bf16 %v2103_v40  ;;  %v246_v55 = vunpack.c.l.bf16 %v237_v43  ;;  %v294_v57 = vrot.slane %v196_v42, 1  ;;  %v1931_v29 = vld [vmem:[%s2598_s1 + $0x98] sm:$0xff]   ;;  %v1528_v39 = vld [vmem:[%s2044_s6 + $0x20] sm:$0x1] }
  0x19   : > { %1747 = vmatprep.subr.bf16.mxu1 %v1972_v1  ;;  %v286_v58 = vsel %vm278_vm1, %v284_v38, %v285_v45  ;;  %v288_v59 = vsel %vm278_vm1, %v285_v45, %v287_v46  ;;  %v295_v60 = vrot.slane %v197_v47, 1  ;;  %v297_v61 = vrot.slane %v245_v48, 1  ;;  %v1613_v38 = vld [vmem:[%s2044_s6 + $0x18] sm:$0xff]   ;;  %v1529_v46 = vld [vmem:[%s2044_s6 + $0x24] sm:$0xff]  }
  0x1a   : > { %v2130_v63 = vsel %vm278_vm1, %v289_v50, %v290_v51  ;;  %v2136_v0 = vsel %vm278_vm1, %v290_v51, %v292_v52  ;;  %v299_v2 = vrot.slane %v198_v53, 1  ;;  %v300_v3 = vrot.slane %v199_v54, 1  ;;  %v1934_v47 = vld [vmem:[%s2598_s1 + $0xa0] sm:$0xff]   ;;  %v1531_v52 = vld [vmem:[%s2044_s6 + $0x2c] sm:$0x1] }
  0x1b   : > { %1696 = vmatpush3.bf16.msra.mxu0 %v1915_v13  ;;  %v302_v4 = vrot.slane %v246_v55, 1  ;;  %v359_v6 = vpack.c.bf16 %v288_v59, %v286_v58  ;;  %v2150_v10 = vsel %vm278_vm1, %v294_v57, %v295_v60  ;;  %v206_v12 = vunpack.c.l.bf16 %v2143_v7  ;;  %v1614_v57 = vld [vmem:[%s2044_s6 + $0x30] sm:$0xff]   ;;  %v1534_v58 = vld [vmem:[%s2044_s6 + $0x38] sm:$0x1] }
  0x1c   : > { %1748 = vmatpush3.bf16.msra.mxu1 %v1916_v17  ;;  %1697 = vmatprep.subr.bf16.mxu0 %v1972_v1  ;;  %v360_v13 = vpack.c.bf16 %v2136_v0, %v2130_v63  ;;  %v200_v14 = vunpack.c.l.bf16 %v2139_v5  ;;  %v207_v16 = vunpack.c.h.bf16 %v2143_v7  ;;  %v1929_v17 = vld [vmem:[%s2598_s1 + $0xd0] sm:$0xff]   ;;  %v250_v21 = vunpack.c.l.bf16 %v241_v8 }
  0x1d   : > { %1749 = vmatprep.subr.bf16.mxu1 %v1972_v1  ;;  %v319_v22 = vrot.slane %v206_v12, 1  ;;  %v201_v24 = vunpack.c.h.bf16 %v2139_v5  ;;  %v247_v30 = vunpack.c.l.bf16 %v2161_v15  ;;  %v935_v37 = vunpack.c.l.bf16 %v1525_v28  ;;  %v1537_v12 = vld [vmem:[%s2044_s6 + $0x44] sm:$0x1] }
  0x1e   : > { %v320_v25 = vrot.slane %v207_v16, 1  ;;  %v322_v31 = vrot.slane %v250_v21, 1  ;;  %v2190_v35 = vrot.slane %v200_v14, 1  ;;  %v1599_v45 = vunpack.c.l.bf16 %v1613_v38 }
  0x1f   : > { %1698 = vmatpush3.bf16.msra.mxu0 %v1917_v18  ;;  %v2169_v18 = vsel %vm278_vm1, %v299_v2, %v300_v3  ;;  %v1600_v50 = vunpack.c.h.bf16 %v1613_v38  ;;  %v938_v51 = vunpack.c.l.bf16 %v1528_v39  ;;  %v939_v55 = vunpack.c.l.bf16 %v1529_v46  ;;  %v1935_v2 = vld [vmem:[%s2598_s1 + $0xe0] sm:$0xff]  }
  0x20   : > { %1750 = vmatpush3.bf16.msra.mxu1 %v1918_v20  ;;  %1699 = vmatprep.subr.bf16.mxu0 %v1972_v1  ;;  %v2172_v20 = vsel %vm278_vm1, %v300_v3, %v302_v4  ;;  %v2193_v36 = vsel %vm278_vm1, %v319_v22, %v320_v25  ;;  %v2202_v42 = vsel %vm278_vm1, %v320_v25, %v322_v31  ;;  %v992_v54 = vrot.slane %v1599_v45, 1  ;;  %v1615_v25 = vld [vmem:[%s2044_s6 + $0x48] sm:$0xff]  }
  0x21   : > { %1751 = vmatprep.subr.bf16.mxu1 %v1972_v1  ;;  %v366_v48 = vpack.c.bf16 %v2202_v42, %v2193_v36  ;;  %v997_v4 = vrot.slane %v939_v55, 1  ;;  %v1603_v8 = vunpack.c.l.bf16 %v1614_v57  ;;  %v1604_v21 = vunpack.c.h.bf16 %v1614_v57  ;;  %v1616_v55 = vld [vmem:[%s2044_s6 + $0x60] sm:$0xff]   ;;  %v1949_v42 = vld [vmem:[%s2044_s6 + $0x30] sm:$0xff]  }
  0x22   : > { %v947_v39 = vunpack.c.l.bf16 %v1537_v12  ;;  %v1547_v12 = vld [vmem:[%s2044_s6 + $0x6c] sm:$0xff]   ;;  %v1948_v36 = vld [vmem:[%s2044_s6 + $0x24] sm:$0xff]  }
  0x23   : > { %1700 = vmatpush3.bf16.msra.mxu0 %v1919_v27  ;;  %v1523_v27 = vld [vmem:[%s2044_s6 + $0xc] sm:$0xff]   ;;  %v1002_v22 = vrot.slane %v1603_v8, 1  ;;  %v1003_v28 = vrot.slane %v1604_v21, 1 }
  0x24   : > { %1752 = vmatpush3.bf16.msra.mxu1 %v1920_v34  ;;  %1789 = vmatprep.subr.bf16.mxu0 %v1972_v1  ;;  %v933_v32 = vunpack.c.l.bf16 %v1523_v27  ;;  %v934_v34 = vunpack.c.h.bf16 %v1523_v27 }
  0x25   : > { %1841 = vmatprep.subr.bf16.mxu1 %v1972_v1 }
  0x26   : > { %1702 = vmatmul.mubr.bf16.vlgmr.msra.gmra.mrb[0].mxu0 %v358_v41  ;;  %v1932_v41 = vld [vmem:[%s2598_s1 + $0xd8] sm:$0xff]   ;;  %v987_v43 = vrot.slane %v933_v32, 1  ;;  %v1540_v32 = vld [vmem:[%s2044_s6 + $0x50] sm:$0x1] }
  0x27   : > { %1754 = vmatmul.mubr.bf16.vlgmr.msra.gmra.mrb[0].mxu1 %v2055_v11  ;;  %1790 = vmatpush3.bf16.msra.mxu0 %v1922_v44  ;;  %v2153_v11 = vsel %vm278_vm1, %v295_v60, %v297_v61  ;;  %v988_v44 = vrot.slane %v934_v34, 1  ;;  %v993_v60 = vrot.slane %v1600_v50, 1  ;;  %v995_v61 = vrot.slane %v938_v51, 1  ;;  %v1939_v34 = vld [vmem:[%s2598_s1 + $0xe8] sm:$0xff]  }
  0x28   : > { %1842 = vmatpush3.bf16.msra.mxu1 %v1923_v49  ;;  %1705 = vmatprep.mubr.msk.bf16.mxu0 %vm1973_vm0, %v1972_v1  ;;  %v361_v23 = vpack.c.bf16 %v2153_v11, %v2150_v10  ;;  %v990_v49 = vrot.slane %v935_v37, 1  ;;  %v1010_v51 = vrot.slane %v947_v39, 1 }
  0x29   : > { %1757 = vmatprep.mubr.msk.bf16.mxu1 %vm1973_vm0, %v1972_v1  ;;  %1791 = vmatprep.subr.bf16.mxu0 %v1972_v1  ;;  %v2213_v53 = vsel %vm278_vm1, %v987_v43, %v988_v44  ;;  %v2233_v14 = vsel %vm278_vm1, %v992_v54, %v993_v60  ;;  %v2236_v16 = vsel %vm278_vm1, %v993_v60, %v995_v61  ;;  %v1541_v43 = vld [vmem:[%s2044_s6 + $0x54] sm:$0xff]  }
  0x2a   : > { %1843 = vmatprep.subr.bf16.mxu1 %v1972_v1  ;;  %v2218_v59 = vsel %vm278_vm1, %v988_v44, %v990_v49  ;;  %v1067_v63 = vpack.c.bf16 %v2236_v16, %v2233_v14  ;;  %v2265_v44 = vsel %vm278_vm1, %v1002_v22, %v1003_v28  ;;  %v1543_v49 = vld [vmem:[%s2044_s6 + $0x5c] sm:$0x1]  ;;  %v951_v61 = vunpack.c.l.bf16 %v1541_v43  ;;  %v1954_v14 = vld [vmem:[%s2044_s6 + $0x6c] sm:$0xff]  }
  0x2b   : > { %1792 = vmatpush3.bf16.msra.mxu0 %v1925_v56  ;;  %v940_v56 = vunpack.c.h.bf16 %v1529_v46  ;;  %v1066_v3 = vpack.c.bf16 %v2218_v59, %v2213_v53  ;;  %v953_v8 = vunpack.c.l.bf16 %v1543_v49  ;;  %v1611_v22 = vunpack.c.l.bf16 %v1616_v55  ;;  %v1951_v53 = vld [vmem:[%s2044_s6 + $0x48] sm:$0xff]   ;;  %v1952_v59 = vld [vmem:[%s2044_s6 + $0x54] sm:$0xff]  }
  0x2c   : > { %1844 = vmatpush3.bf16.msra.mxu1 %v1926_v62  ;;  %1793 = vmatprep.subr.bf16.mxu0 %v1972_v1  ;;  %v941_v62 = vunpack.c.l.bf16 %v1531_v52  ;;  %v950_v52 = vunpack.c.l.bf16 %v1540_v32  ;;  %v957_v32 = vunpack.c.l.bf16 %v1547_v12 }
  0x2d   : > { %1845 = vmatprep.subr.bf16.mxu1 %v1972_v1  ;;  %v1020_v11 = vrot.slane %v953_v8, 1 }
  0x2e   : > { %1706 = vmatmul.mubr.bf16.gmra.mrb[4].mxu0 %v359_v6  ;;  %v998_v6 = vrot.slane %v940_v56, 1  ;;  %v1940_v56 = vld [vmem:[%s2598_s1 + $0xb0] sm:$0xff]   ;;  %v1027_v49 = vrot.slane %v957_v32, 1 }
  0x2f   : > { %1758 = vmatmul.mubr.bf16.gmra.mrb[4].mxu1 %v2072_v19  ;;  %1709 = vmatprep.mubr.msk.bf16.mxu0 %vm1973_vm0, %v1972_v1  ;;  %v362_v19 = vpack.c.bf16 %v2172_v20, %v2169_v18 }
  0x30   : > { %1761 = vmatprep.mubr.msk.bf16.mxu1 %vm1973_vm0, %v1972_v1  ;;  %1794 = vmatpush3.bf16.msra.mxu0 %v1928_v9  ;;  %v1535_v9 = vld [vmem:[%s2044_s6 + $0x3c] sm:$0xff]   ;;  %v2244_v0 = vsel %vm278_vm1, %v997_v4, %v998_v6  ;;  %v1015_v4 = vrot.slane %v950_v52, 1  ;;  %v307_v52 = vrot.slane %v247_v30, 1 }
  0x31   : > { %1846 = vmatpush3.bf16.msra.mxu1 %v1929_v17  ;;  %1795 = vmatprep.subr.bf16.mxu0 %v1972_v1  ;;  %v1000_v17 = vrot.slane %v941_v62, 1  ;;  %v946_v31 = vunpack.c.h.bf16 %v1535_v9  ;;  %v1942_v62 = vld [vmem:[%s2598_s1 + $0xf0] sm:$0xff]  }
  0x32   : > { %1847 = vmatprep.subr.bf16.mxu1 %v1972_v1 }
  0x33   : > { %v2253_v27 = vsel %vm278_vm1, %v998_v6, %v1000_v17  ;;  %v1008_v46 = vrot.slane %v946_v31, 1  ;;  %v952_v6 = vunpack.c.h.bf16 %v1541_v43  ;;  %v1022_v31 = vrot.slane %v1611_v22, 1 }
  0x34   : > { %1796 = vmatpush3.bf16.msra.mxu0 %v1931_v29  ;;  %v945_v29 = vunpack.c.l.bf16 %v1535_v9  ;;  %v1068_v37 = vpack.c.bf16 %v2253_v27, %v2244_v0  ;;  %v1546_v9 = vld [vmem:[%s2044_s6 + $0x68] sm:$0x1]  ;;  %v958_v43 = vunpack.c.h.bf16 %v1547_v12 }
  0x35   : > { %1848 = vmatpush3.bf16.msra.mxu1 %v1932_v41  ;;  %1797 = vmatprep.subr.bf16.mxu0 %v1972_v1  ;;  %v1607_v41 = vunpack.c.l.bf16 %v1615_v25  ;;  %v1018_v10 = vrot.slane %v952_v6, 1 }
  0x36   : > { %1710 = vmatmul.mubr.bf16.gmra.mrb[8].mxu0 %v360_v13  ;;  %1849 = vmatprep.subr.bf16.mxu1 %v1972_v1  ;;  %v944_v13 = vunpack.c.l.bf16 %v1534_v58  ;;  %v1007_v45 = vrot.slane %v945_v29, 1  ;;  %v956_v29 = vunpack.c.l.bf16 %v1546_v9 }
  0x37   : > { %1762 = vmatmul.mubr.bf16.gmra.mrb[8].mxu1 %v2082_v26  ;;  %1713 = vmatprep.mubr.msk.bf16.mxu0 %vm1973_vm0, %v1972_v1  ;;  %v1937_v26 = vld [vmem:[%s2598_s1 + $0xa8] sm:$0xff]   ;;  %v1012_v54 = vrot.slane %v1607_v41, 1  ;;  %v2320_v39 = vsel %vm278_vm1, %v1018_v10, %v1020_v11 }
  0x38   : > { %1765 = vmatprep.mubr.msk.bf16.mxu1 %vm1973_vm0, %v1972_v1  ;;  %1798 = vmatpush3.bf16.msra.mxu0 %v1934_v47  ;;  %v1005_v38 = vrot.slane %v944_v13, 1  ;;  %v1608_v47 = vunpack.c.h.bf16 %v1615_v25  ;;  %v2278_v58 = vsel %vm278_vm1, %v1007_v45, %v1008_v46  ;;  %v1017_v13 = vrot.slane %v951_v61, 1 }
  0x39   : > { %1850 = vmatpush3.bf16.msra.mxu1 %v1935_v2  ;;  %1799 = vmatprep.subr.bf16.mxu0 %v1972_v1  ;;  %v2285_v2 = vsel %vm278_vm1, %v1008_v46, %v1010_v51  ;;  %v1025_v46 = vrot.slane %v956_v29, 1  ;;  %v305_v51 = vrot.slane %v201_v24, 1 }
  0x3a   : > { %1851 = vmatprep.subr.bf16.mxu1 %v1972_v1  ;;  %v2269_v50 = vsel %vm278_vm1, %v1003_v28, %v1005_v38  ;;  %v1013_v60 = vrot.slane %v1608_v47, 1  ;;  %v1070_v17 = vpack.c.bf16 %v2285_v2, %v2278_v58  ;;  %v1944_v28 = vld [vmem:[%s2598_s1 + $0xb8] sm:$0xff]   ;;  %v2317_v38 = vsel %vm278_vm1, %v1017_v13, %v1018_v10 }
  0x3b   : > { %v1069_v57 = vpack.c.bf16 %v2269_v50, %v2265_v44  ;;  %v1072_v45 = vpack.c.bf16 %v2320_v39, %v2317_v38  ;;  %v306_v8 = vsel %vm278_vm1, %v2190_v35, %v305_v51  ;;  %v308_v9 = vsel %vm278_vm1, %v305_v51, %v307_v52  ;;  %v240_v10 = vld [vmem:[%s2044_s6 + $0x5c] sm:$0x1] }
  0x3c   : > { %1800 = vmatpush3.bf16.msra.mxu0 %v1937_v26  ;;  %v2296_v21 = vsel %vm278_vm1, %v1012_v54, %v1013_v60  ;;  %v2302_v25 = vsel %vm278_vm1, %v1013_v60, %v1015_v4  ;;  %v1549_v26 = vld [vmem:[%s2044_s6 + $0x74] sm:$0x1]  ;;  %v184_v54 = vld [vmem:[%s2044_s6 + $0x48] sm:$0xff]   ;;  %v239_v60 = vld [vmem:[%s2044_s6 + $0x50] sm:$0x1]  ;;  %v363_v20 = vpack.c.bf16 %v308_v9, %v306_v8 }
  0x3d   : > { %1852 = vmatpush3.bf16.msra.mxu1 %v1939_v34  ;;  %1801 = vmatprep.subr.bf16.mxu0 %v1972_v1  ;;  %v1945_v34 = vld [vmem:[%s2598_s1 + $0xf8] sm:$0xff]   ;;  %v959_v47 = vunpack.c.l.bf16 %v1549_v26  ;;  %v202_v15 = vunpack.c.l.bf16 %v184_v54  ;;  %v203_v30 = vunpack.c.h.bf16 %v184_v54  ;;  %v248_v12 = vunpack.c.l.bf16 %v239_v60 }
  0x3e   : > { %1714 = vmatmul.mubr.bf16.gmra.mrb[12].mxu0 %v361_v23  ;;  %1853 = vmatprep.subr.bf16.mxu1 %v1972_v1  ;;  %v1612_v23 = vunpack.c.h.bf16 %v1616_v55 }
  0x3f   : > { %1766 = vmatmul.mubr.bf16.gmra.mrb[12].mxu1 %v2092_v33  ;;  %1717 = vmatprep.mubr.msk.bf16.mxu0 %vm1973_vm0, %v1972_v1  ;;  %v1071_v33 = vpack.c.bf16 %v2302_v25, %v2296_v21  ;;  %v310_v13 = vrot.slane %v203_v30, 1  ;;  %v312_v22 = vrot.slane %v248_v12, 1 }
  0x40   : > { %1769 = vmatprep.mubr.msk.bf16.mxu1 %vm1973_vm0, %v1972_v1  ;;  %1802 = vmatpush3.bf16.msra.mxu0 %v1940_v56  ;;  %v1023_v41 = vrot.slane %v1612_v23, 1  ;;  %v1028_v56 = vrot.slane %v958_v43, 1 }
  0x41   : > { %1854 = vmatpush3.bf16.msra.mxu1 %v1942_v62  ;;  %1803 = vmatprep.subr.bf16.mxu0 %v1972_v1  ;;  %v1030_v62 = vrot.slane %v959_v47, 1  ;;  %v313_v23 = vsel %vm278_vm1, %v310_v13, %v312_v22 }
  0x42   : > { %1855 = vmatprep.subr.bf16.mxu1 %v1972_v1  ;;  %v2331_v55 = vsel %vm278_vm1, %v1022_v31, %v1023_v41  ;;  %v2335_v61 = vsel %vm278_vm1, %v1023_v41, %v1025_v46  ;;  %v2340_v24 = vsel %vm278_vm1, %v1027_v49, %v1028_v56  ;;  %v1946_v46 = vld [vmem:[%s2044_s6 + $0xc] sm:$0xff]  }
  0x43   : > { %v1073_v4 = vpack.c.bf16 %v2335_v61, %v2331_v55  ;;  %v2346_v6 = vsel %vm278_vm1, %v1028_v56, %v1030_v62 }
  0x44   : > { %1804 = vmatpush3.bf16.msra.mxu0 %v1944_v28  ;;  %v1074_v18 = vpack.c.bf16 %v2346_v6, %v2340_v24  ;;  %v249_v28 = vunpack.c.l.bf16 %v240_v10 }
  0x45   : > { %1856 = vmatpush3.bf16.msra.mxu1 %v1945_v34 }
  0x46   : > { %1718 = vmatmul.mubr.bf16.gmra.mrb[16].mxu0 %v362_v19  ;;  %v309_v19 = vrot.slane %v202_v15, 1  ;;  %v317_v34 = vrot.slane %v249_v28, 1 }
  0x47   : > { %1770 = vmatmul.mubr.bf16.gmra.mrb[16].mxu1 %v2103_v40  ;;  %1721 = vmatprep.mubr.msk.bf16.mxu0 %vm1973_vm0, %v1972_v1  ;;  %v186_v40 = vld [vmem:[%s2044_s6 + $0x54] sm:$0xff]  }
  0x48   : > { %1773 = vmatprep.mubr.msk.bf16.mxu1 %vm1973_vm0, %v1972_v1  ;;  %v204_v11 = vunpack.c.l.bf16 %v186_v40  ;;  %v311_v35 = vsel %vm278_vm1, %v309_v19, %v310_v13  ;;  %v205_v26 = vunpack.c.h.bf16 %v186_v40 }
  0x49   : > { %v364_v29 = vpack.c.bf16 %v313_v23, %v311_v35 }
  0x4a   : > { %v314_v31 = vrot.slane %v204_v11, 1  ;;  %v315_v32 = vrot.slane %v205_v26, 1 }
  0x4c   : > { %v318_v41 = vsel %vm278_vm1, %v315_v32, %v317_v34 }
  0x4e   : > { %1722 = vmatmul.mubr.bf16.gmra.mrb[20].mxu0 %v363_v20 }
  0x4f   : > { %1774 = vmatmul.mubr.bf16.gmra.mrb[20].mxu1 %v2139_v5  ;;  %1725 = vmatprep.mubr.msk.bf16.mxu0 %vm1973_vm0, %v1972_v1  ;;  %v316_v5 = vsel %vm278_vm1, %v314_v31, %v315_v32 }
  0x50   : > { %1777 = vmatprep.mubr.msk.bf16.mxu1 %vm1973_vm0, %v1972_v1  ;;  %v365_v43 = vpack.c.bf16 %v318_v41, %v316_v5 }
  0x56   : > { %1726 = vmatmul.mubr.bf16.gmra.mrb[24].mxu0 %v364_v29 }
  0x57   : > { %1778 = vmatmul.mubr.bf16.gmra.mrb[24].mxu1 %v184_v54  ;;  %1729 = vmatprep.mubr.msk.bf16.mxu0 %vm1973_vm0, %v1972_v1 }
  0x58   : > { %1781 = vmatprep.mubr.msk.bf16.mxu1 %vm1973_vm0, %v1972_v1 }
  0x5e   : > { %1730 = vmatmul.mubr.bf16.gmra.mrb[28].mxu0 %v365_v43 }
  0x5f   : > { %1782 = vmatmul.mubr.bf16.gmra.mrb[28].mxu1 %v186_v40  ;;  %1733 = vmatprep.mubr.msk.bf16.mxu0 %vm1973_vm0, %v1972_v1 }
  0x60   : > { %1785 = vmatprep.mubr.msk.bf16.mxu1 %vm1973_vm0, %v1972_v1 }
  0x66   : > { %1734 = vmatmul.mubr.bf16.gmra.mrb[32].mxu0 %v366_v48  ;;  %v1950_v48 = vld [vmem:[%s2044_s6 + $0x3c] sm:$0xff]  }
  0x67   : > { %1786 = vmatmul.mubr.bf16.gmra.mrb[32].mxu1 %v2143_v7  ;;  %1805 = vmatprep.mubr.msk.bf16.mxu0 %vm1973_vm0, %v1972_v1  ;;  %v1947_v7 = vld [vmem:[%s2044_s6 + $0x18] sm:$0xff]  }
  0x68   : > { %1857 = vmatprep.mubr.msk.bf16.mxu1 %vm1973_vm0, %v1972_v1 }
  0x6e   : > { %1806 = vmatmul.mubr.bf16.vlgmr.msra.gmra.mrb[36].mxu0 %v1946_v46 }
  0x6f   : > { %1858 = vmatmul.mubr.bf16.vlgmr.msra.gmra.mrb[36].mxu1 %v1066_v3  ;;  %1809 = vmatprep.mubr.msk.bf16.mxu0 %vm1973_vm0, %v1972_v1  ;;  %v1953_v3 = vld [vmem:[%s2044_s6 + $0x60] sm:$0xff]  }
  0x70   : > { %1861 = vmatprep.mubr.msk.bf16.mxu1 %vm1973_vm0, %v1972_v1 }
  0x76   : > { %1810 = vmatmul.mubr.bf16.gmra.mrb[40].mxu0 %v1947_v7 }
  0x77   : > { %1862 = vmatmul.mubr.bf16.gmra.mrb[40].mxu1 %v1067_v63  ;;  %1813 = vmatprep.mubr.msk.bf16.mxu0 %vm1973_vm0, %v1972_v1 }
  0x78   : > { %1865 = vmatprep.mubr.msk.bf16.mxu1 %vm1973_vm0, %v1972_v1 }
  0x7e   : > { %1814 = vmatmul.mubr.bf16.gmra.mrb[44].mxu0 %v1948_v36 }
  0x7f   : > { %1866 = vmatmul.mubr.bf16.gmra.mrb[44].mxu1 %v1068_v37  ;;  %1817 = vmatprep.mubr.msk.bf16.mxu0 %vm1973_vm0, %v1972_v1 }
  0x80   : > { %1869 = vmatprep.mubr.msk.bf16.mxu1 %vm1973_vm0, %v1972_v1 }
  0x86   : > { %1818 = vmatmul.mubr.bf16.gmra.mrb[48].mxu0 %v1949_v42 }
  0x87   : > { %1870 = vmatmul.mubr.bf16.gmra.mrb[48].mxu1 %v1069_v57  ;;  %1821 = vmatprep.mubr.msk.bf16.mxu0 %vm1973_vm0, %v1972_v1 }
  0x88   : > { %1873 = vmatprep.mubr.msk.bf16.mxu1 %vm1973_vm0, %v1972_v1 }
  0x8e   : > { %1822 = vmatmul.mubr.bf16.gmra.mrb[52].mxu0 %v1950_v48 }
  0x8f   : > { %1874 = vmatmul.mubr.bf16.gmra.mrb[52].mxu1 %v1070_v17  ;;  %1825 = vmatprep.mubr.msk.bf16.mxu0 %vm1973_vm0, %v1972_v1 }
  0x90   : > { %1877 = vmatprep.mubr.msk.bf16.mxu1 %vm1973_vm0, %v1972_v1 }
  0x96   : > { %1826 = vmatmul.mubr.bf16.gmra.mrb[56].mxu0 %v1951_v53 }
  0x97   : > { %1878 = vmatmul.mubr.bf16.gmra.mrb[56].mxu1 %v1071_v33  ;;  %1829 = vmatprep.mubr.msk.bf16.mxu0 %vm1973_vm0, %v1972_v1 }
  0x98   : > { %1881 = vmatprep.mubr.msk.bf16.mxu1 %vm1973_vm0, %v1972_v1 }
  0x9e   : > { %1830 = vmatmul.mubr.bf16.gmra.mrb[60].mxu0 %v1952_v59 }
  0x9f   : > { %1882 = vmatmul.mubr.bf16.gmra.mrb[60].mxu1 %v1072_v45  ;;  %1833 = vmatprep.mubr.msk.bf16.mxu0 %vm1973_vm0, %v1972_v1 }
  0xa0   : > { %1885 = vmatprep.mubr.msk.bf16.mxu1 %vm1973_vm0, %v1972_v1 }
  0xa6   : > { %1834 = vmatmul.mubr.bf16.gmra.mrb[64].mxu0 %v1953_v3 }
  0xa7   : > { %1886 = vmatmul.mubr.bf16.gmra.mrb[64].mxu1 %v1073_v4  ;;  %1837 = vmatprep.mubr.msk.bf16.mxu0 %vm1973_vm0, %v1972_v1 }
  0xa8   : > { %1889 = vmatprep.mubr.msk.bf16.mxu1 %vm1973_vm0, %v1972_v1 }
  0xae   : > { %1838 = vmatmul.mubr.bf16.gmra.mrb[68].mxu0 %v1954_v14 }
  0xaf   : > { %1890 = vmatmul.mubr.bf16.gmra.mrb[68].mxu1 %v1074_v18 }
  0xf9   : > { %v449_v16 = vpop.f32.mrb[0].mxu0 }
  0xfa   : > { %v602_v63 = vpop.f32.mrb[0].mxu1  ;;  %v1703_v0 = vpop.f32.mrb[1].mxu0 }
  0xfb   : > { %v2453_v27 = vadd.f32 %v602_v63, %v449_v16  ;;  %v1755_v37 = vpop.f32.mrb[1].mxu1  ;;  %v452_v44 = vpop.f32.mrb[2].mxu0 }
  0xfc   : > { %v605_v50 = vpop.f32.mrb[2].mxu1  ;;  %v1704_v57 = vpop.f32.mrb[3].mxu0 }
  0xfd   : > { %v2455_v58 = vadd.f32 %v605_v50, %v452_v44  ;;  %v1756_v2 = vpop.f32.mrb[3].mxu1 }
 0x101   : > { %v457_v17 = vpop.f32.mrb[4].mxu0 }
 0x102   : > { %v610_v1 = vpop.f32.mrb[4].mxu1  ;;  %v1707_v21 = vpop.f32.mrb[5].mxu0 }
 0x103   : > { %v2457_v25 = vadd.f32 %v610_v1, %v457_v17  ;;  %v1759_v33 = vpop.f32.mrb[5].mxu1  ;;  %v460_v38 = vpop.f32.mrb[6].mxu0 }
 0x104   : > { %v613_v39 = vpop.f32.mrb[6].mxu1  ;;  %v1708_v45 = vpop.f32.mrb[7].mxu0 }
 0x105   : > { %v2459_v47 = vadd.f32 %v613_v39, %v460_v38  ;;  %v1760_v49 = vpop.f32.mrb[7].mxu1 }
 0x109   : > { %v465_v51 = vpop.f32.mrb[8].mxu0 }
 0x10a   : > { %v618_v52 = vpop.f32.mrb[8].mxu1  ;;  %v1711_v54 = vpop.f32.mrb[9].mxu0 }
 0x10b   : > { %v2461_v55 = vadd.f32 %v618_v52, %v465_v51  ;;  %v1763_v56 = vpop.f32.mrb[9].mxu1  ;;  %v468_v60 = vpop.f32.mrb[10].mxu0 }
 0x10c   : > { %v621_v61 = vpop.f32.mrb[10].mxu1  ;;  %v1712_v62 = vpop.f32.mrb[11].mxu0 }
 0x10d   : > { %v2463_v4 = vadd.f32 %v621_v61, %v468_v60  ;;  %v1764_v24 = vpop.f32.mrb[11].mxu1 }
 0x111   : > { %v473_v15 = vpop.f32.mrb[12].mxu0 }
 0x112   : > { %v626_v30 = vpop.f32.mrb[12].mxu1  ;;  %v1715_v6 = vpop.f32.mrb[13].mxu0 }
 0x113   : > { %v2465_v8 = vadd.f32 %v626_v30, %v473_v15  ;;  %v1767_v9 = vpop.f32.mrb[13].mxu1  ;;  %v476_v12 = vpop.f32.mrb[14].mxu0 }
 0x114   : > { %v629_v18 = vpop.f32.mrb[14].mxu1  ;;  %v1716_v20 = vpop.f32.mrb[15].mxu0 }
 0x115   : > { %v2467_v19 = vadd.f32 %v629_v18, %v476_v12  ;;  %v1768_v13 = vpop.f32.mrb[15].mxu1  ;;  %v2493_v20 = vld [vmem:[%s2599_s2] ss:$0 sm:$0xff] }
 0x119   : > { %v481_v22 = vpop.f32.mrb[16].mxu0 }
 0x11a   : > { %v634_v40 = vpop.f32.mrb[16].mxu1  ;;  %v1719_v10 = vpop.f32.mrb[17].mxu0 }
 0x11b   : > { %v2469_v11 = vadd.f32 %v634_v40, %v481_v22  ;;  %v1771_v35 = vpop.f32.mrb[17].mxu1  ;;  %v484_v23 = vpop.f32.mrb[18].mxu0 }
 0x11c   : > { %v637_v26 = vpop.f32.mrb[18].mxu1  ;;  %v1720_v28 = vpop.f32.mrb[19].mxu0 }
 0x11d   : > { %v2471_v29 = vadd.f32 %v637_v26, %v484_v23  ;;  %v1772_v31 = vpop.f32.mrb[19].mxu1 }
 0x121   : > { %v489_v32 = vpop.f32.mrb[20].mxu0 }
 0x122   : > { %v642_v34 = vpop.f32.mrb[20].mxu1  ;;  %v1723_v5 = vpop.f32.mrb[21].mxu0 }
 0x123   : > { %v2473_v41 = vadd.f32 %v642_v34, %v489_v32  ;;  %v1775_v43 = vpop.f32.mrb[21].mxu1  ;;  %v492_v46 = vpop.f32.mrb[22].mxu0 }
 0x124   : > { %v645_v7 = vpop.f32.mrb[22].mxu1  ;;  %v1724_v36 = vpop.f32.mrb[23].mxu0 }
 0x125   : > { %v2475_v42 = vadd.f32 %v645_v7, %v492_v46  ;;  %v1776_v48 = vpop.f32.mrb[23].mxu1 }
 0x126   : > { %v1366_v48 = vld [vmem:[%s2501_s11 + $0x4] sm:$0x1] }
 0x129   : > { %v497_v53 = vpop.f32.mrb[24].mxu0 }
 0x12a   : > { %v650_v59 = vpop.f32.mrb[24].mxu1  ;;  %v1727_v3 = vpop.f32.mrb[25].mxu0 }
 0x12b   : > { %v2477_v14 = vadd.f32 %v650_v59, %v497_v53  ;;  %v1779_v16 = vpop.f32.mrb[25].mxu1  ;;  %v500_v63 = vpop.f32.mrb[26].mxu0 }
 0x12c   : > { %v653_v0 = vpop.f32.mrb[26].mxu1  ;;  %v1728_v37 = vpop.f32.mrb[27].mxu0 }
 0x12d   : > { %v2479_v44 = vadd.f32 %v653_v0, %v500_v63  ;;  %v1780_v50 = vpop.f32.mrb[27].mxu1 }
 0x131   : > { %v505_v57 = vpop.f32.mrb[28].mxu0 }
 0x132   : > { %v658_v2 = vpop.f32.mrb[28].mxu1  ;;  %v1731_v17 = vpop.f32.mrb[29].mxu0 }
 0x133   : > { %v2481_v1 = vadd.f32 %v658_v2, %v505_v57  ;;  %v1783_v21 = vpop.f32.mrb[29].mxu1  ;;  %v508_v33 = vpop.f32.mrb[30].mxu0 }
 0x134   : > { %v661_v38 = vpop.f32.mrb[30].mxu1  ;;  %v1732_v39 = vpop.f32.mrb[31].mxu0 }
 0x135   : > { %v2483_v45 = vadd.f32 %v661_v38, %v508_v33  ;;  %v1784_v49 = vpop.f32.mrb[31].mxu1 }
 0x139   : > { %v513_v51 = vpop.f32.mrb[32].mxu0 }
 0x13a   : > { %v666_v52 = vpop.f32.mrb[32].mxu1  ;;  %v1735_v54 = vpop.f32.mrb[33].mxu0 }
 0x13b   : > { %v2485_v56 = vadd.f32 %v666_v52, %v513_v51  ;;  %v1787_v60 = vpop.f32.mrb[33].mxu1  ;;  %v516_v61 = vpop.f32.mrb[34].mxu0  ;;  %v1370_v52 = vld [vmem:[%s2501_s11 + $0xc] sm:$0x1] }
 0x13c   : > { %v669_v62 = vpop.f32.mrb[34].mxu1  ;;  %v1736_v24 = vpop.f32.mrb[35].mxu0 }
 0x13d   : > { %v2487_v15 = vadd.f32 %v669_v62, %v516_v61  ;;  %v1788_v30 = vpop.f32.mrb[35].mxu1 }
 0x141   : > { %v817_v6 = vpop.f32.mrb[36].mxu0 }
 0x142   : > { %v888_v9 = vadd.f32 %v817_v6, %v2453_v27  ;;  %v1157_v12 = vpop.f32.mrb[36].mxu1  ;;  %v1807_v18 = vpop.f32.mrb[37].mxu0 }
 0x143   : > { %v1859_v13 = vpop.f32.mrb[37].mxu1  ;;  %v820_v22 = vpop.f32.mrb[38].mxu0 }
 0x144   : > { %v1228_v40 = vadd.f32 %v1157_v12, %v888_v9  ;;  %v889_v10 = vadd.f32 %v820_v22, %v2455_v58  ;;  %v1160_v35 = vpop.f32.mrb[38].mxu1  ;;  %v1808_v23 = vpop.f32.mrb[39].mxu0 }
 0x145   : > { %v1860_v26 = vpop.f32.mrb[39].mxu1 }
 0x146   : > { %v1253_v28 = vadd.f32 %v2493_v20, %v1228_v40  ;;  %v1229_v31 = vadd.f32 %v1160_v35, %v889_v10 }
 0x148   : > { %v1271_v27 = vmax.f32 %v1253_v28, 0.0  ;;  %v1254_v32 = vadd.f32 %v2493_v20, %v1229_v31  ;;  %v1374_v28 = vld [vmem:[%s2501_s11 + $0x14] sm:$0x1] }
 0x149   : > { %v825_v58 = vpop.f32.mrb[40].mxu0 }
 0x14a   : > { %v1579_v34 = vpack.c.bf16 %v1271_v27, %v1271_v27  ;;  %v1272_v5 = vmax.f32 %v1254_v32, 0.0  ;;  %v890_v43 = vadd.f32 %v825_v58, %v2457_v25  ;;  %v1165_v46 = vpop.f32.mrb[40].mxu1  ;;  %v1811_v7 = vpop.f32.mrb[41].mxu0 }
 0x14b   : > { %v1863_v53 = vpop.f32.mrb[41].mxu1  ;;  %v828_v59 = vpop.f32.mrb[42].mxu0 }
 0x14c   : > { %1362 = vst.msk [vmem:[%s2501_s11] sm:$0xf] %vm1361_vm4, %v1579_v34  ;;  %v1580_v3 = vpack.c.bf16 %v1272_v5, %v1272_v5  ;;  %v1230_v16 = vadd.f32 %v1165_v46, %v890_v43  ;;  %v891_v63 = vadd.f32 %v828_v59, %v2459_v47  ;;  %v1168_v0 = vpop.f32.mrb[42].mxu1  ;;  %v1812_v37 = vpop.f32.mrb[43].mxu0 }
 0x14d   : > { %v1864_v25 = vpop.f32.mrb[43].mxu1 }
 0x14e   : > { %v1367_v50 = vsel %vm2505_vm5, %v1580_v3, %v1366_v48  ;;  %v1255_v57 = vadd.f32 %v2493_v20, %v1230_v16  ;;  %v1231_v2 = vadd.f32 %v1168_v0, %v891_v63  ;;  %v1378_v25 = vld [vmem:[%s2501_s11 + $0x1c] sm:$0x1] }
 0x14f   : > { %1368 = vst [vmem:[%s2501_s11 + $0x4] sm:$0x1] %v1367_v50 }
 0x150   : > { %v1273_v17 = vmax.f32 %v1255_v57, 0.0  ;;  %v1256_v21 = vadd.f32 %v2493_v20, %v1231_v2 }
 0x151   : > { %v833_v33 = vpop.f32.mrb[44].mxu0 }
 0x152   : > { %v1581_v38 = vpack.c.bf16 %v1273_v17, %v1273_v17  ;;  %v1274_v39 = vmax.f32 %v1256_v21, 0.0  ;;  %v892_v47 = vadd.f32 %v833_v33, %v2461_v55  ;;  %v1173_v49 = vpop.f32.mrb[44].mxu1  ;;  %v1815_v51 = vpop.f32.mrb[45].mxu0 }
 0x153   : > { %v1867_v54 = vpop.f32.mrb[45].mxu1  ;;  %v836_v60 = vpop.f32.mrb[46].mxu0 }
 0x154   : > { %1369 = vst.msk [vmem:[%s2501_s11 + $0x8] sm:$0xf] %vm1361_vm4, %v1581_v38  ;;  %v1582_v61 = vpack.c.bf16 %v1274_v39, %v1274_v39  ;;  %v1232_v62 = vadd.f32 %v1173_v49, %v892_v47  ;;  %v893_v24 = vadd.f32 %v836_v60, %v2463_v4  ;;  %v1176_v30 = vpop.f32.mrb[46].mxu1  ;;  %v1816_v6 = vpop.f32.mrb[47].mxu0 }
 0x155   : > { %v1868_v9 = vpop.f32.mrb[47].mxu1 }
 0x156   : > { %v1371_v55 = vsel %vm2505_vm5, %v1582_v61, %v1370_v52  ;;  %v1257_v12 = vadd.f32 %v2493_v20, %v1232_v62  ;;  %v1233_v18 = vadd.f32 %v1176_v30, %v893_v24  ;;  %v1382_v30 = vld [vmem:[%s2501_s11 + $0x24] sm:$0x1] }
 0x157   : > { %1372 = vst [vmem:[%s2501_s11 + $0xc] sm:$0x1] %v1371_v55 }
 0x158   : > { %v1275_v13 = vmax.f32 %v1257_v12, 0.0  ;;  %v1258_v22 = vadd.f32 %v2493_v20, %v1233_v18 }
 0x159   : > { %v841_v40 = vpop.f32.mrb[48].mxu0 }
 0x15a   : > { %v1583_v10 = vpack.c.bf16 %v1275_v13, %v1275_v13  ;;  %v1276_v35 = vmax.f32 %v1258_v22, 0.0  ;;  %v894_v4 = vadd.f32 %v841_v40, %v2465_v8  ;;  %v1181_v23 = vpop.f32.mrb[48].mxu1  ;;  %v1819_v26 = vpop.f32.mrb[49].mxu0 }
 0x15b   : > { %v1871_v31 = vpop.f32.mrb[49].mxu1  ;;  %v844_v27 = vpop.f32.mrb[50].mxu0 }
 0x15c   : > { %1373 = vst.msk [vmem:[%s2501_s11 + $0x10] sm:$0xf] %vm1361_vm4, %v1583_v10  ;;  %v1584_v32 = vpack.c.bf16 %v1276_v35, %v1276_v35  ;;  %v1234_v58 = vadd.f32 %v1181_v23, %v894_v4  ;;  %v895_v34 = vadd.f32 %v844_v27, %v2467_v19  ;;  %v1184_v5 = vpop.f32.mrb[50].mxu1  ;;  %v1820_v43 = vpop.f32.mrb[51].mxu0 }
 0x15d   : > { %v1872_v46 = vpop.f32.mrb[51].mxu1 }
 0x15e   : > { %v1375_v8 = vsel %vm2505_vm5, %v1584_v32, %v1374_v28  ;;  %v1259_v7 = vadd.f32 %v2493_v20, %v1234_v58  ;;  %v1235_v48 = vadd.f32 %v1184_v5, %v895_v34  ;;  %v1386_v58 = vld [vmem:[%s2501_s11 + $0x2c] sm:$0x1] }
 0x15f   : > { %1376 = vst [vmem:[%s2501_s11 + $0x14] sm:$0x1] %v1375_v8 }
 0x160   : > { %v1277_v53 = vmax.f32 %v1259_v7, 0.0  ;;  %v1260_v59 = vadd.f32 %v2493_v20, %v1235_v48 }
 0x161   : > { %v849_v3 = vpop.f32.mrb[52].mxu0 }
 0x162   : > { %v1585_v16 = vpack.c.bf16 %v1277_v53, %v1277_v53  ;;  %v1278_v63 = vmax.f32 %v1260_v59, 0.0  ;;  %v896_v19 = vadd.f32 %v849_v3, %v2469_v11  ;;  %v1189_v0 = vpop.f32.mrb[52].mxu1  ;;  %v1823_v37 = vpop.f32.mrb[53].mxu0 }
 0x163   : > { %v1875_v50 = vpop.f32.mrb[53].mxu1  ;;  %v852_v57 = vpop.f32.mrb[54].mxu0 }
 0x164   : > { %1377 = vst.msk [vmem:[%s2501_s11 + $0x18] sm:$0xf] %vm1361_vm4, %v1585_v16  ;;  %v1586_v2 = vpack.c.bf16 %v1278_v63, %v1278_v63  ;;  %v1236_v17 = vadd.f32 %v1189_v0, %v896_v19  ;;  %v897_v21 = vadd.f32 %v852_v57, %v2471_v29  ;;  %v1192_v33 = vpop.f32.mrb[54].mxu1  ;;  %v1824_v38 = vpop.f32.mrb[55].mxu0  ;;  %v1390_v57 = vld [vmem:[%s2501_s11 + $0x34] sm:$0x1] }
 0x165   : > { %v1876_v39 = vpop.f32.mrb[55].mxu1 }
 0x166   : > { %v1379_v11 = vsel %vm2505_vm5, %v1586_v2, %v1378_v25  ;;  %v1261_v47 = vadd.f32 %v2493_v20, %v1236_v17  ;;  %v1237_v49 = vadd.f32 %v1192_v33, %v897_v21 }
 0x167   : > { %1380 = vst [vmem:[%s2501_s11 + $0x1c] sm:$0x1] %v1379_v11 }
 0x168   : > { %v1279_v51 = vmax.f32 %v1261_v47, 0.0  ;;  %v1262_v52 = vadd.f32 %v2493_v20, %v1237_v49 }
 0x169   : > { %v857_v54 = vpop.f32.mrb[56].mxu0 }
 0x16a   : > { %v1587_v60 = vpack.c.bf16 %v1279_v51, %v1279_v51  ;;  %v1280_v61 = vmax.f32 %v1262_v52, 0.0  ;;  %v898_v29 = vadd.f32 %v857_v54, %v2473_v41  ;;  %v1197_v62 = vpop.f32.mrb[56].mxu1  ;;  %v1827_v24 = vpop.f32.mrb[57].mxu0 }
 0x16b   : > { %v1879_v6 = vpop.f32.mrb[57].mxu1  ;;  %v860_v9 = vpop.f32.mrb[58].mxu0 }
 0x16c   : > { %1381 = vst.msk [vmem:[%s2501_s11 + $0x20] sm:$0xf] %vm1361_vm4, %v1587_v60  ;;  %v1588_v55 = vpack.c.bf16 %v1280_v61, %v1280_v61  ;;  %v1238_v12 = vadd.f32 %v1197_v62, %v898_v29  ;;  %v899_v18 = vadd.f32 %v860_v9, %v2475_v42  ;;  %v1200_v13 = vpop.f32.mrb[58].mxu1  ;;  %v1828_v22 = vpop.f32.mrb[59].mxu0 }
 0x16d   : > { %v1880_v40 = vpop.f32.mrb[59].mxu1 }
 0x16e   : > { %v1383_v41 = vsel %vm2505_vm5, %v1588_v55, %v1382_v30  ;;  %v1263_v10 = vadd.f32 %v2493_v20, %v1238_v12  ;;  %v1239_v35 = vadd.f32 %v1200_v13, %v899_v18  ;;  %v1394_v30 = vld [vmem:[%s2501_s11 + $0x3c] sm:$0x1] }
 0x16f   : > { %1384 = vst [vmem:[%s2501_s11 + $0x24] sm:$0x1] %v1383_v41 }
 0x170   : > { %v1281_v4 = vmax.f32 %v1263_v10, 0.0  ;;  %v1264_v23 = vadd.f32 %v2493_v20, %v1239_v35 }
 0x171   : > { %v865_v26 = vpop.f32.mrb[60].mxu0 }
 0x172   : > { %v1589_v28 = vpack.c.bf16 %v1281_v4, %v1281_v4  ;;  %v1282_v31 = vmax.f32 %v1264_v23, 0.0  ;;  %v900_v42 = vadd.f32 %v865_v26, %v2477_v14  ;;  %v1205_v27 = vpop.f32.mrb[60].mxu1  ;;  %v1831_v32 = vpop.f32.mrb[61].mxu0 }
 0x173   : > { %v1883_v34 = vpop.f32.mrb[61].mxu1  ;;  %v868_v5 = vpop.f32.mrb[62].mxu0 }
 0x174   : > { %1385 = vst.msk [vmem:[%s2501_s11 + $0x28] sm:$0xf] %vm1361_vm4, %v1589_v28  ;;  %v1590_v43 = vpack.c.bf16 %v1282_v31, %v1282_v31  ;;  %v1240_v46 = vadd.f32 %v1205_v27, %v900_v42  ;;  %v901_v8 = vadd.f32 %v868_v5, %v2479_v44  ;;  %v1208_v7 = vpop.f32.mrb[62].mxu1  ;;  %v1832_v48 = vpop.f32.mrb[63].mxu0  ;;  %v1398_v28 = vld [vmem:[%s2501_s11 + $0x44] sm:$0x1] }
 0x175   : > { %v1884_v53 = vpop.f32.mrb[63].mxu1 }
 0x176   : > { %v1387_v14 = vsel %vm2505_vm5, %v1590_v43, %v1386_v58  ;;  %v1265_v59 = vadd.f32 %v2493_v20, %v1240_v46  ;;  %v1241_v3 = vadd.f32 %v1208_v7, %v901_v8 }
 0x177   : > { %1388 = vst [vmem:[%s2501_s11 + $0x2c] sm:$0x1] %v1387_v14 }
 0x178   : > { %v1283_v16 = vmax.f32 %v1265_v59, 0.0  ;;  %v1266_v63 = vadd.f32 %v2493_v20, %v1241_v3 }
 0x179   : > { %v873_v19 = vpop.f32.mrb[64].mxu0 }
 0x17a   : > { %v1591_v0 = vpack.c.bf16 %v1283_v16, %v1283_v16  ;;  %v1284_v37 = vmax.f32 %v1266_v63, 0.0  ;;  %v902_v44 = vadd.f32 %v873_v19, %v2481_v1  ;;  %v1213_v25 = vpop.f32.mrb[64].mxu1  ;;  %v1835_v50 = vpop.f32.mrb[65].mxu0 }
 0x17b   : > { %v1887_v2 = vpop.f32.mrb[65].mxu1  ;;  %v876_v17 = vpop.f32.mrb[66].mxu0 }
 0x17c   : > { %1389 = vst.msk [vmem:[%s2501_s11 + $0x30] sm:$0xf] %vm1361_vm4, %v1591_v0  ;;  %v1592_v21 = vpack.c.bf16 %v1284_v37, %v1284_v37  ;;  %v1242_v33 = vadd.f32 %v1213_v25, %v902_v44  ;;  %v903_v38 = vadd.f32 %v876_v17, %v2483_v45  ;;  %v1216_v39 = vpop.f32.mrb[66].mxu1  ;;  %v1836_v11 = vpop.f32.mrb[67].mxu0 }
 0x17d   : > { %v1888_v47 = vpop.f32.mrb[67].mxu1 }
 0x17e   : > { %v1391_v1 = vsel %vm2505_vm5, %v1592_v21, %v1390_v57  ;;  %v1267_v49 = vadd.f32 %v2493_v20, %v1242_v33  ;;  %v1243_v51 = vadd.f32 %v1216_v39, %v903_v38 }
 0x17f   : > { %1392 = vst [vmem:[%s2501_s11 + $0x34] sm:$0x1] %v1391_v1 }
 0x180   : > { %v1285_v52 = vmax.f32 %v1267_v49, 0.0  ;;  %v1268_v54 = vadd.f32 %v2493_v20, %v1243_v51 }
 0x181   : > { %v881_v60 = vpop.f32.mrb[68].mxu0 }
 0x182   : > { %v1593_v61 = vpack.c.bf16 %v1285_v52, %v1285_v52  ;;  %v1286_v29 = vmax.f32 %v1268_v54, 0.0  ;;  %v904_v45 = vadd.f32 %v881_v60, %v2485_v56  ;;  %v1221_v62 = vpop.f32.mrb[68].mxu1  ;;  %v1839_v24 = vpop.f32.mrb[69].mxu0 }
 0x183   : > { %v1891_v6 = vpop.f32.mrb[69].mxu1  ;;  %v884_v9 = vpop.f32.mrb[70].mxu0 }
 0x184   : > { %1393 = vst.msk [vmem:[%s2501_s11 + $0x38] sm:$0xf] %vm1361_vm4, %v1593_v61  ;;  %v1594_v55 = vpack.c.bf16 %v1286_v29, %v1286_v29  ;;  %v1244_v12 = vadd.f32 %v1221_v62, %v904_v45  ;;  %v905_v18 = vadd.f32 %v884_v9, %v2487_v15  ;;  %v1224_v13 = vpop.f32.mrb[70].mxu1  ;;  %v1840_v22 = vpop.f32.mrb[71].mxu0 }
 0x185   : > { %v1892_v40 = vpop.f32.mrb[71].mxu1 }
 0x186   : > { %v1395_v56 = vsel %vm2505_vm5, %v1594_v55, %v1394_v30  ;;  %v1269_v41 = vadd.f32 %v2493_v20, %v1244_v12  ;;  %v1245_v10 = vadd.f32 %v1224_v13, %v905_v18 }
 0x187   : > { %1396 = vst [vmem:[%s2501_s11 + $0x3c] sm:$0x1] %v1395_v56 }
 0x188   : > { %v1287_v35 = vmax.f32 %v1269_v41, 0.0  ;;  %v1270_v4 = vadd.f32 %v2493_v20, %v1245_v10 }
 0x18a   : > { %v1595_v23 = vpack.c.bf16 %v1287_v35, %v1287_v35  ;;  %v1288_v26 = vmax.f32 %v1270_v4, 0.0 }
 0x18c   : > { %1397 = vst.msk [vmem:[%s2501_s11 + $0x40] sm:$0xf] %vm1361_vm4, %v1595_v23  ;;  %v1596_v15 = vpack.c.bf16 %v1288_v26, %v1288_v26 }
 0x18e   : > { %v1399_v31 = vsel %vm2505_vm5, %v1596_v15, %v1398_v28 }
 0x18f   : > { %1400 = vst [vmem:[%s2501_s11 + $0x44] sm:$0x1] %v1399_v31 }
 0x190 PF: > { %s13_s12 = sadd.s32 1, %s1970_s12  }
 0x191   : > { %p10_p4 = scmp.ge.s32.totalorder %s13_s12, 4  }
 0x193   :  { %12 = sbr.rel (!%p10_p4) target bundleno = 1 (0x1), region = 63 }

// kernel: policy_forward.7
= control target key start
LH: loop header
LB: loop body
LE: loop exit
PB: predicated region body
PF: predicated region fallthrough
CT: control target
= control target key end

     0   :  { %v439_v27 = vlaneseq  ;;  %v3375_v35 = vmov 1966171168   ;;  %vm3377_vm0 = vmmov 0   ;;  %s4151_s0 = inlined_call_operand.vmem [shape: bf16[2,3136], index: 0, kind: input, shape index: {}]   ;;  %s4152_s1 = inlined_call_operand.vmem [shape: bf16[3136,128], index: 1, kind: input, shape index: {}]   ;;  %s4153_s2 = inlined_call_operand.vmem [shape: f32[1,128], index: 2, kind: input, shape index: {}]   ;;  %s4154_s3 = inlined_call_operand.vmem [shape: bf16[128,128], index: 3, kind: input, shape index: {}]   ;;  %s4155_s4 = inlined_call_operand.vmem [shape: f32[1,128], index: 4, kind: input, shape index: {}]   ;;  %s4156_s5 = inlined_call_operand.vmem [shape: bf16[128,128], index: 5, kind: input, shape index: {}]   ;;  %s4157_s6 = inlined_call_operand.vmem [shape: f32[1,128], index: 6, kind: input, shape index: {}]   ;;  %s4158_s7 = inlined_call_operand.hbm [shape: f32[2,128], index: 7, kind: output, shape index: {}]  }
   0x1   :  { %v3136_v0 = vld [vmem:[%s4152_s1 + $0x40] sm:$0xff]   ;;  %v3140_v4 = vld [vmem:[%s4152_s1 + $0x48] sm:$0xff]   ;;  %v3144_v8 = vld [vmem:[%s4152_s1 + $0x50] sm:$0xff]   ;;  %v437_v36 = vunpack.c.l.s4 %v3375_v35 }
   0x2   :  { %v3137_v1 = vld [vmem:[%s4152_s1] sm:$0xff]   ;;  %2791 = vmatprep.subr.bf16.mxu0 %v3136_v0  ;;  %v3141_v5 = vld [vmem:[%s4152_s1 + $0x8] sm:$0xff]   ;;  %v3145_v9 = vld [vmem:[%s4152_s1 + $0x10] sm:$0xff]   ;;  %v440_v32 = vshrl.u32 %v439_v27, 7 }
   0x3   :  { %v3138_v2 = vld [vmem:[%s4152_s1 + $0xc0] sm:$0xff]   ;;  %2792 = vmatpush3.bf16.msra.mxu0 %v3137_v1  ;;  %v3142_v6 = vld [vmem:[%s4152_s1 + $0xc8] sm:$0xff]   ;;  %v3146_v10 = vld [vmem:[%s4152_s1 + $0xd0] sm:$0xff]   ;;  %v438_v39 = vunpack.c.0.s8 %v437_v36 }
   0x4   :  { %v3139_v3 = vld [vmem:[%s4152_s1 + $0x80] sm:$0xff]   ;;  %2813 = vmatprep.subr.bf16.mxu1 %v3138_v2  ;;  %2793 = vmatprep.subr.bf16.mxu0 %v3140_v4  ;;  %v3143_v7 = vld [vmem:[%s4152_s1 + $0x88] sm:$0xff]   ;;  %v3147_v11 = vld [vmem:[%s4152_s1 + $0x90] sm:$0xff]  }
   0x5   :  { %2814 = vmatpush3.bf16.msra.mxu1 %v3139_v3  ;;  %v3148_v12 = vld [vmem:[%s4152_s1 + $0x58] sm:$0xff]   ;;  %v3152_v16 = vld [vmem:[%s4152_s1 + $0x60] sm:$0xff]   ;;  %v3156_v20 = vld [vmem:[%s4152_s1 + $0x68] sm:$0xff]   ;;  %v3525_v41 = vsub.s32 %v438_v39, %v440_v32 }
   0x6   :  { %2815 = vmatprep.subr.bf16.mxu1 %v3142_v6  ;;  %v3149_v13 = vld [vmem:[%s4152_s1 + $0x18] sm:$0xff]   ;;  %v3153_v17 = vld [vmem:[%s4152_s1 + $0x20] sm:$0xff]   ;;  %v3157_v21 = vld [vmem:[%s4152_s1 + $0x28] sm:$0xff]  }
   0x7   :  { %2794 = vmatpush3.bf16.msra.mxu0 %v3141_v5  ;;  %v3150_v14 = vld [vmem:[%s4152_s1 + $0xd8] sm:$0xff]   ;;  %v3154_v18 = vld [vmem:[%s4152_s1 + $0xe0] sm:$0xff]   ;;  %v3158_v22 = vld [vmem:[%s4152_s1 + $0xe8] sm:$0xff]  }
   0x8   :  { %2795 = vmatprep.subr.bf16.mxu0 %v3144_v8  ;;  %v3151_v15 = vld [vmem:[%s4152_s1 + $0x98] sm:$0xff]   ;;  %v3155_v19 = vld [vmem:[%s4152_s1 + $0xa0] sm:$0xff]   ;;  %v3159_v23 = vld [vmem:[%s4152_s1 + $0xa8] sm:$0xff]  }
   0x9   :  { %2816 = vmatpush3.bf16.msra.mxu1 %v3143_v7  ;;  %v3160_v24 = vld [vmem:[%s4152_s1 + $0x70] sm:$0xff]   ;;  %v3164_v29 = vld [vmem:[%s4152_s1 + $0x78] sm:$0xff]   ;;  %v28_v33 = vld [vmem:[%s4151_s0] sm:$0xff] }
   0xa   :  { %2817 = vmatprep.subr.bf16.mxu1 %v3146_v10  ;;  %v3161_v25 = vld [vmem:[%s4152_s1 + $0x30] sm:$0xff]   ;;  %v3165_v30 = vld [vmem:[%s4152_s1 + $0x38] sm:$0xff]   ;;  %v3169_v37 = vld [vmem:[%s4152_s1 + $0x140] sm:$0xff]   ;;  %v435_v38 = vcombine.high %v28_v33, %v28_v33  ;;  %v442_v42 = vrot.slane %v28_v33, %v3525_v41 }
   0xb   :  { %2796 = vmatpush3.bf16.msra.mxu0 %v3145_v9  ;;  %v3162_v26 = vld [vmem:[%s4152_s1 + $0xf0] sm:$0xff]   ;;  %v3166_v31 = vld [vmem:[%s4152_s1 + $0xf8] sm:$0xff]   ;;  %v3171_v40 = vld [vmem:[%s4152_s1 + $0x1c0] sm:$0xff]  }
   0xc   :  { %2797 = vmatprep.subr.bf16.mxu0 %v3148_v12  ;;  %v3163_v28 = vld [vmem:[%s4152_s1 + $0xb0] sm:$0xff]   ;;  %v3168_v34 = vld [vmem:[%s4152_s1 + $0xb8] sm:$0xff]   ;;  %v3529_v43 = vrot.slane %v435_v38, %v3525_v41  ;;  %v450_v44 = vcombine.high %v442_v42, %v442_v42  ;;  %v458_v45 = vrot.slane %v442_v42, %v3525_v41  ;;  %v3170_v48 = vld [vmem:[%s4152_s1 + $0x100] sm:$0xff]  }
   0xd   :  { %2818 = vmatpush3.bf16.msra.mxu1 %v3147_v11  ;;  %v3173_v51 = vld [vmem:[%s4152_s1 + $0x148] sm:$0xff]   ;;  %v3172_v53 = vld [vmem:[%s4152_s1 + $0x180] sm:$0xff]   ;;  %v3177_v57 = vld [vmem:[%s4152_s1 + $0x150] sm:$0xff]  }
   0xe   :  { %2819 = vmatprep.subr.bf16.mxu1 %v3150_v14  ;;  %v451_v46 = vcombine.high %v3529_v43, %v3529_v43  ;;  %v472_v47 = vrot.slane %v450_v44, %v3525_v41  ;;  %v480_v50 = vcombine.high %v458_v45, %v458_v45  ;;  %v3175_v54 = vld [vmem:[%s4152_s1 + $0x1c8] sm:$0xff]   ;;  %v3179_v59 = vld [vmem:[%s4152_s1 + $0x1d0] sm:$0xff]   ;;  %v3181_v61 = vld [vmem:[%s4152_s1 + $0x158] sm:$0xff]  }
   0xf   :  { %2798 = vmatpush3.bf16.msra.mxu0 %v3149_v13  ;;  %v3174_v56 = vld [vmem:[%s4152_s1 + $0x108] sm:$0xff]   ;;  %v3178_v60 = vld [vmem:[%s4152_s1 + $0x110] sm:$0xff]   ;;  %v3183_v63 = vld [vmem:[%s4152_s1 + $0x1d8] sm:$0xff]  }
  0x10   :  { %2799 = vmatprep.subr.bf16.mxu0 %v3152_v16  ;;  %v479_v49 = vrot.slane %v451_v46, %v3525_v41  ;;  %1832 = vmatprep.mubr.bf16.mxu0 %v472_v47  ;;  %v482_v52 = vcombine.high %v472_v47, %v472_v47  ;;  %v3176_v58 = vld [vmem:[%s4152_s1 + $0x188] sm:$0xff]   ;;  %v3180_v62 = vld [vmem:[%s4152_s1 + $0x190] sm:$0xff]   ;;  %v3182_v0 = vld [vmem:[%s4152_s1 + $0x118] sm:$0xff]  }
  0x11   :  { %2820 = vmatpush3.bf16.msra.mxu1 %v3151_v15  ;;  %v3185_v1 = vld [vmem:[%s4152_s1 + $0x160] sm:$0xff]   ;;  %v3184_v2 = vld [vmem:[%s4152_s1 + $0x198] sm:$0xff]   ;;  %v3189_v5 = vld [vmem:[%s4152_s1 + $0x168] sm:$0xff]  }
  0x12   :  { %2821 = vmatprep.subr.bf16.mxu1 %v3154_v18  ;;  %v483_v55 = vcombine.high %v479_v49, %v479_v49  ;;  %1872 = vmatprep.mubr.bf16.mxu1 %v482_v52  ;;  %v3187_v3 = vld [vmem:[%s4152_s1 + $0x1e0] sm:$0xff]   ;;  %v3191_v7 = vld [vmem:[%s4152_s1 + $0x1e8] sm:$0xff]   ;;  %v3193_v9 = vld [vmem:[%s4152_s1 + $0x170] sm:$0xff]  }
  0x13   :  { %2800 = vmatpush3.bf16.msra.mxu0 %v3153_v17  ;;  %v3186_v4 = vld [vmem:[%s4152_s1 + $0x120] sm:$0xff]   ;;  %v3190_v8 = vld [vmem:[%s4152_s1 + $0x128] sm:$0xff]   ;;  %v3195_v11 = vld [vmem:[%s4152_s1 + $0x1f0] sm:$0xff]   ;;  %v465_v17 = vrot.slane %v3529_v43, %v3525_v41 }
  0x14   :  { %2801 = vmatprep.subr.bf16.mxu0 %v3156_v20  ;;  %v3188_v6 = vld [vmem:[%s4152_s1 + $0x1a0] sm:$0xff]   ;;  %v3192_v10 = vld [vmem:[%s4152_s1 + $0x1a8] sm:$0xff]   ;;  %v3194_v12 = vld [vmem:[%s4152_s1 + $0x130] sm:$0xff]  }
  0x15   :  { %2822 = vmatpush3.bf16.msra.mxu1 %v3155_v19  ;;  %v3197_v13 = vld [vmem:[%s4152_s1 + $0x178] sm:$0xff]   ;;  %v3196_v14 = vld [vmem:[%s4152_s1 + $0x1b0] sm:$0xff]   ;;  %v3201_v18 = vld [vmem:[%s4152_s1 + $0x240] sm:$0xff]  }
  0x16   :  { %2823 = vmatprep.subr.bf16.mxu1 %v3158_v22  ;;  %v3199_v15 = vld [vmem:[%s4152_s1 + $0x1f8] sm:$0xff]   ;;  %v3203_v20 = vld [vmem:[%s4152_s1 + $0x2c0] sm:$0xff]   ;;  %v481_v22 = vcombine.high %v465_v17, %v465_v17  ;;  %v3209_v27 = vld [vmem:[%s4152_s1 + $0x250] sm:$0xff]  }
  0x17   :  { %2802 = vmatpush3.bf16.msra.mxu0 %v3157_v21  ;;  %v3198_v16 = vld [vmem:[%s4152_s1 + $0x138] sm:$0xff]   ;;  %v3202_v21 = vld [vmem:[%s4152_s1 + $0x200] sm:$0xff]   ;;  %v3212_v32 = vld [vmem:[%s4152_s1 + $0x290] sm:$0xff]  }
  0x18   :  { %2803 = vmatprep.subr.bf16.mxu0 %v3160_v24  ;;  %v3200_v19 = vld [vmem:[%s4152_s1 + $0x1b8] sm:$0xff]   ;;  %v3204_v24 = vld [vmem:[%s4152_s1 + $0x280] sm:$0xff]   ;;  %v3221_v39 = vld [vmem:[%s4152_s1 + $0x268] sm:$0xff]  }
  0x19   :  { %2824 = vmatpush3.bf16.msra.mxu1 %v3159_v23  ;;  %v3205_v23 = vld [vmem:[%s4152_s1 + $0x248] sm:$0xff]   ;;  %v3215_v33 = vld [vmem:[%s4152_s1 + $0x2d8] sm:$0xff]   ;;  %v3217_v35 = vld [vmem:[%s4152_s1 + $0x260] sm:$0xff]  }
  0x1a   :  { %2825 = vmatprep.subr.bf16.mxu1 %v3162_v26  ;;  %v3206_v26 = vld [vmem:[%s4152_s1 + $0x208] sm:$0xff]   ;;  %v3216_v36 = vld [vmem:[%s4152_s1 + $0x298] sm:$0xff]   ;;  %v3218_v38 = vld [vmem:[%s4152_s1 + $0x220] sm:$0xff]  }
  0x1b   :  { %2804 = vmatpush3.bf16.msra.mxu0 %v3161_v25  ;;  %v3207_v25 = vld [vmem:[%s4152_s1 + $0x2c8] sm:$0xff]   ;;  %v3225_v44 = vld [vmem:[%s4152_s1 + $0x270] sm:$0xff]  }
  0x1c   :  { %2805 = vmatprep.subr.bf16.mxu0 %v3164_v29  ;;  %v3211_v29 = vld [vmem:[%s4152_s1 + $0x2d0] sm:$0xff]   ;;  %v3223_v42 = vld [vmem:[%s4152_s1 + $0x2e8] sm:$0xff]  }
  0x1d   :  { %2826 = vmatpush3.bf16.msra.mxu1 %v3163_v28  ;;  %v3208_v28 = vld [vmem:[%s4152_s1 + $0x288] sm:$0xff]  }
  0x1e   :  { %2827 = vmatprep.subr.bf16.mxu1 %v3166_v31  ;;  %v3213_v31 = vld [vmem:[%s4152_s1 + $0x258] sm:$0xff]   ;;  %v3222_v43 = vld [vmem:[%s4152_s1 + $0x228] sm:$0xff]  }
  0x1f   :  { %2806 = vmatpush3.bf16.msra.mxu0 %v3165_v30  ;;  %v3210_v30 = vld [vmem:[%s4152_s1 + $0x210] sm:$0xff]   ;;  %v3224_v46 = vld [vmem:[%s4152_s1 + $0x2a8] sm:$0xff]  }
  0x20   :  { %2835 = vmatprep.subr.bf16.mxu0 %v3169_v37  ;;  %v3219_v37 = vld [vmem:[%s4152_s1 + $0x2e0] sm:$0xff]  }
  0x21   :  { %2828 = vmatpush3.bf16.msra.mxu1 %v3168_v34  ;;  %v3214_v34 = vld [vmem:[%s4152_s1 + $0x218] sm:$0xff]  }
  0x22   :  { %2857 = vmatprep.subr.bf16.mxu1 %v3171_v40  ;;  %1833 = vmatmul.mubr.bf16.vlgmr.msra.gmra.mrb[0].mxu0 %v458_v45  ;;  %v3220_v40 = vld [vmem:[%s4152_s1 + $0x2a0] sm:$0xff]   ;;  %v29_v45 = vld [vmem:[%s4151_s0 + $0x8] sm:$0xff] }
  0x23   :  { %2836 = vmatpush3.bf16.msra.mxu0 %v3170_v48  ;;  %1912 = vmatprep.mubr.bf16.mxu0 %v479_v49  ;;  %v491_v47 = vrot.slane %v29_v45, %v3525_v41  ;;  %v484_v48 = vcombine.high %v29_v45, %v29_v45  ;;  %v3227_v49 = vld [vmem:[%s4152_s1 + $0x2f0] sm:$0xff]  }
  0x24   :  { %1873 = vmatmul.mubr.bf16.vlgmr.msra.gmra.mrb[0].mxu1 %v480_v50  ;;  %2837 = vmatprep.subr.bf16.mxu0 %v3173_v51  ;;  %v3226_v50 = vld [vmem:[%s4152_s1 + $0x230] sm:$0xff]  }
  0x25   :  { %2858 = vmatpush3.bf16.msra.mxu1 %v3172_v53  ;;  %1952 = vmatprep.mubr.bf16.mxu1 %v483_v55  ;;  %v499_v51 = vcombine.high %v491_v47, %v491_v47  ;;  %v3714_v52 = vrot.slane %v484_v48, %v3525_v41  ;;  %v3229_v53 = vld [vmem:[%s4152_s1 + $0x278] sm:$0xff]   ;;  %v3276_v45 = vld [vmem:[%s4152_s1 + $0x4d0] sm:$0xff]  }
  0x26   :  { %2859 = vmatprep.subr.bf16.mxu1 %v3175_v54  ;;  %v3228_v54 = vld [vmem:[%s4152_s1 + $0x2b0] sm:$0xff]  }
  0x27   :  { %2838 = vmatpush3.bf16.msra.mxu0 %v3174_v56  ;;  %v521_v55 = vrot.slane %v499_v51, %v3525_v41  ;;  %v500_v56 = vcombine.high %v3714_v52, %v3714_v52  ;;  %v3277_v48 = vld [vmem:[%s4152_s1 + $0x490] sm:$0xff]   ;;  %v3282_v51 = vld [vmem:[%s4152_s1 + $0x460] sm:$0xff]  }
  0x28   :  { %2839 = vmatprep.subr.bf16.mxu0 %v3177_v57  ;;  %v3231_v57 = vld [vmem:[%s4152_s1 + $0x2f8] sm:$0xff]  }
  0x29   :  { %2860 = vmatpush3.bf16.msra.mxu1 %v3176_v58  ;;  %v3230_v58 = vld [vmem:[%s4152_s1 + $0x238] sm:$0xff]  }
  0x2a   :  { %2861 = vmatprep.subr.bf16.mxu1 %v3179_v59  ;;  %v531_v59 = vcombine.high %v521_v55, %v521_v55 }
  0x2b   :  { %2840 = vmatpush3.bf16.msra.mxu0 %v3178_v60  ;;  %v507_v60 = vrot.slane %v491_v47, %v3525_v41  ;;  %v3278_v47 = vld [vmem:[%s4152_s1 + $0x458] sm:$0xff]  }
  0x2c   :  { %2841 = vmatprep.subr.bf16.mxu0 %v3181_v61  ;;  %v3233_v61 = vld [vmem:[%s4152_s1 + $0x340] sm:$0xff]  }
  0x2d   :  { %2862 = vmatpush3.bf16.msra.mxu1 %v3180_v62  ;;  %v3232_v62 = vld [vmem:[%s4152_s1 + $0x2b8] sm:$0xff]  }
  0x2e   :  { %2863 = vmatprep.subr.bf16.mxu1 %v3183_v63  ;;  %v528_v63 = vrot.slane %v500_v56, %v3525_v41  ;;  %v3285_v56 = vld [vmem:[%s4152_s1 + $0x4a0] sm:$0xff]  }
  0x2f   :  { %2842 = vmatpush3.bf16.msra.mxu0 %v3182_v0  ;;  %v3235_v0 = vld [vmem:[%s4152_s1 + $0x3c0] sm:$0xff]  }
  0x30   :  { %2843 = vmatprep.subr.bf16.mxu0 %v3185_v1  ;;  %v3234_v1 = vld [vmem:[%s4152_s1 + $0x300] sm:$0xff]  }
  0x31   :  { %2864 = vmatpush3.bf16.msra.mxu1 %v3184_v2  ;;  %v529_v2 = vcombine.high %v507_v60, %v507_v60 }
  0x32   :  { %2865 = vmatprep.subr.bf16.mxu1 %v3187_v3  ;;  %v3237_v3 = vld [vmem:[%s4152_s1 + $0x348] sm:$0xff]  }
  0x33   :  { %2844 = vmatpush3.bf16.msra.mxu0 %v3186_v4  ;;  %v3236_v4 = vld [vmem:[%s4152_s1 + $0x380] sm:$0xff]  }
  0x34   :  { %2845 = vmatprep.subr.bf16.mxu0 %v3189_v5  ;;  %v532_v5 = vcombine.high %v528_v63, %v528_v63 }
  0x35   :  { %2866 = vmatpush3.bf16.msra.mxu1 %v3188_v6  ;;  %v3239_v6 = vld [vmem:[%s4152_s1 + $0x3c8] sm:$0xff]  }
  0x36   :  { %2867 = vmatprep.subr.bf16.mxu1 %v3191_v7  ;;  %v3238_v7 = vld [vmem:[%s4152_s1 + $0x308] sm:$0xff]  }
  0x37   :  { %2846 = vmatpush3.bf16.msra.mxu0 %v3190_v8  ;;  %v3241_v8 = vld [vmem:[%s4152_s1 + $0x350] sm:$0xff]  }
  0x38   :  { %2847 = vmatprep.subr.bf16.mxu0 %v3193_v9  ;;  %v3240_v9 = vld [vmem:[%s4152_s1 + $0x388] sm:$0xff]  }
  0x39   :  { %2868 = vmatpush3.bf16.msra.mxu1 %v3192_v10  ;;  %v3243_v10 = vld [vmem:[%s4152_s1 + $0x3d0] sm:$0xff]  }
  0x3a   :  { %2869 = vmatprep.subr.bf16.mxu1 %v3195_v11  ;;  %v3242_v11 = vld [vmem:[%s4152_s1 + $0x310] sm:$0xff]  }
  0x3b   :  { %2848 = vmatpush3.bf16.msra.mxu0 %v3194_v12  ;;  %v3245_v12 = vld [vmem:[%s4152_s1 + $0x358] sm:$0xff]  }
  0x3c   :  { %2849 = vmatprep.subr.bf16.mxu0 %v3197_v13  ;;  %v3244_v13 = vld [vmem:[%s4152_s1 + $0x390] sm:$0xff]  }
  0x3d   :  { %2870 = vmatpush3.bf16.msra.mxu1 %v3196_v14  ;;  %v3247_v14 = vld [vmem:[%s4152_s1 + $0x3d8] sm:$0xff]  }
  0x3e   :  { %2871 = vmatprep.subr.bf16.mxu1 %v3199_v15  ;;  %v3246_v15 = vld [vmem:[%s4152_s1 + $0x318] sm:$0xff]  }
  0x3f   :  { %2850 = vmatpush3.bf16.msra.mxu0 %v3198_v16  ;;  %v3249_v16 = vld [vmem:[%s4152_s1 + $0x360] sm:$0xff]  }
  0x40   :  { %2879 = vmatprep.subr.bf16.mxu0 %v3201_v18  ;;  %v3251_v18 = vld [vmem:[%s4152_s1 + $0x3e0] sm:$0xff]  }
  0x41   :  { %2872 = vmatpush3.bf16.msra.mxu1 %v3200_v19  ;;  %v3250_v19 = vld [vmem:[%s4152_s1 + $0x320] sm:$0xff]  }
  0x42   :  { %1913 = vmatmul.mubr.bf16.vlgmr.msra.gmra.mrb[4].mxu0 %v465_v17  ;;  %2901 = vmatprep.subr.bf16.mxu1 %v3203_v20  ;;  %v3248_v17 = vld [vmem:[%s4152_s1 + $0x398] sm:$0xff]   ;;  %v3253_v20 = vld [vmem:[%s4152_s1 + $0x368] sm:$0xff]  }
  0x43   :  { %2880 = vmatpush3.bf16.msra.mxu0 %v3202_v21  ;;  %1992 = vmatprep.mubr.bf16.mxu0 %v521_v55  ;;  %v3252_v21 = vld [vmem:[%s4152_s1 + $0x3a0] sm:$0xff]   ;;  %v3286_v55 = vld [vmem:[%s4152_s1 + $0x468] sm:$0xff]  }
  0x44   :  { %1953 = vmatmul.mubr.bf16.vlgmr.msra.gmra.mrb[4].mxu1 %v481_v22  ;;  %2881 = vmatprep.subr.bf16.mxu0 %v3205_v23  ;;  %v3255_v22 = vld [vmem:[%s4152_s1 + $0x3e8] sm:$0xff]  }
  0x45   :  { %2902 = vmatpush3.bf16.msra.mxu1 %v3204_v24  ;;  %2032 = vmatprep.mubr.bf16.mxu1 %v531_v59  ;;  %v3254_v23 = vld [vmem:[%s4152_s1 + $0x328] sm:$0xff]   ;;  %v3257_v24 = vld [vmem:[%s4152_s1 + $0x370] sm:$0xff]  }
  0x46   :  { %2903 = vmatprep.subr.bf16.mxu1 %v3207_v25  ;;  %v3256_v25 = vld [vmem:[%s4152_s1 + $0x3a8] sm:$0xff]   ;;  %v3290_v59 = vld [vmem:[%s4152_s1 + $0x470] sm:$0xff]  }
  0x47   :  { %2882 = vmatpush3.bf16.msra.mxu0 %v3206_v26  ;;  %v3259_v26 = vld [vmem:[%s4152_s1 + $0x3f0] sm:$0xff]  }
  0x48   :  { %2883 = vmatprep.subr.bf16.mxu0 %v3209_v27  ;;  %v3258_v27 = vld [vmem:[%s4152_s1 + $0x330] sm:$0xff]  }
  0x49   :  { %2904 = vmatpush3.bf16.msra.mxu1 %v3208_v28  ;;  %v3261_v28 = vld [vmem:[%s4152_s1 + $0x378] sm:$0xff]  }
  0x4a   :  { %2905 = vmatprep.subr.bf16.mxu1 %v3211_v29  ;;  %v3260_v29 = vld [vmem:[%s4152_s1 + $0x3b0] sm:$0xff]  }
  0x4b   :  { %2884 = vmatpush3.bf16.msra.mxu0 %v3210_v30  ;;  %v3263_v30 = vld [vmem:[%s4152_s1 + $0x3f8] sm:$0xff]  }
  0x4c   :  { %2885 = vmatprep.subr.bf16.mxu0 %v3213_v31  ;;  %v3262_v31 = vld [vmem:[%s4152_s1 + $0x338] sm:$0xff]  }
  0x4d   :  { %2906 = vmatpush3.bf16.msra.mxu1 %v3212_v32  ;;  %v514_v32 = vrot.slane %v3714_v52, %v3525_v41  ;;  %v3281_v52 = vld [vmem:[%s4152_s1 + $0x498] sm:$0xff]  }
  0x4e   :  { %2907 = vmatprep.subr.bf16.mxu1 %v3215_v33  ;;  %v3266_v33 = vld [vmem:[%s4152_s1 + $0x440] sm:$0xff]  }
  0x4f   :  { %2886 = vmatpush3.bf16.msra.mxu0 %v3214_v34  ;;  %v3265_v34 = vld [vmem:[%s4152_s1 + $0x3b8] sm:$0xff]  }
  0x50   :  { %2887 = vmatprep.subr.bf16.mxu0 %v3217_v35  ;;  %v3268_v35 = vld [vmem:[%s4152_s1 + $0x4c0] sm:$0xff]  }
  0x51   :  { %2908 = vmatpush3.bf16.msra.mxu1 %v3216_v36  ;;  %v3267_v36 = vld [vmem:[%s4152_s1 + $0x400] sm:$0xff]  }
  0x52   :  { %2909 = vmatprep.subr.bf16.mxu1 %v3219_v37  ;;  %v530_v37 = vcombine.high %v514_v32, %v514_v32 }
  0x53   :  { %2888 = vmatpush3.bf16.msra.mxu0 %v3218_v38  ;;  %v3270_v38 = vld [vmem:[%s4152_s1 + $0x448] sm:$0xff]  }
  0x54   :  { %2889 = vmatprep.subr.bf16.mxu0 %v3221_v39  ;;  %v3269_v39 = vld [vmem:[%s4152_s1 + $0x480] sm:$0xff]  }
  0x55   :  { %2910 = vmatpush3.bf16.msra.mxu1 %v3220_v40  ;;  %v3272_v40 = vld [vmem:[%s4152_s1 + $0x4c8] sm:$0xff]  }
  0x56   :  { %2911 = vmatprep.subr.bf16.mxu1 %v3223_v42  ;;  %v3271_v42 = vld [vmem:[%s4152_s1 + $0x408] sm:$0xff]  }
  0x57   :  { %2890 = vmatpush3.bf16.msra.mxu0 %v3222_v43  ;;  %v3274_v43 = vld [vmem:[%s4152_s1 + $0x450] sm:$0xff]  }
  0x58   :  { %2891 = vmatprep.subr.bf16.mxu0 %v3225_v44  ;;  %v3273_v44 = vld [vmem:[%s4152_s1 + $0x488] sm:$0xff]  }
  0x59   :  { %2912 = vmatpush3.bf16.msra.mxu1 %v3224_v46  ;;  %v3275_v46 = vld [vmem:[%s4152_s1 + $0x410] sm:$0xff]  }
  0x5a   :  { %2913 = vmatprep.subr.bf16.mxu1 %v3227_v49  ;;  %v3280_v49 = vld [vmem:[%s4152_s1 + $0x4d8] sm:$0xff]  }
  0x5b   :  { %2892 = vmatpush3.bf16.msra.mxu0 %v3226_v50  ;;  %v3279_v50 = vld [vmem:[%s4152_s1 + $0x418] sm:$0xff]  }
  0x5c   :  { %2893 = vmatprep.subr.bf16.mxu0 %v3229_v53  ;;  %v3284_v53 = vld [vmem:[%s4152_s1 + $0x4e0] sm:$0xff]  }
  0x5d   :  { %2914 = vmatpush3.bf16.msra.mxu1 %v3228_v54  ;;  %v3283_v54 = vld [vmem:[%s4152_s1 + $0x420] sm:$0xff]  }
  0x5e   :  { %2915 = vmatprep.subr.bf16.mxu1 %v3231_v57  ;;  %v3288_v57 = vld [vmem:[%s4152_s1 + $0x4e8] sm:$0xff]  }
  0x5f   :  { %2894 = vmatpush3.bf16.msra.mxu0 %v3230_v58  ;;  %v3287_v58 = vld [vmem:[%s4152_s1 + $0x428] sm:$0xff]  }
  0x60   :  { %2923 = vmatprep.subr.bf16.mxu0 %v3233_v61  ;;  %v3289_v61 = vld [vmem:[%s4152_s1 + $0x4a8] sm:$0xff]  }
  0x61   :  { %2916 = vmatpush3.bf16.msra.mxu1 %v3232_v62 }
  0x62   :  { %1993 = vmatmul.mubr.bf16.vlgmr.msra.gmra.mrb[8].mxu0 %v507_v60  ;;  %2945 = vmatprep.subr.bf16.mxu1 %v3235_v0  ;;  %v30_v60 = vld [vmem:[%s4151_s0 + $0x10] sm:$0xff] }
  0x63   :  { %2924 = vmatpush3.bf16.msra.mxu0 %v3234_v1  ;;  %2072 = vmatprep.mubr.bf16.mxu0 %v528_v63  ;;  %v540_v62 = vrot.slane %v30_v60, %v3525_v41  ;;  %v533_v63 = vcombine.high %v30_v60, %v30_v60  ;;  %v3292_v0 = vld [vmem:[%s4152_s1 + $0x4f0] sm:$0xff]  }
  0x64   :  { %2033 = vmatmul.mubr.bf16.vlgmr.msra.gmra.mrb[8].mxu1 %v529_v2  ;;  %2925 = vmatprep.subr.bf16.mxu0 %v3237_v3  ;;  %v3291_v1 = vld [vmem:[%s4152_s1 + $0x430] sm:$0xff]  }
  0x65   :  { %2946 = vmatpush3.bf16.msra.mxu1 %v3236_v4  ;;  %2112 = vmatprep.mubr.bf16.mxu1 %v532_v5  ;;  %v548_v2 = vcombine.high %v540_v62, %v540_v62  ;;  %v3920_v3 = vrot.slane %v533_v63, %v3525_v41  ;;  %v3294_v4 = vld [vmem:[%s4152_s1 + $0x478] sm:$0xff]   ;;  %v3293_v5 = vld [vmem:[%s4152_s1 + $0x4b0] sm:$0xff]  }
  0x66   :  { %2947 = vmatprep.subr.bf16.mxu1 %v3239_v6 }
  0x67   :  { %2926 = vmatpush3.bf16.msra.mxu0 %v3238_v7  ;;  %v570_v6 = vrot.slane %v548_v2, %v3525_v41  ;;  %v549_v7 = vcombine.high %v3920_v3, %v3920_v3 }
  0x68   :  { %2927 = vmatprep.subr.bf16.mxu0 %v3241_v8  ;;  %v3296_v8 = vld [vmem:[%s4152_s1 + $0x4f8] sm:$0xff]  }
  0x69   :  { %2948 = vmatpush3.bf16.msra.mxu1 %v3240_v9  ;;  %v3295_v9 = vld [vmem:[%s4152_s1 + $0x438] sm:$0xff]  }
  0x6a   :  { %2949 = vmatprep.subr.bf16.mxu1 %v3243_v10  ;;  %v580_v10 = vcombine.high %v570_v6, %v570_v6 }
  0x6b   :  { %2928 = vmatpush3.bf16.msra.mxu0 %v3242_v11  ;;  %v556_v11 = vrot.slane %v540_v62, %v3525_v41 }
  0x6c   :  { %2929 = vmatprep.subr.bf16.mxu0 %v3245_v12  ;;  %v3298_v12 = vld [vmem:[%s4152_s1 + $0x540] sm:$0xff]  }
  0x6d   :  { %2950 = vmatpush3.bf16.msra.mxu1 %v3244_v13  ;;  %v3297_v13 = vld [vmem:[%s4152_s1 + $0x4b8] sm:$0xff]  }
  0x6e   :  { %2951 = vmatprep.subr.bf16.mxu1 %v3247_v14  ;;  %v577_v14 = vrot.slane %v549_v7, %v3525_v41 }
  0x6f   :  { %2930 = vmatpush3.bf16.msra.mxu0 %v3246_v15  ;;  %v3300_v15 = vld [vmem:[%s4152_s1 + $0x5c0] sm:$0xff]  }
  0x70   :  { %2931 = vmatprep.subr.bf16.mxu0 %v3249_v16  ;;  %v3299_v16 = vld [vmem:[%s4152_s1 + $0x500] sm:$0xff]  }
  0x71   :  { %2952 = vmatpush3.bf16.msra.mxu1 %v3248_v17  ;;  %v578_v17 = vcombine.high %v556_v11, %v556_v11 }
  0x72   :  { %2953 = vmatprep.subr.bf16.mxu1 %v3251_v18  ;;  %v3302_v18 = vld [vmem:[%s4152_s1 + $0x548] sm:$0xff]  }
  0x73   :  { %2932 = vmatpush3.bf16.msra.mxu0 %v3250_v19  ;;  %v3301_v19 = vld [vmem:[%s4152_s1 + $0x580] sm:$0xff]  }
  0x74   :  { %2933 = vmatprep.subr.bf16.mxu0 %v3253_v20  ;;  %v581_v20 = vcombine.high %v577_v14, %v577_v14 }
  0x75   :  { %2954 = vmatpush3.bf16.msra.mxu1 %v3252_v21  ;;  %v3304_v21 = vld [vmem:[%s4152_s1 + $0x5c8] sm:$0xff]  }
  0x76   :  { %2955 = vmatprep.subr.bf16.mxu1 %v3255_v22  ;;  %v3303_v22 = vld [vmem:[%s4152_s1 + $0x508] sm:$0xff]  }
  0x77   :  { %2934 = vmatpush3.bf16.msra.mxu0 %v3254_v23  ;;  %v3306_v23 = vld [vmem:[%s4152_s1 + $0x550] sm:$0xff]  }
  0x78   :  { %2935 = vmatprep.subr.bf16.mxu0 %v3257_v24  ;;  %v3305_v24 = vld [vmem:[%s4152_s1 + $0x588] sm:$0xff]  }
  0x79   :  { %2956 = vmatpush3.bf16.msra.mxu1 %v3256_v25  ;;  %v3308_v25 = vld [vmem:[%s4152_s1 + $0x5d0] sm:$0xff]  }
  0x7a   :  { %2957 = vmatprep.subr.bf16.mxu1 %v3259_v26  ;;  %v3307_v26 = vld [vmem:[%s4152_s1 + $0x510] sm:$0xff]  }
  0x7b   :  { %2936 = vmatpush3.bf16.msra.mxu0 %v3258_v27  ;;  %v3310_v27 = vld [vmem:[%s4152_s1 + $0x558] sm:$0xff]  }
  0x7c   :  { %2937 = vmatprep.subr.bf16.mxu0 %v3261_v28  ;;  %v3309_v28 = vld [vmem:[%s4152_s1 + $0x590] sm:$0xff]  }
  0x7d   :  { %2958 = vmatpush3.bf16.msra.mxu1 %v3260_v29  ;;  %v3312_v29 = vld [vmem:[%s4152_s1 + $0x5d8] sm:$0xff]  }
  0x7e   :  { %2959 = vmatprep.subr.bf16.mxu1 %v3263_v30  ;;  %v3311_v30 = vld [vmem:[%s4152_s1 + $0x518] sm:$0xff]  }
  0x7f   :  { %2938 = vmatpush3.bf16.msra.mxu0 %v3262_v31  ;;  %v3314_v31 = vld [vmem:[%s4152_s1 + $0x560] sm:$0xff]  }
  0x80   :  { %2967 = vmatprep.subr.bf16.mxu0 %v3266_v33  ;;  %v3316_v33 = vld [vmem:[%s4152_s1 + $0x5e0] sm:$0xff]  }
  0x81   :  { %2960 = vmatpush3.bf16.msra.mxu1 %v3265_v34  ;;  %v3315_v34 = vld [vmem:[%s4152_s1 + $0x520] sm:$0xff]  }
  0x82   :  { %2073 = vmatmul.mubr.bf16.vlgmr.msra.gmra.mrb[12].mxu0 %v514_v32  ;;  %2989 = vmatprep.subr.bf16.mxu1 %v3268_v35  ;;  %v3313_v32 = vld [vmem:[%s4152_s1 + $0x598] sm:$0xff]   ;;  %v3318_v35 = vld [vmem:[%s4152_s1 + $0x568] sm:$0xff]  }
  0x83   :  { %2968 = vmatpush3.bf16.msra.mxu0 %v3267_v36  ;;  %2152 = vmatprep.mubr.bf16.mxu0 %v570_v6  ;;  %v3317_v36 = vld [vmem:[%s4152_s1 + $0x5a0] sm:$0xff]  }
  0x84   :  { %2113 = vmatmul.mubr.bf16.vlgmr.msra.gmra.mrb[12].mxu1 %v530_v37  ;;  %2969 = vmatprep.subr.bf16.mxu0 %v3270_v38  ;;  %v3320_v37 = vld [vmem:[%s4152_s1 + $0x5e8] sm:$0xff]  }
  0x85   :  { %2990 = vmatpush3.bf16.msra.mxu1 %v3269_v39  ;;  %2192 = vmatprep.mubr.bf16.mxu1 %v580_v10  ;;  %v3319_v38 = vld [vmem:[%s4152_s1 + $0x528] sm:$0xff]   ;;  %v3322_v39 = vld [vmem:[%s4152_s1 + $0x570] sm:$0xff]  }
  0x86   :  { %2991 = vmatprep.subr.bf16.mxu1 %v3272_v40  ;;  %v3321_v40 = vld [vmem:[%s4152_s1 + $0x5a8] sm:$0xff]  }
  0x87   :  { %2970 = vmatpush3.bf16.msra.mxu0 %v3271_v42  ;;  %v3324_v42 = vld [vmem:[%s4152_s1 + $0x5f0] sm:$0xff]  }
  0x88   :  { %2971 = vmatprep.subr.bf16.mxu0 %v3274_v43  ;;  %v3323_v43 = vld [vmem:[%s4152_s1 + $0x530] sm:$0xff]  }
  0x89   :  { %2992 = vmatpush3.bf16.msra.mxu1 %v3273_v44  ;;  %v3326_v44 = vld [vmem:[%s4152_s1 + $0x578] sm:$0xff]  }
  0x8a   :  { %2993 = vmatprep.subr.bf16.mxu1 %v3276_v45  ;;  %v3325_v45 = vld [vmem:[%s4152_s1 + $0x5b0] sm:$0xff]  }
  0x8b   :  { %2972 = vmatpush3.bf16.msra.mxu0 %v3275_v46  ;;  %v3327_v46 = vld [vmem:[%s4152_s1 + $0x538] sm:$0xff]  }
  0x8c   :  { %2973 = vmatprep.subr.bf16.mxu0 %v3278_v47  ;;  %v3328_v47 = vld [vmem:[%s4152_s1 + $0x5f8] sm:$0xff]  }
  0x8d   :  { %2994 = vmatpush3.bf16.msra.mxu1 %v3277_v48  ;;  %v3330_v48 = vld [vmem:[%s4152_s1 + $0x5b8] sm:$0xff]  }
  0x8e   :  { %2995 = vmatprep.subr.bf16.mxu1 %v3280_v49  ;;  %v563_v49 = vrot.slane %v3920_v3, %v3525_v41 }
  0x8f   :  { %2974 = vmatpush3.bf16.msra.mxu0 %v3279_v50  ;;  %v3331_v50 = vld [vmem:[%s4152_s1 + $0x600] sm:$0xff]  }
  0x90   :  { %2975 = vmatprep.subr.bf16.mxu0 %v3282_v51  ;;  %v3376_v51 = vmov 0.0  }
  0x91   :  { %2996 = vmatpush3.bf16.msra.mxu1 %v3281_v52  ;;  %v579_v52 = vcombine.high %v563_v49, %v563_v49 }
  0x92   :  { %2997 = vmatprep.subr.bf16.mxu1 %v3284_v53  ;;  %v3332_v53 = vld [vmem:[%s4152_s1 + $0x608] sm:$0xff]  }
  0x93   :  { %2976 = vmatpush3.bf16.msra.mxu0 %v3283_v54 }
  0x94   :  { %2977 = vmatprep.subr.bf16.mxu0 %v3286_v55 }
  0x95   :  { %2998 = vmatpush3.bf16.msra.mxu1 %v3285_v56 }
  0x96   :  { %2999 = vmatprep.subr.bf16.mxu1 %v3288_v57 }
  0x97   :  { %2978 = vmatpush3.bf16.msra.mxu0 %v3287_v58 }
  0x98   :  { %2979 = vmatprep.subr.bf16.mxu0 %v3290_v59 }
  0x99   :  { %3000 = vmatpush3.bf16.msra.mxu1 %v3289_v61 }
  0x9a   :  { %3001 = vmatprep.subr.bf16.mxu1 %v3292_v0 }
  0x9b   :  { %2980 = vmatpush3.bf16.msra.mxu0 %v3291_v1 }
  0x9c   :  { %2981 = vmatprep.subr.bf16.mxu0 %v3294_v4 }
  0x9d   :  { %3002 = vmatpush3.bf16.msra.mxu1 %v3293_v5 }
  0x9e   :  { %3003 = vmatprep.subr.bf16.mxu1 %v3296_v8 }
  0x9f   :  { %2982 = vmatpush3.bf16.msra.mxu0 %v3295_v9 }
  0xa0   :  { %3011 = vmatprep.subr.bf16.mxu0 %v3298_v12 }
  0xa1   :  { %3004 = vmatpush3.bf16.msra.mxu1 %v3297_v13 }
  0xa2   :  { %2153 = vmatmul.mubr.bf16.vlgmr.msra.gmra.mrb[16].mxu0 %v556_v11  ;;  %3033 = vmatprep.subr.bf16.mxu1 %v3300_v15 }
  0xa3   :  { %3012 = vmatpush3.bf16.msra.mxu0 %v3299_v16  ;;  %2232 = vmatprep.mubr.bf16.mxu0 %v577_v14 }
  0xa4   :  { %2193 = vmatmul.mubr.bf16.vlgmr.msra.gmra.mrb[16].mxu1 %v578_v17  ;;  %3013 = vmatprep.subr.bf16.mxu0 %v3302_v18 }
  0xa5   :  { %3034 = vmatpush3.bf16.msra.mxu1 %v3301_v19  ;;  %2272 = vmatprep.mubr.bf16.mxu1 %v581_v20 }
  0xa6   :  { %3035 = vmatprep.subr.bf16.mxu1 %v3304_v21 }
  0xa7   :  { %3014 = vmatpush3.bf16.msra.mxu0 %v3303_v22 }
  0xa8   :  { %3015 = vmatprep.subr.bf16.mxu0 %v3306_v23 }
  0xa9   :  { %3036 = vmatpush3.bf16.msra.mxu1 %v3305_v24 }
  0xaa   :  { %3037 = vmatprep.subr.bf16.mxu1 %v3308_v25 }
  0xab   :  { %3016 = vmatpush3.bf16.msra.mxu0 %v3307_v26 }
  0xac   :  { %3017 = vmatprep.subr.bf16.mxu0 %v3310_v27 }
  0xad   :  { %3038 = vmatpush3.bf16.msra.mxu1 %v3309_v28 }
  0xae   :  { %3039 = vmatprep.subr.bf16.mxu1 %v3312_v29 }
  0xaf   :  { %3018 = vmatpush3.bf16.msra.mxu0 %v3311_v30 }
  0xb0   :  { %3019 = vmatprep.subr.bf16.mxu0 %v3314_v31 }
  0xb1   :  { %3040 = vmatpush3.bf16.msra.mxu1 %v3313_v32 }
  0xb2   :  { %3041 = vmatprep.subr.bf16.mxu1 %v3316_v33 }
  0xb3   :  { %3020 = vmatpush3.bf16.msra.mxu0 %v3315_v34 }
  0xb4   :  { %3021 = vmatprep.subr.bf16.mxu0 %v3318_v35 }
  0xb5   :  { %3042 = vmatpush3.bf16.msra.mxu1 %v3317_v36 }
  0xb6   :  { %3043 = vmatprep.subr.bf16.mxu1 %v3320_v37 }
  0xb7   :  { %3022 = vmatpush3.bf16.msra.mxu0 %v3319_v38 }
  0xb8   :  { %3023 = vmatprep.subr.bf16.mxu0 %v3322_v39 }
  0xb9   :  { %3044 = vmatpush3.bf16.msra.mxu1 %v3321_v40 }
  0xba   :  { %3045 = vmatprep.subr.bf16.mxu1 %v3324_v42 }
  0xbb   :  { %3024 = vmatpush3.bf16.msra.mxu0 %v3323_v43 }
  0xbc   :  { %3025 = vmatprep.subr.bf16.mxu0 %v3326_v44 }
  0xbd   :  { %3046 = vmatpush3.bf16.msra.mxu1 %v3325_v45 }
  0xbe   :  { %3047 = vmatprep.subr.bf16.mxu1 %v3328_v47 }
  0xbf   :  { %3026 = vmatpush3.bf16.msra.mxu0 %v3327_v46 }
  0xc0   :  { %3078 = vmatprep.subr.bf16.mxu0 %v3376_v51 }
  0xc1   :  { %3048 = vmatpush3.bf16.msra.mxu1 %v3330_v48 }
  0xc2   :  { %2233 = vmatmul.mubr.bf16.vlgmr.msra.gmra.mrb[20].mxu0 %v563_v49  ;;  %3090 = vmatprep.subr.bf16.mxu1 %v3376_v51 }
  0xc3   :  { %3079 = vmatpush3.bf16.msra.mxu0 %v3331_v50  ;;  %3086 = vmatprep.mubr.msk.bf16.mxu0 %vm3377_vm0, %v3376_v51 }
  0xc4   :  { %2273 = vmatmul.mubr.bf16.vlgmr.msra.gmra.mrb[20].mxu1 %v579_v52  ;;  %3080 = vmatprep.subr.bf16.mxu0 %v3376_v51 }
  0xc5   :  { %3106 = vmatprep.mubr.msk.bf16.mxu1 %vm3377_vm0, %v3376_v51 }
  0xc6   :  { %12 = vsyncpa [#allocation3], 0  ;;  %v3333_v54 = vld [vmem:[%s4152_s1 + $0x610] sm:$0xff]   ;;  %v3334_v55 = vld [vmem:[%s4152_s1 + $0x618] sm:$0xff]   ;;  %vm1796_vm1 = vcmask 523264   ;;  %vm2552_vm2 = vcmask 41984  }
  0xc7   :  { %3081 = vmatpush3.bf16.msra.mxu0 %v3332_v53  ;;  %v2575_v56 = vld.sshfl [vmem:[%s4151_s0 + $0x18] sm:$0x1 pattern:$0x75316420]  ;;  %v2574_v59 = vld [vmem:[%s4153_s2] ss:$0 sm:$0xff] }
  0xc8   :  { %3082 = vmatprep.subr.bf16.mxu0 %v3376_v51  ;;  %v595_v57 = vrot.slane %v2575_v56, %v3525_v41  ;;  %v3335_v6 = vld [vmem:[%s4154_s3] sm:$0xff]   ;;  %v3336_v7 = vld [vmem:[%s4154_s3 + $0x8] sm:$0xff]   ;;  %v3337_v8 = vld [vmem:[%s4154_s3 + $0x10] sm:$0xff]  }
  0xc9   :  { %3091 = vmatpush3.bf16.msra.mxu1 %v3335_v6  ;;  %v3338_v14 = vld [vmem:[%s4154_s3 + $0x18] sm:$0xff]   ;;  %v3339_v20 = vld [vmem:[%s4154_s3 + $0x20] sm:$0xff]   ;;  %v3340_v23 = vld [vmem:[%s4154_s3 + $0x28] sm:$0xff]  }
  0xca   :  { %3092 = vmatprep.subr.bf16.mxu1 %v3376_v51  ;;  %v3341_v24 = vld [vmem:[%s4154_s3 + $0x30] sm:$0xff]   ;;  %v3342_v25 = vld [vmem:[%s4154_s3 + $0x38] sm:$0xff]   ;;  %v3343_v26 = vld [vmem:[%s4156_s5] sm:$0xff]  }
  0xcb   :  { %3083 = vmatpush3.bf16.msra.mxu0 %v3333_v54  ;;  %v3344_v27 = vld [vmem:[%s4156_s5 + $0x8] sm:$0xff]   ;;  %v3345_v28 = vld [vmem:[%s4156_s5 + $0x10] sm:$0xff]   ;;  %v3346_v31 = vld [vmem:[%s4156_s5 + $0x18] sm:$0xff]  }
  0xcc   :  { %3084 = vmatprep.subr.bf16.mxu0 %v3376_v51  ;;  %v3347_v42 = vld [vmem:[%s4156_s5 + $0x20] sm:$0xff]   ;;  %v3348_v44 = vld [vmem:[%s4156_s5 + $0x28] sm:$0xff]  }
  0xcd   :  { %3093 = vmatpush3.bf16.msra.mxu1 %v3336_v7 }
  0xce   :  { %3094 = vmatprep.subr.bf16.mxu1 %v3376_v51 }
  0xcf   :  { %3085 = vmatpush3.bf16.msra.mxu0 %v3334_v55 }
  0xd0   :  { %3110 = vmatprep.subr.bf16.mxu0 %v3376_v51 }
  0xd1   :  { %3095 = vmatpush3.bf16.msra.mxu1 %v3337_v8 }
  0xd2   :  { %3087 = vmatmul.mubr.msk.bf16.vlgmr.msra.gmra.mrb[24].mxu0 %vm1796_vm1, %v595_v57  ;;  %3096 = vmatprep.subr.bf16.mxu1 %v3376_v51 }
  0xd3   :  { %3126 = vmatprep.mubr.msk.bf16.mxu0 %vm3377_vm0, %v3376_v51  ;;  %3111 = vmatpush3.bf16.msra.mxu0 %v3343_v26  ;;  %v2773_v26 = vld [vmem:[%s4155_s4] ss:$0 sm:$0xff]  ;;  %s3379_s4 = smov [#allocation2]  }
  0xd4   :  { %3112 = vmatprep.subr.bf16.mxu0 %v3376_v51 }
  0xd5   :  { %3097 = vmatpush3.bf16.msra.mxu1 %v3338_v14 }
  0xd6   :  { %3098 = vmatprep.subr.bf16.mxu1 %v3376_v51 }
  0xd7   :  { %3113 = vmatpush3.bf16.msra.mxu0 %v3344_v27 }
  0xd8   :  { %3114 = vmatprep.subr.bf16.mxu0 %v3376_v51 }
  0xd9   :  { %3099 = vmatpush3.bf16.msra.mxu1 %v3339_v20 }
  0xda   :  { %3100 = vmatprep.subr.bf16.mxu1 %v3376_v51 }
  0xdb   :  { %3115 = vmatpush3.bf16.msra.mxu0 %v3345_v28 }
  0xdc   :  { %3116 = vmatprep.subr.bf16.mxu0 %v3376_v51 }
  0xdd   :  { %3101 = vmatpush3.bf16.msra.mxu1 %v3340_v23 }
  0xde   :  { %3102 = vmatprep.subr.bf16.mxu1 %v3376_v51 }
  0xdf   :  { %3117 = vmatpush3.bf16.msra.mxu0 %v3346_v31 }
  0xe0   :  { %3118 = vmatprep.subr.bf16.mxu0 %v3376_v51 }
  0xe1   :  { %3103 = vmatpush3.bf16.msra.mxu1 %v3341_v24  ;;  %v3349_v24 = vld [vmem:[%s4156_s5 + $0x30] sm:$0xff]  }
  0xe2   :  { %3104 = vmatprep.subr.bf16.mxu1 %v3376_v51 }
  0xe3   :  { %3119 = vmatpush3.bf16.msra.mxu0 %v3347_v42 }
  0xe4   :  { %3120 = vmatprep.subr.bf16.mxu0 %v3376_v51 }
  0xe5   :  { %3105 = vmatpush3.bf16.msra.mxu1 %v3342_v25  ;;  %v3350_v25 = vld [vmem:[%s4156_s5 + $0x38] sm:$0xff]   ;;  %s2566_s5 = sshll.u32 %s3379_s4, 4  ;;  %s2567_s5 = int_to_ptr.vmem [resolvable:$true] %s2566_s5 }
  0xe6   :  { %s3351_s18 = scalar_lea.vmem %s2567_s5, 32  ;;  %p3356_p1 = scmp.lt.s32.totalorder %s2567_s5, %s2567_s5 }
  0xe7   :  { %3121 = vmatpush3.bf16.msra.mxu0 %v3348_v44  ;;  %p3352_p0 = scmp.ne.s32.totalorder %s2567_s5, %s3351_s18  ;;  %p3357_p2 = scmp.lt.s32.totalorder %s3351_s18, %s3351_s18 }
  0xe8   :  { %3122 = vmatprep.subr.bf16.mxu0 %v3376_v51 }
  0xe9   :  { %p3358_p3 = por %p3357_p2, %p3356_p1 }
  0xeb   :  { %3123 = vmatpush3.bf16.msra.mxu0 %v3349_v24  ;;  %p3359_p4 = pnand %p3358_p3, %p3352_p0 }
  0xec   :  { %3124 = vmatprep.subr.bf16.mxu0 %v3376_v51  ;;  %v2782_v51 = vld [vmem:[%s4157_s6] ss:$0 sm:$0xff] }
  0xef   :  { %3125 = vmatpush3.bf16.msra.mxu0 %v3350_v25 }
  0xf5   :  { %v2807_v58 = vpop.f32.mrb[0].mxu0 }
  0xf6   :  { %v2808_v60 = vpop.f32.mrb[1].mxu0 }
  0xf7   :  { %v2809_v61 = vadd.f32 %v2808_v60, %v2807_v58  ;;  %v2810_v62 = vpop.f32.mrb[2].mxu0  ;;  %v2829_v63 = vpop.f32.mrb[0].mxu1 }
  0xf8   :  { %v2811_v0 = vpop.f32.mrb[3].mxu0  ;;  %v2830_v1 = vpop.f32.mrb[1].mxu1 }
  0xf9   :  { %v1835_v41 = vadd.f32 %v2809_v61, %v2574_v59  ;;  %v2831_v2 = vadd.f32 %v2830_v1, %v2829_v63  ;;  %v2832_v3 = vpop.f32.mrb[2].mxu1 }
  0xfa   :  { %v2833_v4 = vpop.f32.mrb[3].mxu1 }
  0xfb   :  { %v1875_v5 = vadd.f32 %v2831_v2, %v1835_v41 }
 0x115   :  { %v2851_v9 = vpop.f32.mrb[4].mxu0 }
 0x116   :  { %v2852_v10 = vpop.f32.mrb[5].mxu0 }
 0x117   :  { %v2853_v11 = vadd.f32 %v2852_v10, %v2851_v9  ;;  %v2854_v12 = vpop.f32.mrb[6].mxu0  ;;  %v2873_v13 = vpop.f32.mrb[4].mxu1 }
 0x118   :  { %v2855_v15 = vpop.f32.mrb[7].mxu0  ;;  %v2874_v16 = vpop.f32.mrb[5].mxu1 }
 0x119   :  { %v1915_v17 = vadd.f32 %v2853_v11, %v1875_v5  ;;  %v2875_v18 = vadd.f32 %v2874_v16, %v2873_v13  ;;  %v2876_v19 = vpop.f32.mrb[6].mxu1 }
 0x11a   :  { %v2877_v21 = vpop.f32.mrb[7].mxu1 }
 0x11b   :  { %v1955_v22 = vadd.f32 %v2875_v18, %v1915_v17 }
 0x135   :  { %v2895_v29 = vpop.f32.mrb[8].mxu0 }
 0x136   :  { %v2896_v30 = vpop.f32.mrb[9].mxu0 }
 0x137   :  { %v2897_v32 = vadd.f32 %v2896_v30, %v2895_v29  ;;  %v2898_v33 = vpop.f32.mrb[10].mxu0  ;;  %v2917_v34 = vpop.f32.mrb[8].mxu1 }
 0x138   :  { %v2899_v35 = vpop.f32.mrb[11].mxu0  ;;  %v2918_v36 = vpop.f32.mrb[9].mxu1 }
 0x139   :  { %v1995_v37 = vadd.f32 %v2897_v32, %v1955_v22  ;;  %v2919_v38 = vadd.f32 %v2918_v36, %v2917_v34  ;;  %v2920_v39 = vpop.f32.mrb[10].mxu1  ;;  %v3378_v34 = vmov 6  }
 0x13a   :  { %v2921_v40 = vpop.f32.mrb[11].mxu1  ;;  %3135 = vset.pattern.permute.xlu0 %v3378_v34 }
 0x13b   :  { %v2035_v43 = vadd.f32 %v2919_v38, %v1995_v37 }
 0x155   :  { %v2939_v45 = vpop.f32.mrb[12].mxu0 }
 0x156   :  { %v2940_v46 = vpop.f32.mrb[13].mxu0 }
 0x157   :  { %v2941_v47 = vadd.f32 %v2940_v46, %v2939_v45  ;;  %v2942_v48 = vpop.f32.mrb[14].mxu0  ;;  %v2961_v49 = vpop.f32.mrb[12].mxu1 }
 0x158   :  { %v2943_v50 = vpop.f32.mrb[15].mxu0  ;;  %v2962_v52 = vpop.f32.mrb[13].mxu1 }
 0x159   :  { %v2075_v53 = vadd.f32 %v2941_v47, %v2035_v43  ;;  %v2963_v54 = vadd.f32 %v2962_v52, %v2961_v49  ;;  %v2964_v55 = vpop.f32.mrb[14].mxu1 }
 0x15a   :  { %v2965_v56 = vpop.f32.mrb[15].mxu1 }
 0x15b   :  { %v2115_v57 = vadd.f32 %v2963_v54, %v2075_v53 }
 0x175   :  { %v2983_v58 = vpop.f32.mrb[16].mxu0 }
 0x176   :  { %v2984_v59 = vpop.f32.mrb[17].mxu0 }
 0x177   :  { %v2985_v60 = vadd.f32 %v2984_v59, %v2983_v58  ;;  %v2986_v61 = vpop.f32.mrb[18].mxu0  ;;  %v3005_v62 = vpop.f32.mrb[16].mxu1 }
 0x178   :  { %v2987_v63 = vpop.f32.mrb[19].mxu0  ;;  %v3006_v0 = vpop.f32.mrb[17].mxu1 }
 0x179   :  { %v2155_v1 = vadd.f32 %v2985_v60, %v2115_v57  ;;  %v3007_v41 = vadd.f32 %v3006_v0, %v3005_v62  ;;  %v3008_v2 = vpop.f32.mrb[18].mxu1 }
 0x17a   :  { %v3009_v3 = vpop.f32.mrb[19].mxu1 }
 0x17b   :  { %v2195_v4 = vadd.f32 %v3007_v41, %v2155_v1 }
 0x195   :  { %v3027_v5 = vpop.f32.mrb[20].mxu0 }
 0x196   :  { %v3028_v6 = vpop.f32.mrb[21].mxu0 }
 0x197   :  { %v3029_v7 = vadd.f32 %v3028_v6, %v3027_v5  ;;  %v3030_v8 = vpop.f32.mrb[22].mxu0  ;;  %v3049_v9 = vpop.f32.mrb[20].mxu1 }
 0x198   :  { %v3031_v10 = vpop.f32.mrb[23].mxu0  ;;  %v3050_v11 = vpop.f32.mrb[21].mxu1 }
 0x199   :  { %v2235_v12 = vadd.f32 %v3029_v7, %v2195_v4  ;;  %v3051_v13 = vadd.f32 %v3050_v11, %v3049_v9  ;;  %v3052_v14 = vpop.f32.mrb[22].mxu1 }
 0x19a   :  { %v3053_v15 = vpop.f32.mrb[23].mxu1 }
 0x19b   :  { %v2275_v16 = vadd.f32 %v3051_v13, %v2235_v12 }
 0x1a5   :  { %v2314_v17 = vpop.f32.mrb[24].mxu0 }
 0x1a6   :  { %v2315_v18 = vadd.f32 %v2314_v17, %v2275_v16  ;;  %v3088_v19 = vpop.f32.mrb[25].mxu0 }
 0x1a7   :  { %v2317_v20 = vpop.f32.mrb[26].mxu0 }
 0x1a8   :  { %v2320_v21 = vmax.f32 %v2315_v18, 0.0  ;;  %v3089_v22 = vpop.f32.mrb[27].mxu0 }
 0x1aa   :  { %v2338_v23 = vpack.c.bf16 %v2320_v21, %v2320_v21 }
 0x1ac   :  { %3107 = vmatmul.mubr.bf16.vlgmr.msra.gmra.mrb[24].mxu1 %v2338_v23 }
 0x27f   :  { %v2427_v27 = vpop.f32.mrb[24].mxu1 }
 0x280   :  { %v2428_v28 = vadd.f32 %v2773_v26, %v2427_v27  ;;  %v3108_v29 = vpop.f32.mrb[25].mxu1 }
 0x281   :  { %v2430_v30 = vpop.f32.mrb[26].mxu1 }
 0x282   :  { %v2433_v31 = vmax.f32 %v2428_v28, 0.0  ;;  %v3109_v32 = vpop.f32.mrb[27].mxu1 }
 0x284   :  { %v2451_v33 = vpack.c.bf16 %v2433_v31, %v2433_v31 }
 0x286   :  { %3127 = vmatmul.mubr.bf16.vlgmr.msra.gmra.mrb[28].mxu0 %v2451_v33 }
 0x359   :  { %v2540_v35 = vpop.f32.mrb[28].mxu0 }
 0x35a   :  { %v2541_v36 = vadd.f32 %v2782_v51, %v2540_v35  ;;  %v3128_v37 = vpop.f32.mrb[29].mxu0 }
 0x35b   :  { %v2543_v38 = vpop.f32.mrb[30].mxu0 }
 0x35c   :  { %v3129_v39 = vpop.f32.mrb[31].mxu0  ;;  %v2553_v40 = vsel %vm2552_vm2, %v2541_v36, 0.0 }
 0x35d   :  { %2554 = vadd.xlane.f32.xlu0 %v2553_v40 }
 0x373   :  { %2548 = vperm.xlu0 %3135, %v2541_v36  }
 0x3ea   :  { %v2555_v42 = vpop.xlane.xlu0 %2554 }
 0x3eb   :  { %v2557_v44 = vmul.f32 0.16666667, %v2555_v42 }
 0x3f2   :  { %v2549_v43 = vpop.permute.xlu0 %2548 }
 0x3f3   :  { %v2551_v45 = vadd.f32 %v2549_v43, %v2541_v36 }
 0x3f5   :  { %v2558_v46 = vsub.f32 %v2551_v45, %v2557_v44 }
 0x3f7   :  { %2559 = vst [vmem:[#allocation2] sm:$0x3] %v2558_v46 }
 0x3f8   :  { %3362 = shalt.err (!%p3359_p4)
}
 0x3f9   :  { %s3363_s20 = scalar_lea.hbm %s4158_s7, 32 }
 0x3fa   :  { %p3364_p5 = scmp.ne.s32.totalorder %s4158_s7, %s3363_s20  ;;  %p3367_p6 = scmp.lt.u32.totalorder %s3363_s20, %s4158_s7 }
 0x3fc   :  { %p3369_p7 = pnand %p3367_p6, %p3364_p5 }
 0x3fe   :  { %3372 = shalt.err (!%p3369_p7)
}
 0x3ff   :  { %2569 = dma.vmem_to_hbm [thread:$0]  %s2567_s5, 32, %s4158_s7, [#allocation3]  }
 0x400   :  { %3373 = dma.done.wait [#allocation3], 32  }
 0x401   :  { %3374 = vsyncadd [#allocation3], 4294967264 }
 0x402   :  { %2573 = vsyncpa [#allocation3], 1 }

</bundles_post_ra>
